<compile_context>
chip_gen: v7x
topology: tpu7x:2x2x1
jax: 0.10.0
libtpu: 0.0.40
codegen_flags: <defaults>
</compile_context>

<pallas_src>
import functools

import jax
import jax.numpy as jnp
from jax.experimental import pallas as pl
from jax.experimental.pallas import tpu as pltpu


CIN_PAD = 16   # input channels padded 3 -> 16: one full bf16 sublane tile, so the
               # first conv's im2col sublane-concat stays tile-aligned.
COUT_PAD = 8   # final output channels padded 3 -> 8 (one f32 sublane tile).


# ---------------------------------------------------------------------------
# Fused Pallas kernel: first conv + (L-2) RCABs + last conv, one image per step
# ---------------------------------------------------------------------------
def _descanning_kernel(x_ref, wf_ref, sf_ref, bf_ref,
                       rw_ref, rs_ref, rb_ref,
                       f1w_ref, f1b_ref, f2w_ref, f2b_ref,
                       wl_ref, bl_ref,
                       o_ref, pad_ref, *, H, W, interior_off):
    HW = H * W
    C = rw_ref.shape[2]
    cin = x_ref.shape[0]
    n_rcab = rw_ref.shape[0]
    inv_hw = 1.0 / float(HW)

    # Left/right image-border masks for the dx=0 / dx=2 taps (the dy taps are
    # handled by the zero lane-halo around the flattened interior).
    xpos = jax.lax.broadcasted_iota(jnp.int32, (1, HW), 1) % W
    dx_valid = (xpos >= 1, None, xpos <= W - 2)

    # Zero only the lane-halo strips (the interior is fully rewritten before
    # every read).  Done every grid step so the kernel stays correct when the
    # grid is split across TensorCores (each core has its own scratch).
    halo = jnp.zeros((C, interior_off), jnp.bfloat16)
    pad_ref[:, 0:interior_off] = halo
    pad_ref[:, interior_off + HW:] = halo

    def stash(act, rows):
        """Write an activation (rows, H*W) into the bf16 conv-operand scratch."""
        pad_ref[0:rows, interior_off:interior_off + HW] = act.astype(jnp.bfloat16)

    def conv3x3(rows, w_of_dy):
        """Channel-major 3x3 SAME conv reading taps from pad_ref[:rows].

        Three accumulating MXU matmuls (one per dy), K = 3*rows, N = H*W, so
        the im2col transient is only 3x the activation and the matmul output
        is lane-dense.  bf16 operands, f32 accumulation."""
        acc = None
        for dy in range(3):
            taps = []
            for dx in range(3):
                off = interior_off + (dy - 1) * W + (dx - 1)
                t = pad_ref[0:rows, off:off + HW]                  # (rows, HW) bf16
                if dx_valid[dx] is not None:
                    t = jnp.where(dx_valid[dx], t, 0)
                taps.append(t)
            col = jnp.concatenate(taps, axis=0)                    # (3*rows, HW)
            part = jnp.dot(w_of_dy(dy), col,
                           preferred_element_type=jnp.float32)     # (Cout, HW) f32
            acc = part if acc is None else acc + part
        return acc

    # ---- first conv (3 -> C, in-channels zero-padded to 16) + folded BN + ReLU
    stash(x_ref[...], cin)
    act = conv3x3(cin, lambda dy: wf_ref[dy])
    act = jnp.maximum(act * sf_ref[...] + bf_ref[...], 0.0)        # (C, HW) f32

    # ---- RCAB blocks (static unroll; fine for <=4 blocks) ----------------------
    for i in range(n_rcab):
        residual = act
        stash(act, C)
        out = conv3x3(C, lambda dy: rw_ref[i, dy])
        out = jnp.maximum(out * rs_ref[i] + rb_ref[i], 0.0)        # (C, HW)

        # Channel attention kept off the MXU: GAP = lane reduction, the two
        # tiny "fc" layers are VPU multiplies + sublane/lane reductions.
        pooled = jnp.sum(out, axis=1, keepdims=True) * inv_hw                    # (C, 1)
        h1 = jnp.sum(pooled * f1w_ref[i], axis=0, keepdims=True) + f1b_ref[i]    # (1, Cmid)
        h1 = jnp.maximum(h1, 0.0)
        att = jax.nn.sigmoid(
            jnp.sum(h1 * f2w_ref[i], axis=1, keepdims=True) + f2b_ref[i])        # (C, 1)

        act = out * att + residual

    # ---- last conv (C -> 3, out-channels padded to 8; wrapper slices back) ----
    stash(act, C)
    out = conv3x3(C, lambda dy: wl_ref[dy]) + bl_ref[...]           # (COUT_PAD, HW)
    o_ref[...] = out.astype(o_ref.dtype)


# ---------------------------------------------------------------------------
# Parameter packing: channel-major transposed conv weights in bf16
# ---------------------------------------------------------------------------
def _pack_params(params):
    C = params['first']['w'].shape[-1]
    Cmid = params['rcabs'][0]['fc1w'].shape[-1]

    def conv_w_cm(w_hwio, cin_pad=None, cout_pad=None):
        # (3,3,Cin,Cout) HWIO -> (3, Cout_p, 3*Cin_p) bf16, K index = dx*Cin + c.
        _, _, ci, co = w_hwio.shape
        if cin_pad is not None:
            w_hwio = jnp.pad(w_hwio, ((0, 0), (0, 0), (0, cin_pad - ci), (0, 0)))
            ci = cin_pad
        if cout_pad is not None:
            w_hwio = jnp.pad(w_hwio, ((0, 0), (0, 0), (0, 0), (0, cout_pad - co)))
            co = cout_pad
        w = w_hwio.reshape(3, 3 * ci, co)
        return jnp.transpose(w, (0, 2, 1)).astype(jnp.bfloat16)     # (3, co, 3*ci)

    wf = conv_w_cm(params['first']['w'], cin_pad=CIN_PAD)
    sf = params['first']['scale'].reshape(C, 1)
    bf = params['first']['bias'].reshape(C, 1)

    rw = jnp.stack([conv_w_cm(p['w']) for p in params['rcabs']])            # (nr,3,C,3C)
    rs = jnp.stack([p['scale'].reshape(C, 1) for p in params['rcabs']])
    rb = jnp.stack([p['bias'].reshape(C, 1) for p in params['rcabs']])
    f1w = jnp.stack([p['fc1w'] for p in params['rcabs']])                   # (nr, C, Cmid)
    f1b = jnp.stack([p['fc1b'].reshape(1, Cmid) for p in params['rcabs']])  # (nr, 1, Cmid)
    f2w = jnp.stack([p['fc2w'].T for p in params['rcabs']])                 # (nr, C, Cmid)
    f2b = jnp.stack([p['fc2b'].reshape(C, 1) for p in params['rcabs']])     # (nr, C, 1)

    wl = conv_w_cm(params['last']['w'], cout_pad=COUT_PAD)                  # (3, 8, 3C)
    bl = jnp.pad(params['last']['bias'], (0, COUT_PAD - 3)).reshape(COUT_PAD, 1)
    return wf, sf, bf, rw, rs, rb, f1w, f1b, f2w, f2b, wl, bl


# ---------------------------------------------------------------------------
# Forward wrapper (single pallas_call for the whole network); NCHW in / NCHW out
# ---------------------------------------------------------------------------
def descanning_forward(x_nchw, params):
    N, cin, H, W = x_nchw.shape
    C = params['first']['w'].shape[-1]
    HW = H * W
    wf, sf, bf, rw, rs, rb, f1w, f1b, f2w, f2b, wl, bl = _pack_params(params)
    nr, Cmid = f1w.shape[0], f1w.shape[-1]

    # Channel-major, spatially flattened input (lane-dense last dim = H*W).
    # The only wrapper-side pad is the channel pad 3 -> 16.
    x_cm = jnp.pad(x_nchw, ((0, 0), (0, CIN_PAD - cin), (0, 0), (0, 0)))
    x_cm = x_cm.reshape(N, CIN_PAD, HW)

    interior_off = (W + 1 + 127) // 128 * 128      # 128-aligned interior, halo >= W+1
    padw = 2 * interior_off + HW

    kernel = functools.partial(_descanning_kernel, H=H, W=W,
                               interior_off=interior_off)

    full2 = lambda n: (0, 0)
    full3 = lambda n: (0, 0, 0)
    full4 = lambda n: (0, 0, 0, 0)

    out = pl.pallas_call(
        kernel,
        out_shape=jax.ShapeDtypeStruct((N, COUT_PAD, HW), x_nchw.dtype),
        grid=(N,),
        in_specs=[
            pl.BlockSpec((None, CIN_PAD, HW), lambda n: (n, 0, 0)),   # input image
            pl.BlockSpec((3, C, 3 * CIN_PAD), full3),                 # first conv W (bf16)
            pl.BlockSpec((C, 1), full2),                              # first scale
            pl.BlockSpec((C, 1), full2),                              # first bias
            pl.BlockSpec((nr, 3, C, 3 * C), full4),                   # RCAB conv W (bf16)
            pl.BlockSpec((nr, C, 1), full3),                          # RCAB scales
            pl.BlockSpec((nr, C, 1), full3),                          # RCAB biases
            pl.BlockSpec((nr, C, Cmid), full3),                       # fc1 weights
            pl.BlockSpec((nr, 1, Cmid), full3),                       # fc1 biases
            pl.BlockSpec((nr, C, Cmid), full3),                       # fc2 weights (T)
            pl.BlockSpec((nr, C, 1), full3),                          # fc2 biases
            pl.BlockSpec((3, COUT_PAD, 3 * C), full3),                # last conv W (bf16)
            pl.BlockSpec((COUT_PAD, 1), full2),                       # last conv bias
        ],
        out_specs=pl.BlockSpec((None, COUT_PAD, HW), lambda n: (n, 0, 0)),
        scratch_shapes=[pltpu.VMEM((C, padw), jnp.bfloat16)],         # bf16 conv operands
        compiler_params=pltpu.CompilerParams(
            dimension_semantics=("parallel",),
            # Actual usage: ~180 KiB of pipelined buffers + scratch + small
            # kernel temporaries; 16 MiB leaves ample headroom on v7x (64 MiB).
            vmem_limit_bytes=16 * 1024 * 1024),
    )(x_cm, wf, sf, bf, rw, rs, rb, f1w, f1b, f2w, f2b, wl, bl)

    return out.reshape(N, COUT_PAD, H, W)[:, :cin]


# ---------------------------------------------------------------------------
# Parameter construction (deterministic, synthetic; BN folded in eval mode)
# ---------------------------------------------------------------------------
def _fold_bn(conv_b, gamma, beta, mean, var, eps=1e-5):
    s = gamma / jnp.sqrt(var + eps)
    return s, (conv_b - mean) * s + beta


def init_params(key, num_layers=4, num_channels=32, reduction=16):
    assert num_layers >= 3
    C, Cmid = num_channels, num_channels // reduction
    std = 0.05

    def conv_bn(key, cin, cout):
        k = jax.random.split(key, 6)
        w = jax.random.normal(k[0], (3, 3, cin, cout), jnp.float32) * std
        b = jax.random.normal(k[1], (cout,), jnp.float32) * 0.01
        gamma = 1.0 + 0.1 * jax.random.normal(k[2], (cout,), jnp.float32)
        beta = 0.01 * jax.random.normal(k[3], (cout,), jnp.float32)
        mean = 0.01 * jax.random.normal(k[4], (cout,), jnp.float32)
        var = 1.0 + 0.1 * jax.random.uniform(k[5], (cout,), jnp.float32)
        scale, bias = _fold_bn(b, gamma, beta, mean, var)
        return w, scale, bias

    keys = jax.random.split(key, num_layers)
    params = {}
    w, s, b = conv_bn(keys[0], 3, C)
    params['first'] = {'w': w, 'scale': s, 'bias': b}

    rcabs = []
    for i in range(num_layers - 2):
        kk = jax.random.split(keys[1 + i], 5)
        w, s, b = conv_bn(kk[0], C, C)
        rcabs.append({
            'w': w, 'scale': s, 'bias': b,
            'fc1w': jax.random.normal(kk[1], (C, Cmid), jnp.float32) * std,
            'fc1b': jax.random.normal(kk[2], (Cmid,), jnp.float32) * 0.01,
            'fc2w': jax.random.normal(kk[3], (Cmid, C), jnp.float32) * std,
            'fc2b': jax.random.normal(kk[4], (C,), jnp.float32) * 0.01,
        })
    params['rcabs'] = rcabs

    kk = jax.random.split(keys[-1], 2)
    params['last'] = {
        'w': jax.random.normal(kk[0], (3, 3, C, 3), jnp.float32) * std,
        'bias': jax.random.normal(kk[1], (3,), jnp.float32) * 0.01,
    }
    return params


# ---------------------------------------------------------------------------
# Pure-JAX f32 reference (NHWC) for correctness check
# ---------------------------------------------------------------------------
def _conv_ref(x, w):
    return jax.lax.conv_general_dilated(
        x, w, window_strides=(1, 1), padding='SAME',
        dimension_numbers=('NHWC', 'HWIO', 'NHWC'))


def descanning_ref(x, params):
    h = jnp.maximum(_conv_ref(x, params['first']['w']) * params['first']['scale']
                    + params['first']['bias'], 0.0)
    for p in params['rcabs']:
        res = h
        out = jnp.maximum(_conv_ref(h, p['w']) * p['scale'] + p['bias'], 0.0)
        pooled = jnp.mean(out, axis=(1, 2))                       # (N, C)
        a = jnp.maximum(pooled @ p['fc1w'] + p['fc1b'], 0.0)
        a = jax.nn.sigmoid(a @ p['fc2w'] + p['fc2b'])
        h = out * a[:, None, None, :] + res
    return _conv_ref(h, params['last']['w']) + params['last']['bias']


# ---------------------------------------------------------------------------
if __name__ == "__main__":
    key = jax.random.PRNGKey(0)
    k_x, k_p = jax.random.split(key)

    # Small config consistent with the module: num_layers=4 (2 RCABs), C=32.
    N, H, W = 2, 16, 16
    x_nchw = jax.random.normal(k_x, (N, 3, H, W), jnp.float32)    # PyTorch layout
    params = init_params(k_p, num_layers=4, num_channels=32, reduction=16)

    fwd = jax.jit(descanning_forward)
    out = fwd(x_nchw, params)                                     # (N, 3, H, W)
    jax.block_until_ready(out)

    ref = jnp.transpose(descanning_ref(jnp.transpose(x_nchw, (0, 2, 3, 1)), params),
                        (0, 3, 1, 2))
    assert out.shape == (N, 3, H, W)
    # Tolerance accounts for bf16 MXU operands (f32 accumulation) vs f32 reference.
    assert jnp.allclose(out, ref, atol=1e-2, rtol=1e-2), "mismatch vs JAX reference"

    print("KERNEL_OK")
</pallas_src>

<mosaic_0001>
module attributes {stable_mosaic.version = 11 : i64} {
  func.func @_descanning_kernel(%arg0: i32, %arg1: memref<1x16x256xf32, #tpu.memory_space<vmem>>, %arg2: memref<3x32x48xbf16, #tpu.memory_space<vmem>>, %arg3: memref<32x1xf32, #tpu.memory_space<vmem>>, %arg4: memref<32x1xf32, #tpu.memory_space<vmem>>, %arg5: memref<2x3x32x96xbf16, #tpu.memory_space<vmem>>, %arg6: memref<2x32x1xf32, #tpu.memory_space<vmem>>, %arg7: memref<2x32x1xf32, #tpu.memory_space<vmem>>, %arg8: memref<2x32x2xf32, #tpu.memory_space<vmem>>, %arg9: memref<2x1x2xf32, #tpu.memory_space<vmem>>, %arg10: memref<2x32x2xf32, #tpu.memory_space<vmem>>, %arg11: memref<2x32x1xf32, #tpu.memory_space<vmem>>, %arg12: memref<3x8x96xbf16, #tpu.memory_space<vmem>>, %arg13: memref<8x1xf32, #tpu.memory_space<vmem>>, %arg14: memref<1x8x256xf32, #tpu.memory_space<vmem>>, %arg15: memref<32x512xbf16, #tpu.memory_space<vmem>>) attributes {dimension_semantics = [#tpu.dimension_semantics<parallel>], iteration_bounds = array<i64: 2>, scalar_prefetch = 0 : i64, scratch_operands = 1 : i64, tpu.core_type = #tpu.core_type<tc>, window_params = [{transform_indices = @transform_0, window_bounds = array<i64: 1, 16, 256>}, {pipeline_mode = #tpu.pipeline_mode<synchronous>, transform_indices = @transform_1, window_bounds = array<i64: 3, 32, 48>}, {pipeline_mode = #tpu.pipeline_mode<synchronous>, transform_indices = @transform_2, window_bounds = array<i64: 32, 1>}, {pipeline_mode = #tpu.pipeline_mode<synchronous>, transform_indices = @transform_3, window_bounds = array<i64: 32, 1>}, {pipeline_mode = #tpu.pipeline_mode<synchronous>, transform_indices = @transform_4, window_bounds = array<i64: 2, 3, 32, 96>}, {pipeline_mode = #tpu.pipeline_mode<synchronous>, transform_indices = @transform_5, window_bounds = array<i64: 2, 32, 1>}, {pipeline_mode = #tpu.pipeline_mode<synchronous>, transform_indices = @transform_6, window_bounds = array<i64: 2, 32, 1>}, {pipeline_mode = #tpu.pipeline_mode<synchronous>, transform_indices = @transform_7, window_bounds = array<i64: 2, 32, 2>}, {pipeline_mode = #tpu.pipeline_mode<synchronous>, transform_indices = @transform_8, window_bounds = array<i64: 2, 1, 2>}, {pipeline_mode = #tpu.pipeline_mode<synchronous>, transform_indices = @transform_9, window_bounds = array<i64: 2, 32, 2>}, {pipeline_mode = #tpu.pipeline_mode<synchronous>, transform_indices = @transform_10, window_bounds = array<i64: 2, 32, 1>}, {pipeline_mode = #tpu.pipeline_mode<synchronous>, transform_indices = @transform_11, window_bounds = array<i64: 3, 8, 96>}, {pipeline_mode = #tpu.pipeline_mode<synchronous>, transform_indices = @transform_12, window_bounds = array<i64: 8, 1>}, {transform_indices = @transform_13, window_bounds = array<i64: 1, 8, 256>}]} {
    %0 = tpu.iota {dimensions = array<i32: 1>} : vector<1x256xi32>
    %c16_i32 = arith.constant 16 : i32
    %c0_i32 = arith.constant 0 : i32
    %1 = arith.cmpi eq, %c16_i32, %c0_i32 : i32
    %c1_i32 = arith.constant 1 : i32
    %2 = arith.select %1, %c1_i32, %c16_i32 : i32
    %3 = vector.broadcast %2 : i32 to vector<1x256xi32>
    %4 = arith.remsi %0, %3 : vector<1x256xi32>
    %c0_i32_0 = arith.constant 0 : i32
    %5 = vector.broadcast %c0_i32_0 : i32 to vector<1x256xi32>
    %6 = arith.cmpi ne, %4, %5 : vector<1x256xi32>
    %c0_i32_1 = arith.constant 0 : i32
    %7 = vector.broadcast %c0_i32_1 : i32 to vector<1x256xi32>
    %8 = arith.cmpi slt, %4, %7 : vector<1x256xi32>
    %c0_i32_2 = arith.constant 0 : i32
    %9 = arith.cmpi slt, %2, %c0_i32_2 : i32
    %10 = vector.broadcast %9 : i1 to vector<1x256xi1>
    %11 = vector.broadcast %10 : vector<1x256xi1> to vector<1x256xi1>
    %12 = arith.xori %8, %11 : vector<1x256xi1>
    %13 = arith.andi %12, %6 : vector<1x256xi1>
    %14 = vector.broadcast %2 : i32 to vector<1x256xi32>
    %15 = arith.addi %4, %14 : vector<1x256xi32>
    %16 = arith.select %13, %15, %4 : vector<1x256xi1>, vector<1x256xi32>
    %c1_i32_3 = arith.constant 1 : i32
    %17 = vector.broadcast %c1_i32_3 : i32 to vector<1x256xi32>
    %18 = arith.cmpi sge, %16, %17 : vector<1x256xi32>
    %c14_i32 = arith.constant 14 : i32
    %19 = vector.broadcast %c14_i32 : i32 to vector<1x256xi32>
    %20 = arith.cmpi sle, %16, %19 : vector<1x256xi32>
    %cst = arith.constant 0.000000e+00 : bf16
    %21 = vector.broadcast %cst : bf16 to vector<32x128xbf16>
    %c0 = arith.constant 0 : index
    %c0_4 = arith.constant 0 : index
    %22 = vector.load %arg15[%c0, %c0_4] : memref<32x512xbf16, #tpu.memory_space<vmem>>, vector<32x128xbf16>
    tpu.vector_store %arg15[%c0, %c0_4], %21 {strides = array<i32>} : memref<32x512xbf16, #tpu.memory_space<vmem>>, vector<32x128xbf16>,
    %c0_5 = arith.constant 0 : index
    %c384 = arith.constant 384 : index
    %23 = vector.load %arg15[%c0_5, %c384] : memref<32x512xbf16, #tpu.memory_space<vmem>>, vector<32x128xbf16>
    tpu.vector_store %arg15[%c0_5, %c384], %21 {strides = array<i32>} : memref<32x512xbf16, #tpu.memory_space<vmem>>, vector<32x128xbf16>,
    %c0_6 = arith.constant 0 : index
    %c0_7 = arith.constant 0 : index
    %c0_8 = arith.constant 0 : index
    %24 = vector.load %arg1[%c0_6, %c0_7, %c0_8] : memref<1x16x256xf32, #tpu.memory_space<vmem>>, vector<1x16x256xf32>
    %25 = vector.shape_cast %24 : vector<1x16x256xf32> to vector<16x256xf32>
    %26 = arith.truncf %25 : vector<16x256xf32> to vector<16x256xbf16>
    %c0_9 = arith.constant 0 : index
    %c128 = arith.constant 128 : index
    %27 = vector.load %arg15[%c0_9, %c128] : memref<32x512xbf16, #tpu.memory_space<vmem>>, vector<16x256xbf16>
    tpu.vector_store %arg15[%c0_9, %c128], %26 {strides = array<i32>} : memref<32x512xbf16, #tpu.memory_space<vmem>>, vector<16x256xbf16>,
    %c0_10 = arith.constant 0 : index
    %c111 = arith.constant 111 : index
    %28 = vector.load %arg15[%c0_10, %c111] : memref<32x512xbf16, #tpu.memory_space<vmem>>, vector<16x256xbf16>
    %c0_i32_11 = arith.constant 0 : i32
    %29 = arith.sitofp %c0_i32_11 : i32 to bf16
    %30 = vector.shape_cast %18 : vector<1x256xi1> to vector<1x256xi1>
    %31 = vector.broadcast %30 : vector<1x256xi1> to vector<16x256xi1>
    %32 = vector.broadcast %29 : bf16 to vector<16x256xbf16>
    %33 = arith.select %31, %28, %32 : vector<16x256xi1>, vector<16x256xbf16>
    %c0_12 = arith.constant 0 : index
    %c112 = arith.constant 112 : index
    %34 = vector.load %arg15[%c0_12, %c112] : memref<32x512xbf16, #tpu.memory_space<vmem>>, vector<16x256xbf16>
    %c0_13 = arith.constant 0 : index
    %c113 = arith.constant 113 : index
    %35 = vector.load %arg15[%c0_13, %c113] : memref<32x512xbf16, #tpu.memory_space<vmem>>, vector<16x256xbf16>
    %c0_i32_14 = arith.constant 0 : i32
    %36 = arith.sitofp %c0_i32_14 : i32 to bf16
    %37 = vector.shape_cast %20 : vector<1x256xi1> to vector<1x256xi1>
    %38 = vector.broadcast %37 : vector<1x256xi1> to vector<16x256xi1>
    %39 = vector.broadcast %36 : bf16 to vector<16x256xbf16>
    %40 = arith.select %38, %35, %39 : vector<16x256xi1>, vector<16x256xbf16>
    %41 = tpu.concatenate %33, %34, %40 in 0 : vector<16x256xbf16>, vector<16x256xbf16>, vector<16x256xbf16> -> vector<48x256xbf16>
    %c0_15 = arith.constant 0 : index
    %c0_16 = arith.constant 0 : index
    %c0_17 = arith.constant 0 : index
    %42 = vector.load %arg2[%c0_15, %c0_16, %c0_17] : memref<3x32x48xbf16, #tpu.memory_space<vmem>>, vector<1x32x48xbf16>
    %43 = vector.shape_cast %42 : vector<1x32x48xbf16> to vector<32x48xbf16>
    %cst_18 = arith.constant dense<0.000000e+00> : vector<32x256xf32>
    %44 = tpu.matmul %43, %41, %cst_18 {dimension_numbers = #tpu.dot_dimension_numbers<[1], [0], [0], [1], [0, 0, 1, 1], [], []>} : vector<32x48xbf16>, vector<48x256xbf16>, vector<32x256xf32> -> vector<32x256xf32>
    %c0_19 = arith.constant 0 : index
    %c127 = arith.constant 127 : index
    %45 = vector.load %arg15[%c0_19, %c127] : memref<32x512xbf16, #tpu.memory_space<vmem>>, vector<16x256xbf16>
    %c0_i32_20 = arith.constant 0 : i32
    %46 = arith.sitofp %c0_i32_20 : i32 to bf16
    %47 = vector.shape_cast %18 : vector<1x256xi1> to vector<1x256xi1>
    %48 = vector.broadcast %47 : vector<1x256xi1> to vector<16x256xi1>
    %49 = vector.broadcast %46 : bf16 to vector<16x256xbf16>
    %50 = arith.select %48, %45, %49 : vector<16x256xi1>, vector<16x256xbf16>
    %c0_21 = arith.constant 0 : index
    %c128_22 = arith.constant 128 : index
    %51 = vector.load %arg15[%c0_21, %c128_22] : memref<32x512xbf16, #tpu.memory_space<vmem>>, vector<16x256xbf16>
    %c0_23 = arith.constant 0 : index
    %c129 = arith.constant 129 : index
    %52 = vector.load %arg15[%c0_23, %c129] : memref<32x512xbf16, #tpu.memory_space<vmem>>, vector<16x256xbf16>
    %c0_i32_24 = arith.constant 0 : i32
    %53 = arith.sitofp %c0_i32_24 : i32 to bf16
    %54 = vector.shape_cast %20 : vector<1x256xi1> to vector<1x256xi1>
    %55 = vector.broadcast %54 : vector<1x256xi1> to vector<16x256xi1>
    %56 = vector.broadcast %53 : bf16 to vector<16x256xbf16>
    %57 = arith.select %55, %52, %56 : vector<16x256xi1>, vector<16x256xbf16>
    %58 = tpu.concatenate %50, %51, %57 in 0 : vector<16x256xbf16>, vector<16x256xbf16>, vector<16x256xbf16> -> vector<48x256xbf16>
    %c1 = arith.constant 1 : index
    %c0_25 = arith.constant 0 : index
    %c0_26 = arith.constant 0 : index
    %59 = vector.load %arg2[%c1, %c0_25, %c0_26] : memref<3x32x48xbf16, #tpu.memory_space<vmem>>, vector<1x32x48xbf16>
    %60 = vector.shape_cast %59 : vector<1x32x48xbf16> to vector<32x48xbf16>
    %cst_27 = arith.constant dense<0.000000e+00> : vector<32x256xf32>
    %61 = tpu.matmul %60, %58, %cst_27 {dimension_numbers = #tpu.dot_dimension_numbers<[1], [0], [0], [1], [0, 0, 1, 1], [], []>} : vector<32x48xbf16>, vector<48x256xbf16>, vector<32x256xf32> -> vector<32x256xf32>
    %62 = arith.addf %44, %61 : vector<32x256xf32>
    %c0_28 = arith.constant 0 : index
    %c143 = arith.constant 143 : index
    %63 = vector.load %arg15[%c0_28, %c143] : memref<32x512xbf16, #tpu.memory_space<vmem>>, vector<16x256xbf16>
    %c0_i32_29 = arith.constant 0 : i32
    %64 = arith.sitofp %c0_i32_29 : i32 to bf16
    %65 = vector.shape_cast %18 : vector<1x256xi1> to vector<1x256xi1>
    %66 = vector.broadcast %65 : vector<1x256xi1> to vector<16x256xi1>
    %67 = vector.broadcast %64 : bf16 to vector<16x256xbf16>
    %68 = arith.select %66, %63, %67 : vector<16x256xi1>, vector<16x256xbf16>
    %c0_30 = arith.constant 0 : index
    %c144 = arith.constant 144 : index
    %69 = vector.load %arg15[%c0_30, %c144] : memref<32x512xbf16, #tpu.memory_space<vmem>>, vector<16x256xbf16>
    %c0_31 = arith.constant 0 : index
    %c145 = arith.constant 145 : index
    %70 = vector.load %arg15[%c0_31, %c145] : memref<32x512xbf16, #tpu.memory_space<vmem>>, vector<16x256xbf16>
    %c0_i32_32 = arith.constant 0 : i32
    %71 = arith.sitofp %c0_i32_32 : i32 to bf16
    %72 = vector.shape_cast %20 : vector<1x256xi1> to vector<1x256xi1>
    %73 = vector.broadcast %72 : vector<1x256xi1> to vector<16x256xi1>
    %74 = vector.broadcast %71 : bf16 to vector<16x256xbf16>
    %75 = arith.select %73, %70, %74 : vector<16x256xi1>, vector<16x256xbf16>
    %76 = tpu.concatenate %68, %69, %75 in 0 : vector<16x256xbf16>, vector<16x256xbf16>, vector<16x256xbf16> -> vector<48x256xbf16>
    %c2 = arith.constant 2 : index
    %c0_33 = arith.constant 0 : index
    %c0_34 = arith.constant 0 : index
    %77 = vector.load %arg2[%c2, %c0_33, %c0_34] : memref<3x32x48xbf16, #tpu.memory_space<vmem>>, vector<1x32x48xbf16>
    %78 = vector.shape_cast %77 : vector<1x32x48xbf16> to vector<32x48xbf16>
    %cst_35 = arith.constant dense<0.000000e+00> : vector<32x256xf32>
    %79 = tpu.matmul %78, %76, %cst_35 {dimension_numbers = #tpu.dot_dimension_numbers<[1], [0], [0], [1], [0, 0, 1, 1], [], []>} : vector<32x48xbf16>, vector<48x256xbf16>, vector<32x256xf32> -> vector<32x256xf32>
    %80 = arith.addf %62, %79 : vector<32x256xf32>
    %c0_36 = arith.constant 0 : index
    %c0_37 = arith.constant 0 : index
    %81 = vector.load %arg3[%c0_36, %c0_37] : memref<32x1xf32, #tpu.memory_space<vmem>>, vector<32x1xf32>
    %82 = vector.broadcast %81 : vector<32x1xf32> to vector<32x256xf32>
    %83 = arith.mulf %80, %82 : vector<32x256xf32>
    %c0_38 = arith.constant 0 : index
    %c0_39 = arith.constant 0 : index
    %84 = vector.load %arg4[%c0_38, %c0_39] : memref<32x1xf32, #tpu.memory_space<vmem>>, vector<32x1xf32>
    %85 = vector.broadcast %84 : vector<32x1xf32> to vector<32x256xf32>
    %86 = arith.addf %83, %85 : vector<32x256xf32>
    %cst_40 = arith.constant 0.000000e+00 : f32
    %87 = vector.broadcast %cst_40 : f32 to vector<32x256xf32>
    %88 = arith.maximumf %86, %87 : vector<32x256xf32>
    %89 = arith.truncf %88 : vector<32x256xf32> to vector<32x256xbf16>
    %c0_41 = arith.constant 0 : index
    %c128_42 = arith.constant 128 : index
    %90 = vector.load %arg15[%c0_41, %c128_42] : memref<32x512xbf16, #tpu.memory_space<vmem>>, vector<32x256xbf16>
    tpu.vector_store %arg15[%c0_41, %c128_42], %89 {strides = array<i32>} : memref<32x512xbf16, #tpu.memory_space<vmem>>, vector<32x256xbf16>,
    %c0_43 = arith.constant 0 : index
    %c111_44 = arith.constant 111 : index
    %91 = vector.load %arg15[%c0_43, %c111_44] : memref<32x512xbf16, #tpu.memory_space<vmem>>, vector<32x256xbf16>
    %c0_i32_45 = arith.constant 0 : i32
    %92 = arith.sitofp %c0_i32_45 : i32 to bf16
    %93 = vector.shape_cast %18 : vector<1x256xi1> to vector<1x256xi1>
    %94 = vector.broadcast %93 : vector<1x256xi1> to vector<32x256xi1>
    %95 = vector.broadcast %92 : bf16 to vector<32x256xbf16>
    %96 = arith.select %94, %91, %95 : vector<32x256xi1>, vector<32x256xbf16>
    %c0_46 = arith.constant 0 : index
    %c112_47 = arith.constant 112 : index
    %97 = vector.load %arg15[%c0_46, %c112_47] : memref<32x512xbf16, #tpu.memory_space<vmem>>, vector<32x256xbf16>
    %c0_48 = arith.constant 0 : index
    %c113_49 = arith.constant 113 : index
    %98 = vector.load %arg15[%c0_48, %c113_49] : memref<32x512xbf16, #tpu.memory_space<vmem>>, vector<32x256xbf16>
    %c0_i32_50 = arith.constant 0 : i32
    %99 = arith.sitofp %c0_i32_50 : i32 to bf16
    %100 = vector.shape_cast %20 : vector<1x256xi1> to vector<1x256xi1>
    %101 = vector.broadcast %100 : vector<1x256xi1> to vector<32x256xi1>
    %102 = vector.broadcast %99 : bf16 to vector<32x256xbf16>
    %103 = arith.select %101, %98, %102 : vector<32x256xi1>, vector<32x256xbf16>
    %104 = tpu.concatenate %96, %97, %103 in 0 : vector<32x256xbf16>, vector<32x256xbf16>, vector<32x256xbf16> -> vector<96x256xbf16>
    %c0_51 = arith.constant 0 : index
    %c0_52 = arith.constant 0 : index
    %c0_53 = arith.constant 0 : index
    %c0_54 = arith.constant 0 : index
    %105 = vector.load %arg5[%c0_51, %c0_52, %c0_53, %c0_54] : memref<2x3x32x96xbf16, #tpu.memory_space<vmem>>, vector<1x1x32x96xbf16>
    %106 = vector.shape_cast %105 : vector<1x1x32x96xbf16> to vector<32x96xbf16>
    %cst_55 = arith.constant dense<0.000000e+00> : vector<32x256xf32>
    %107 = tpu.matmul %106, %104, %cst_55 {dimension_numbers = #tpu.dot_dimension_numbers<[1], [0], [0], [1], [0, 0, 1, 1], [], []>} : vector<32x96xbf16>, vector<96x256xbf16>, vector<32x256xf32> -> vector<32x256xf32>
    %c0_56 = arith.constant 0 : index
    %c127_57 = arith.constant 127 : index
    %108 = vector.load %arg15[%c0_56, %c127_57] : memref<32x512xbf16, #tpu.memory_space<vmem>>, vector<32x256xbf16>
    %c0_i32_58 = arith.constant 0 : i32
    %109 = arith.sitofp %c0_i32_58 : i32 to bf16
    %110 = vector.shape_cast %18 : vector<1x256xi1> to vector<1x256xi1>
    %111 = vector.broadcast %110 : vector<1x256xi1> to vector<32x256xi1>
    %112 = vector.broadcast %109 : bf16 to vector<32x256xbf16>
    %113 = arith.select %111, %108, %112 : vector<32x256xi1>, vector<32x256xbf16>
    %c0_59 = arith.constant 0 : index
    %c128_60 = arith.constant 128 : index
    %114 = vector.load %arg15[%c0_59, %c128_60] : memref<32x512xbf16, #tpu.memory_space<vmem>>, vector<32x256xbf16>
    %c0_61 = arith.constant 0 : index
    %c129_62 = arith.constant 129 : index
    %115 = vector.load %arg15[%c0_61, %c129_62] : memref<32x512xbf16, #tpu.memory_space<vmem>>, vector<32x256xbf16>
    %c0_i32_63 = arith.constant 0 : i32
    %116 = arith.sitofp %c0_i32_63 : i32 to bf16
    %117 = vector.shape_cast %20 : vector<1x256xi1> to vector<1x256xi1>
    %118 = vector.broadcast %117 : vector<1x256xi1> to vector<32x256xi1>
    %119 = vector.broadcast %116 : bf16 to vector<32x256xbf16>
    %120 = arith.select %118, %115, %119 : vector<32x256xi1>, vector<32x256xbf16>
    %121 = tpu.concatenate %113, %114, %120 in 0 : vector<32x256xbf16>, vector<32x256xbf16>, vector<32x256xbf16> -> vector<96x256xbf16>
    %c0_64 = arith.constant 0 : index
    %c1_65 = arith.constant 1 : index
    %c0_66 = arith.constant 0 : index
    %c0_67 = arith.constant 0 : index
    %122 = vector.load %arg5[%c0_64, %c1_65, %c0_66, %c0_67] : memref<2x3x32x96xbf16, #tpu.memory_space<vmem>>, vector<1x1x32x96xbf16>
    %123 = vector.shape_cast %122 : vector<1x1x32x96xbf16> to vector<32x96xbf16>
    %cst_68 = arith.constant dense<0.000000e+00> : vector<32x256xf32>
    %124 = tpu.matmul %123, %121, %cst_68 {dimension_numbers = #tpu.dot_dimension_numbers<[1], [0], [0], [1], [0, 0, 1, 1], [], []>} : vector<32x96xbf16>, vector<96x256xbf16>, vector<32x256xf32> -> vector<32x256xf32>
    %125 = arith.addf %107, %124 : vector<32x256xf32>
    %c0_69 = arith.constant 0 : index
    %c143_70 = arith.constant 143 : index
    %126 = vector.load %arg15[%c0_69, %c143_70] : memref<32x512xbf16, #tpu.memory_space<vmem>>, vector<32x256xbf16>
    %c0_i32_71 = arith.constant 0 : i32
    %127 = arith.sitofp %c0_i32_71 : i32 to bf16
    %128 = vector.shape_cast %18 : vector<1x256xi1> to vector<1x256xi1>
    %129 = vector.broadcast %128 : vector<1x256xi1> to vector<32x256xi1>
    %130 = vector.broadcast %127 : bf16 to vector<32x256xbf16>
    %131 = arith.select %129, %126, %130 : vector<32x256xi1>, vector<32x256xbf16>
    %c0_72 = arith.constant 0 : index
    %c144_73 = arith.constant 144 : index
    %132 = vector.load %arg15[%c0_72, %c144_73] : memref<32x512xbf16, #tpu.memory_space<vmem>>, vector<32x256xbf16>
    %c0_74 = arith.constant 0 : index
    %c145_75 = arith.constant 145 : index
    %133 = vector.load %arg15[%c0_74, %c145_75] : memref<32x512xbf16, #tpu.memory_space<vmem>>, vector<32x256xbf16>
    %c0_i32_76 = arith.constant 0 : i32
    %134 = arith.sitofp %c0_i32_76 : i32 to bf16
    %135 = vector.shape_cast %20 : vector<1x256xi1> to vector<1x256xi1>
    %136 = vector.broadcast %135 : vector<1x256xi1> to vector<32x256xi1>
    %137 = vector.broadcast %134 : bf16 to vector<32x256xbf16>
    %138 = arith.select %136, %133, %137 : vector<32x256xi1>, vector<32x256xbf16>
    %139 = tpu.concatenate %131, %132, %138 in 0 : vector<32x256xbf16>, vector<32x256xbf16>, vector<32x256xbf16> -> vector<96x256xbf16>
    %c0_77 = arith.constant 0 : index
    %c2_78 = arith.constant 2 : index
    %c0_79 = arith.constant 0 : index
    %c0_80 = arith.constant 0 : index
    %140 = vector.load %arg5[%c0_77, %c2_78, %c0_79, %c0_80] : memref<2x3x32x96xbf16, #tpu.memory_space<vmem>>, vector<1x1x32x96xbf16>
    %141 = vector.shape_cast %140 : vector<1x1x32x96xbf16> to vector<32x96xbf16>
    %cst_81 = arith.constant dense<0.000000e+00> : vector<32x256xf32>
    %142 = tpu.matmul %141, %139, %cst_81 {dimension_numbers = #tpu.dot_dimension_numbers<[1], [0], [0], [1], [0, 0, 1, 1], [], []>} : vector<32x96xbf16>, vector<96x256xbf16>, vector<32x256xf32> -> vector<32x256xf32>
    %143 = arith.addf %125, %142 : vector<32x256xf32>
    %c0_82 = arith.constant 0 : index
    %c0_83 = arith.constant 0 : index
    %c0_84 = arith.constant 0 : index
    %144 = vector.load %arg6[%c0_82, %c0_83, %c0_84] : memref<2x32x1xf32, #tpu.memory_space<vmem>>, vector<1x32x1xf32>
    %145 = vector.shape_cast %144 : vector<1x32x1xf32> to vector<32x1xf32>
    %146 = vector.broadcast %145 : vector<32x1xf32> to vector<32x256xf32>
    %147 = arith.mulf %143, %146 : vector<32x256xf32>
    %c0_85 = arith.constant 0 : index
    %c0_86 = arith.constant 0 : index
    %c0_87 = arith.constant 0 : index
    %148 = vector.load %arg7[%c0_85, %c0_86, %c0_87] : memref<2x32x1xf32, #tpu.memory_space<vmem>>, vector<1x32x1xf32>
    %149 = vector.shape_cast %148 : vector<1x32x1xf32> to vector<32x1xf32>
    %150 = vector.broadcast %149 : vector<32x1xf32> to vector<32x256xf32>
    %151 = arith.addf %147, %150 : vector<32x256xf32>
    %cst_88 = arith.constant 0.000000e+00 : f32
    %152 = vector.broadcast %cst_88 : f32 to vector<32x256xf32>
    %153 = arith.maximumf %151, %152 : vector<32x256xf32>
    %cst_89 = arith.constant dense<0.000000e+00> : vector<32xf32>
    %154 = vector.multi_reduction <add>, %153, %cst_89 [1] : vector<32x256xf32> to vector<32xf32>
    %155 = vector.shape_cast %154 : vector<32xf32> to vector<32x1xf32>
    %cst_90 = arith.constant 3.906250e-03 : f32
    %156 = vector.broadcast %cst_90 : f32 to vector<32x1xf32>
    %157 = arith.mulf %155, %156 : vector<32x1xf32>
    %c0_91 = arith.constant 0 : index
    %c0_92 = arith.constant 0 : index
    %c0_93 = arith.constant 0 : index
    %158 = vector.load %arg8[%c0_91, %c0_92, %c0_93] : memref<2x32x2xf32, #tpu.memory_space<vmem>>, vector<1x32x2xf32>
    %159 = vector.shape_cast %158 : vector<1x32x2xf32> to vector<32x2xf32>
    %160 = vector.broadcast %157 : vector<32x1xf32> to vector<32x2xf32>
    %161 = arith.mulf %160, %159 : vector<32x2xf32>
    %cst_94 = arith.constant dense<0.000000e+00> : vector<2xf32>
    %162 = vector.multi_reduction <add>, %161, %cst_94 [0] : vector<32x2xf32> to vector<2xf32>
    %163 = vector.shape_cast %162 : vector<2xf32> to vector<1x2xf32>
    %c0_95 = arith.constant 0 : index
    %c0_96 = arith.constant 0 : index
    %c0_97 = arith.constant 0 : index
    %164 = vector.load %arg9[%c0_95, %c0_96, %c0_97] : memref<2x1x2xf32, #tpu.memory_space<vmem>>, vector<1x1x2xf32>
    %165 = vector.shape_cast %164 : vector<1x1x2xf32> to vector<1x2xf32>
    %166 = arith.addf %163, %165 : vector<1x2xf32>
    %cst_98 = arith.constant 0.000000e+00 : f32
    %167 = vector.broadcast %cst_98 : f32 to vector<1x2xf32>
    %168 = arith.maximumf %166, %167 : vector<1x2xf32>
    %c0_99 = arith.constant 0 : index
    %c0_100 = arith.constant 0 : index
    %c0_101 = arith.constant 0 : index
    %169 = vector.load %arg10[%c0_99, %c0_100, %c0_101] : memref<2x32x2xf32, #tpu.memory_space<vmem>>, vector<1x32x2xf32>
    %170 = vector.shape_cast %169 : vector<1x32x2xf32> to vector<32x2xf32>
    %171 = vector.broadcast %168 : vector<1x2xf32> to vector<32x2xf32>
    %172 = arith.mulf %171, %170 : vector<32x2xf32>
    %cst_102 = arith.constant dense<0.000000e+00> : vector<32xf32>
    %173 = vector.multi_reduction <add>, %172, %cst_102 [1] : vector<32x2xf32> to vector<32xf32>
    %174 = vector.shape_cast %173 : vector<32xf32> to vector<32x1xf32>
    %c0_103 = arith.constant 0 : index
    %c0_104 = arith.constant 0 : index
    %c0_105 = arith.constant 0 : index
    %175 = vector.load %arg11[%c0_103, %c0_104, %c0_105] : memref<2x32x1xf32, #tpu.memory_space<vmem>>, vector<1x32x1xf32>
    %176 = vector.shape_cast %175 : vector<1x32x1xf32> to vector<32x1xf32>
    %177 = arith.addf %174, %176 : vector<32x1xf32>
    %178 = arith.negf %177 : vector<32x1xf32>
    %179 = math.exp %178 : vector<32x1xf32>
    %cst_106 = arith.constant 1.000000e+00 : f32
    %180 = vector.broadcast %cst_106 : f32 to vector<32x1xf32>
    %181 = arith.addf %180, %179 : vector<32x1xf32>
    %182 = arith.divf %180, %181 : vector<32x1xf32>
    %183 = vector.broadcast %182 : vector<32x1xf32> to vector<32x256xf32>
    %184 = arith.mulf %153, %183 : vector<32x256xf32>
    %185 = arith.addf %184, %88 : vector<32x256xf32>
    %186 = arith.truncf %185 : vector<32x256xf32> to vector<32x256xbf16>
    %c0_107 = arith.constant 0 : index
    %c128_108 = arith.constant 128 : index
    %187 = vector.load %arg15[%c0_107, %c128_108] : memref<32x512xbf16, #tpu.memory_space<vmem>>, vector<32x256xbf16>
    tpu.vector_store %arg15[%c0_107, %c128_108], %186 {strides = array<i32>} : memref<32x512xbf16, #tpu.memory_space<vmem>>, vector<32x256xbf16>,
    %c0_109 = arith.constant 0 : index
    %c111_110 = arith.constant 111 : index
    %188 = vector.load %arg15[%c0_109, %c111_110] : memref<32x512xbf16, #tpu.memory_space<vmem>>, vector<32x256xbf16>
    %c0_i32_111 = arith.constant 0 : i32
    %189 = arith.sitofp %c0_i32_111 : i32 to bf16
    %190 = vector.shape_cast %18 : vector<1x256xi1> to vector<1x256xi1>
    %191 = vector.broadcast %190 : vector<1x256xi1> to vector<32x256xi1>
    %192 = vector.broadcast %189 : bf16 to vector<32x256xbf16>
    %193 = arith.select %191, %188, %192 : vector<32x256xi1>, vector<32x256xbf16>
    %c0_112 = arith.constant 0 : index
    %c112_113 = arith.constant 112 : index
    %194 = vector.load %arg15[%c0_112, %c112_113] : memref<32x512xbf16, #tpu.memory_space<vmem>>, vector<32x256xbf16>
    %c0_114 = arith.constant 0 : index
    %c113_115 = arith.constant 113 : index
    %195 = vector.load %arg15[%c0_114, %c113_115] : memref<32x512xbf16, #tpu.memory_space<vmem>>, vector<32x256xbf16>
    %c0_i32_116 = arith.constant 0 : i32
    %196 = arith.sitofp %c0_i32_116 : i32 to bf16
    %197 = vector.shape_cast %20 : vector<1x256xi1> to vector<1x256xi1>
    %198 = vector.broadcast %197 : vector<1x256xi1> to vector<32x256xi1>
    %199 = vector.broadcast %196 : bf16 to vector<32x256xbf16>
    %200 = arith.select %198, %195, %199 : vector<32x256xi1>, vector<32x256xbf16>
    %201 = tpu.concatenate %193, %194, %200 in 0 : vector<32x256xbf16>, vector<32x256xbf16>, vector<32x256xbf16> -> vector<96x256xbf16>
    %c1_117 = arith.constant 1 : index
    %c0_118 = arith.constant 0 : index
    %c0_119 = arith.constant 0 : index
    %c0_120 = arith.constant 0 : index
    %202 = vector.load %arg5[%c1_117, %c0_118, %c0_119, %c0_120] : memref<2x3x32x96xbf16, #tpu.memory_space<vmem>>, vector<1x1x32x96xbf16>
    %203 = vector.shape_cast %202 : vector<1x1x32x96xbf16> to vector<32x96xbf16>
    %cst_121 = arith.constant dense<0.000000e+00> : vector<32x256xf32>
    %204 = tpu.matmul %203, %201, %cst_121 {dimension_numbers = #tpu.dot_dimension_numbers<[1], [0], [0], [1], [0, 0, 1, 1], [], []>} : vector<32x96xbf16>, vector<96x256xbf16>, vector<32x256xf32> -> vector<32x256xf32>
    %c0_122 = arith.constant 0 : index
    %c127_123 = arith.constant 127 : index
    %205 = vector.load %arg15[%c0_122, %c127_123] : memref<32x512xbf16, #tpu.memory_space<vmem>>, vector<32x256xbf16>
    %c0_i32_124 = arith.constant 0 : i32
    %206 = arith.sitofp %c0_i32_124 : i32 to bf16
    %207 = vector.shape_cast %18 : vector<1x256xi1> to vector<1x256xi1>
    %208 = vector.broadcast %207 : vector<1x256xi1> to vector<32x256xi1>
    %209 = vector.broadcast %206 : bf16 to vector<32x256xbf16>
    %210 = arith.select %208, %205, %209 : vector<32x256xi1>, vector<32x256xbf16>
    %c0_125 = arith.constant 0 : index
    %c128_126 = arith.constant 128 : index
    %211 = vector.load %arg15[%c0_125, %c128_126] : memref<32x512xbf16, #tpu.memory_space<vmem>>, vector<32x256xbf16>
    %c0_127 = arith.constant 0 : index
    %c129_128 = arith.constant 129 : index
    %212 = vector.load %arg15[%c0_127, %c129_128] : memref<32x512xbf16, #tpu.memory_space<vmem>>, vector<32x256xbf16>
    %c0_i32_129 = arith.constant 0 : i32
    %213 = arith.sitofp %c0_i32_129 : i32 to bf16
    %214 = vector.shape_cast %20 : vector<1x256xi1> to vector<1x256xi1>
    %215 = vector.broadcast %214 : vector<1x256xi1> to vector<32x256xi1>
    %216 = vector.broadcast %213 : bf16 to vector<32x256xbf16>
    %217 = arith.select %215, %212, %216 : vector<32x256xi1>, vector<32x256xbf16>
    %218 = tpu.concatenate %210, %211, %217 in 0 : vector<32x256xbf16>, vector<32x256xbf16>, vector<32x256xbf16> -> vector<96x256xbf16>
    %c1_130 = arith.constant 1 : index
    %c1_131 = arith.constant 1 : index
    %c0_132 = arith.constant 0 : index
    %c0_133 = arith.constant 0 : index
    %219 = vector.load %arg5[%c1_130, %c1_131, %c0_132, %c0_133] : memref<2x3x32x96xbf16, #tpu.memory_space<vmem>>, vector<1x1x32x96xbf16>
    %220 = vector.shape_cast %219 : vector<1x1x32x96xbf16> to vector<32x96xbf16>
    %cst_134 = arith.constant dense<0.000000e+00> : vector<32x256xf32>
    %221 = tpu.matmul %220, %218, %cst_134 {dimension_numbers = #tpu.dot_dimension_numbers<[1], [0], [0], [1], [0, 0, 1, 1], [], []>} : vector<32x96xbf16>, vector<96x256xbf16>, vector<32x256xf32> -> vector<32x256xf32>
    %222 = arith.addf %204, %221 : vector<32x256xf32>
    %c0_135 = arith.constant 0 : index
    %c143_136 = arith.constant 143 : index
    %223 = vector.load %arg15[%c0_135, %c143_136] : memref<32x512xbf16, #tpu.memory_space<vmem>>, vector<32x256xbf16>
    %c0_i32_137 = arith.constant 0 : i32
    %224 = arith.sitofp %c0_i32_137 : i32 to bf16
    %225 = vector.shape_cast %18 : vector<1x256xi1> to vector<1x256xi1>
    %226 = vector.broadcast %225 : vector<1x256xi1> to vector<32x256xi1>
    %227 = vector.broadcast %224 : bf16 to vector<32x256xbf16>
    %228 = arith.select %226, %223, %227 : vector<32x256xi1>, vector<32x256xbf16>
    %c0_138 = arith.constant 0 : index
    %c144_139 = arith.constant 144 : index
    %229 = vector.load %arg15[%c0_138, %c144_139] : memref<32x512xbf16, #tpu.memory_space<vmem>>, vector<32x256xbf16>
    %c0_140 = arith.constant 0 : index
    %c145_141 = arith.constant 145 : index
    %230 = vector.load %arg15[%c0_140, %c145_141] : memref<32x512xbf16, #tpu.memory_space<vmem>>, vector<32x256xbf16>
    %c0_i32_142 = arith.constant 0 : i32
    %231 = arith.sitofp %c0_i32_142 : i32 to bf16
    %232 = vector.shape_cast %20 : vector<1x256xi1> to vector<1x256xi1>
    %233 = vector.broadcast %232 : vector<1x256xi1> to vector<32x256xi1>
    %234 = vector.broadcast %231 : bf16 to vector<32x256xbf16>
    %235 = arith.select %233, %230, %234 : vector<32x256xi1>, vector<32x256xbf16>
    %236 = tpu.concatenate %228, %229, %235 in 0 : vector<32x256xbf16>, vector<32x256xbf16>, vector<32x256xbf16> -> vector<96x256xbf16>
    %c1_143 = arith.constant 1 : index
    %c2_144 = arith.constant 2 : index
    %c0_145 = arith.constant 0 : index
    %c0_146 = arith.constant 0 : index
    %237 = vector.load %arg5[%c1_143, %c2_144, %c0_145, %c0_146] : memref<2x3x32x96xbf16, #tpu.memory_space<vmem>>, vector<1x1x32x96xbf16>
    %238 = vector.shape_cast %237 : vector<1x1x32x96xbf16> to vector<32x96xbf16>
    %cst_147 = arith.constant dense<0.000000e+00> : vector<32x256xf32>
    %239 = tpu.matmul %238, %236, %cst_147 {dimension_numbers = #tpu.dot_dimension_numbers<[1], [0], [0], [1], [0, 0, 1, 1], [], []>} : vector<32x96xbf16>, vector<96x256xbf16>, vector<32x256xf32> -> vector<32x256xf32>
    %240 = arith.addf %222, %239 : vector<32x256xf32>
    %c1_148 = arith.constant 1 : index
    %c0_149 = arith.constant 0 : index
    %c0_150 = arith.constant 0 : index
    %241 = vector.load %arg6[%c1_148, %c0_149, %c0_150] : memref<2x32x1xf32, #tpu.memory_space<vmem>>, vector<1x32x1xf32>
    %242 = vector.shape_cast %241 : vector<1x32x1xf32> to vector<32x1xf32>
    %243 = vector.broadcast %242 : vector<32x1xf32> to vector<32x256xf32>
    %244 = arith.mulf %240, %243 : vector<32x256xf32>
    %c1_151 = arith.constant 1 : index
    %c0_152 = arith.constant 0 : index
    %c0_153 = arith.constant 0 : index
    %245 = vector.load %arg7[%c1_151, %c0_152, %c0_153] : memref<2x32x1xf32, #tpu.memory_space<vmem>>, vector<1x32x1xf32>
    %246 = vector.shape_cast %245 : vector<1x32x1xf32> to vector<32x1xf32>
    %247 = vector.broadcast %246 : vector<32x1xf32> to vector<32x256xf32>
    %248 = arith.addf %244, %247 : vector<32x256xf32>
    %cst_154 = arith.constant 0.000000e+00 : f32
    %249 = vector.broadcast %cst_154 : f32 to vector<32x256xf32>
    %250 = arith.maximumf %248, %249 : vector<32x256xf32>
    %cst_155 = arith.constant dense<0.000000e+00> : vector<32xf32>
    %251 = vector.multi_reduction <add>, %250, %cst_155 [1] : vector<32x256xf32> to vector<32xf32>
    %252 = vector.shape_cast %251 : vector<32xf32> to vector<32x1xf32>
    %cst_156 = arith.constant 3.906250e-03 : f32
    %253 = vector.broadcast %cst_156 : f32 to vector<32x1xf32>
    %254 = arith.mulf %252, %253 : vector<32x1xf32>
    %c1_157 = arith.constant 1 : index
    %c0_158 = arith.constant 0 : index
    %c0_159 = arith.constant 0 : index
    %255 = vector.load %arg8[%c1_157, %c0_158, %c0_159] : memref<2x32x2xf32, #tpu.memory_space<vmem>>, vector<1x32x2xf32>
    %256 = vector.shape_cast %255 : vector<1x32x2xf32> to vector<32x2xf32>
    %257 = vector.broadcast %254 : vector<32x1xf32> to vector<32x2xf32>
    %258 = arith.mulf %257, %256 : vector<32x2xf32>
    %cst_160 = arith.constant dense<0.000000e+00> : vector<2xf32>
    %259 = vector.multi_reduction <add>, %258, %cst_160 [0] : vector<32x2xf32> to vector<2xf32>
    %260 = vector.shape_cast %259 : vector<2xf32> to vector<1x2xf32>
    %c1_161 = arith.constant 1 : index
    %c0_162 = arith.constant 0 : index
    %c0_163 = arith.constant 0 : index
    %261 = vector.load %arg9[%c1_161, %c0_162, %c0_163] : memref<2x1x2xf32, #tpu.memory_space<vmem>>, vector<1x1x2xf32>
    %262 = vector.shape_cast %261 : vector<1x1x2xf32> to vector<1x2xf32>
    %263 = arith.addf %260, %262 : vector<1x2xf32>
    %cst_164 = arith.constant 0.000000e+00 : f32
    %264 = vector.broadcast %cst_164 : f32 to vector<1x2xf32>
    %265 = arith.maximumf %263, %264 : vector<1x2xf32>
    %c1_165 = arith.constant 1 : index
    %c0_166 = arith.constant 0 : index
    %c0_167 = arith.constant 0 : index
    %266 = vector.load %arg10[%c1_165, %c0_166, %c0_167] : memref<2x32x2xf32, #tpu.memory_space<vmem>>, vector<1x32x2xf32>
    %267 = vector.shape_cast %266 : vector<1x32x2xf32> to vector<32x2xf32>
    %268 = vector.broadcast %265 : vector<1x2xf32> to vector<32x2xf32>
    %269 = arith.mulf %268, %267 : vector<32x2xf32>
    %cst_168 = arith.constant dense<0.000000e+00> : vector<32xf32>
    %270 = vector.multi_reduction <add>, %269, %cst_168 [1] : vector<32x2xf32> to vector<32xf32>
    %271 = vector.shape_cast %270 : vector<32xf32> to vector<32x1xf32>
    %c1_169 = arith.constant 1 : index
    %c0_170 = arith.constant 0 : index
    %c0_171 = arith.constant 0 : index
    %272 = vector.load %arg11[%c1_169, %c0_170, %c0_171] : memref<2x32x1xf32, #tpu.memory_space<vmem>>, vector<1x32x1xf32>
    %273 = vector.shape_cast %272 : vector<1x32x1xf32> to vector<32x1xf32>
    %274 = arith.addf %271, %273 : vector<32x1xf32>
    %275 = arith.negf %274 : vector<32x1xf32>
    %276 = math.exp %275 : vector<32x1xf32>
    %cst_172 = arith.constant 1.000000e+00 : f32
    %277 = vector.broadcast %cst_172 : f32 to vector<32x1xf32>
    %278 = arith.addf %277, %276 : vector<32x1xf32>
    %279 = arith.divf %277, %278 : vector<32x1xf32>
    %280 = vector.broadcast %279 : vector<32x1xf32> to vector<32x256xf32>
    %281 = arith.mulf %250, %280 : vector<32x256xf32>
    %282 = arith.addf %281, %185 : vector<32x256xf32>
    %283 = arith.truncf %282 : vector<32x256xf32> to vector<32x256xbf16>
    %c0_173 = arith.constant 0 : index
    %c128_174 = arith.constant 128 : index
    %284 = vector.load %arg15[%c0_173, %c128_174] : memref<32x512xbf16, #tpu.memory_space<vmem>>, vector<32x256xbf16>
    tpu.vector_store %arg15[%c0_173, %c128_174], %283 {strides = array<i32>} : memref<32x512xbf16, #tpu.memory_space<vmem>>, vector<32x256xbf16>,
    %c0_175 = arith.constant 0 : index
    %c111_176 = arith.constant 111 : index
    %285 = vector.load %arg15[%c0_175, %c111_176] : memref<32x512xbf16, #tpu.memory_space<vmem>>, vector<32x256xbf16>
    %c0_i32_177 = arith.constant 0 : i32
    %286 = arith.sitofp %c0_i32_177 : i32 to bf16
    %287 = vector.shape_cast %18 : vector<1x256xi1> to vector<1x256xi1>
    %288 = vector.broadcast %287 : vector<1x256xi1> to vector<32x256xi1>
    %289 = vector.broadcast %286 : bf16 to vector<32x256xbf16>
    %290 = arith.select %288, %285, %289 : vector<32x256xi1>, vector<32x256xbf16>
    %c0_178 = arith.constant 0 : index
    %c112_179 = arith.constant 112 : index
    %291 = vector.load %arg15[%c0_178, %c112_179] : memref<32x512xbf16, #tpu.memory_space<vmem>>, vector<32x256xbf16>
    %c0_180 = arith.constant 0 : index
    %c113_181 = arith.constant 113 : index
    %292 = vector.load %arg15[%c0_180, %c113_181] : memref<32x512xbf16, #tpu.memory_space<vmem>>, vector<32x256xbf16>
    %c0_i32_182 = arith.constant 0 : i32
    %293 = arith.sitofp %c0_i32_182 : i32 to bf16
    %294 = vector.shape_cast %20 : vector<1x256xi1> to vector<1x256xi1>
    %295 = vector.broadcast %294 : vector<1x256xi1> to vector<32x256xi1>
    %296 = vector.broadcast %293 : bf16 to vector<32x256xbf16>
    %297 = arith.select %295, %292, %296 : vector<32x256xi1>, vector<32x256xbf16>
    %298 = tpu.concatenate %290, %291, %297 in 0 : vector<32x256xbf16>, vector<32x256xbf16>, vector<32x256xbf16> -> vector<96x256xbf16>
    %c0_183 = arith.constant 0 : index
    %c0_184 = arith.constant 0 : index
    %c0_185 = arith.constant 0 : index
    %299 = vector.load %arg12[%c0_183, %c0_184, %c0_185] : memref<3x8x96xbf16, #tpu.memory_space<vmem>>, vector<1x8x96xbf16>
    %300 = vector.shape_cast %299 : vector<1x8x96xbf16> to vector<8x96xbf16>
    %cst_186 = arith.constant dense<0.000000e+00> : vector<8x256xf32>
    %301 = tpu.matmul %300, %298, %cst_186 {dimension_numbers = #tpu.dot_dimension_numbers<[1], [0], [0], [1], [0, 0, 1, 1], [], []>} : vector<8x96xbf16>, vector<96x256xbf16>, vector<8x256xf32> -> vector<8x256xf32>
    %c0_187 = arith.constant 0 : index
    %c127_188 = arith.constant 127 : index
    %302 = vector.load %arg15[%c0_187, %c127_188] : memref<32x512xbf16, #tpu.memory_space<vmem>>, vector<32x256xbf16>
    %c0_i32_189 = arith.constant 0 : i32
    %303 = arith.sitofp %c0_i32_189 : i32 to bf16
    %304 = vector.shape_cast %18 : vector<1x256xi1> to vector<1x256xi1>
    %305 = vector.broadcast %304 : vector<1x256xi1> to vector<32x256xi1>
    %306 = vector.broadcast %303 : bf16 to vector<32x256xbf16>
    %307 = arith.select %305, %302, %306 : vector<32x256xi1>, vector<32x256xbf16>
    %c0_190 = arith.constant 0 : index
    %c128_191 = arith.constant 128 : index
    %308 = vector.load %arg15[%c0_190, %c128_191] : memref<32x512xbf16, #tpu.memory_space<vmem>>, vector<32x256xbf16>
    %c0_192 = arith.constant 0 : index
    %c129_193 = arith.constant 129 : index
    %309 = vector.load %arg15[%c0_192, %c129_193] : memref<32x512xbf16, #tpu.memory_space<vmem>>, vector<32x256xbf16>
    %c0_i32_194 = arith.constant 0 : i32
    %310 = arith.sitofp %c0_i32_194 : i32 to bf16
    %311 = vector.shape_cast %20 : vector<1x256xi1> to vector<1x256xi1>
    %312 = vector.broadcast %311 : vector<1x256xi1> to vector<32x256xi1>
    %313 = vector.broadcast %310 : bf16 to vector<32x256xbf16>
    %314 = arith.select %312, %309, %313 : vector<32x256xi1>, vector<32x256xbf16>
    %315 = tpu.concatenate %307, %308, %314 in 0 : vector<32x256xbf16>, vector<32x256xbf16>, vector<32x256xbf16> -> vector<96x256xbf16>
    %c1_195 = arith.constant 1 : index
    %c0_196 = arith.constant 0 : index
    %c0_197 = arith.constant 0 : index
    %316 = vector.load %arg12[%c1_195, %c0_196, %c0_197] : memref<3x8x96xbf16, #tpu.memory_space<vmem>>, vector<1x8x96xbf16>
    %317 = vector.shape_cast %316 : vector<1x8x96xbf16> to vector<8x96xbf16>
    %cst_198 = arith.constant dense<0.000000e+00> : vector<8x256xf32>
    %318 = tpu.matmul %317, %315, %cst_198 {dimension_numbers = #tpu.dot_dimension_numbers<[1], [0], [0], [1], [0, 0, 1, 1], [], []>} : vector<8x96xbf16>, vector<96x256xbf16>, vector<8x256xf32> -> vector<8x256xf32>
    %319 = arith.addf %301, %318 : vector<8x256xf32>
    %c0_199 = arith.constant 0 : index
    %c143_200 = arith.constant 143 : index
    %320 = vector.load %arg15[%c0_199, %c143_200] : memref<32x512xbf16, #tpu.memory_space<vmem>>, vector<32x256xbf16>
    %c0_i32_201 = arith.constant 0 : i32
    %321 = arith.sitofp %c0_i32_201 : i32 to bf16
    %322 = vector.shape_cast %18 : vector<1x256xi1> to vector<1x256xi1>
    %323 = vector.broadcast %322 : vector<1x256xi1> to vector<32x256xi1>
    %324 = vector.broadcast %321 : bf16 to vector<32x256xbf16>
    %325 = arith.select %323, %320, %324 : vector<32x256xi1>, vector<32x256xbf16>
    %c0_202 = arith.constant 0 : index
    %c144_203 = arith.constant 144 : index
    %326 = vector.load %arg15[%c0_202, %c144_203] : memref<32x512xbf16, #tpu.memory_space<vmem>>, vector<32x256xbf16>
    %c0_204 = arith.constant 0 : index
    %c145_205 = arith.constant 145 : index
    %327 = vector.load %arg15[%c0_204, %c145_205] : memref<32x512xbf16, #tpu.memory_space<vmem>>, vector<32x256xbf16>
    %c0_i32_206 = arith.constant 0 : i32
    %328 = arith.sitofp %c0_i32_206 : i32 to bf16
    %329 = vector.shape_cast %20 : vector<1x256xi1> to vector<1x256xi1>
    %330 = vector.broadcast %329 : vector<1x256xi1> to vector<32x256xi1>
    %331 = vector.broadcast %328 : bf16 to vector<32x256xbf16>
    %332 = arith.select %330, %327, %331 : vector<32x256xi1>, vector<32x256xbf16>
    %333 = tpu.concatenate %325, %326, %332 in 0 : vector<32x256xbf16>, vector<32x256xbf16>, vector<32x256xbf16> -> vector<96x256xbf16>
    %c2_207 = arith.constant 2 : index
    %c0_208 = arith.constant 0 : index
    %c0_209 = arith.constant 0 : index
    %334 = vector.load %arg12[%c2_207, %c0_208, %c0_209] : memref<3x8x96xbf16, #tpu.memory_space<vmem>>, vector<1x8x96xbf16>
    %335 = vector.shape_cast %334 : vector<1x8x96xbf16> to vector<8x96xbf16>
    %cst_210 = arith.constant dense<0.000000e+00> : vector<8x256xf32>
    %336 = tpu.matmul %335, %333, %cst_210 {dimension_numbers = #tpu.dot_dimension_numbers<[1], [0], [0], [1], [0, 0, 1, 1], [], []>} : vector<8x96xbf16>, vector<96x256xbf16>, vector<8x256xf32> -> vector<8x256xf32>
    %337 = arith.addf %319, %336 : vector<8x256xf32>
    %c0_211 = arith.constant 0 : index
    %c0_212 = arith.constant 0 : index
    %338 = vector.load %arg13[%c0_211, %c0_212] : memref<8x1xf32, #tpu.memory_space<vmem>>, vector<8x1xf32>
    %339 = vector.broadcast %338 : vector<8x1xf32> to vector<8x256xf32>
    %340 = arith.addf %337, %339 : vector<8x256xf32>
    %c0_213 = arith.constant 0 : index
    %c0_214 = arith.constant 0 : index
    %c0_215 = arith.constant 0 : index
    %341 = vector.load %arg14[%c0_213, %c0_214, %c0_215] : memref<1x8x256xf32, #tpu.memory_space<vmem>>, vector<1x8x256xf32>
    %342 = vector.shape_cast %341 : vector<1x8x256xf32> to vector<8x256xf32>
    %343 = vector.shape_cast %340 : vector<8x256xf32> to vector<1x8x256xf32>
    tpu.vector_store %arg14[%c0_213, %c0_214, %c0_215], %343 {strides = array<i32>} : memref<1x8x256xf32, #tpu.memory_space<vmem>>, vector<1x8x256xf32>,
    return
  }
  func.func @transform_0(%arg0: i32) -> (i32, i32, i32) {
    %c0_i32 = arith.constant 0 : i32
    %c0_i32_0 = arith.constant 0 : i32
    %c0_i32_1 = arith.constant 0 : i32
    return %arg0, %c0_i32, %c0_i32_0 : i32, i32, i32
  }
  func.func @transform_1(%arg0: i32) -> (i32, i32, i32) {
    %c0_i32 = arith.constant 0 : i32
    %c0_i32_0 = arith.constant 0 : i32
    %c0_i32_1 = arith.constant 0 : i32
    %c0_i32_2 = arith.constant 0 : i32
    return %c0_i32, %c0_i32_0, %c0_i32_1 : i32, i32, i32
  }
  func.func @transform_2(%arg0: i32) -> (i32, i32) {
    %c0_i32 = arith.constant 0 : i32
    %c0_i32_0 = arith.constant 0 : i32
    %c0_i32_1 = arith.constant 0 : i32
    return %c0_i32, %c0_i32_0 : i32, i32
  }
  func.func @transform_3(%arg0: i32) -> (i32, i32) {
    %c0_i32 = arith.constant 0 : i32
    %c0_i32_0 = arith.constant 0 : i32
    %c0_i32_1 = arith.constant 0 : i32
    return %c0_i32, %c0_i32_0 : i32, i32
  }
  func.func @transform_4(%arg0: i32) -> (i32, i32, i32, i32) {
    %c0_i32 = arith.constant 0 : i32
    %c0_i32_0 = arith.constant 0 : i32
    %c0_i32_1 = arith.constant 0 : i32
    %c0_i32_2 = arith.constant 0 : i32
    %c0_i32_3 = arith.constant 0 : i32
    return %c0_i32, %c0_i32_0, %c0_i32_1, %c0_i32_2 : i32, i32, i32, i32
  }
  func.func @transform_5(%arg0: i32) -> (i32, i32, i32) {
    %c0_i32 = arith.constant 0 : i32
    %c0_i32_0 = arith.constant 0 : i32
    %c0_i32_1 = arith.constant 0 : i32
    %c0_i32_2 = arith.constant 0 : i32
    return %c0_i32, %c0_i32_0, %c0_i32_1 : i32, i32, i32
  }
  func.func @transform_6(%arg0: i32) -> (i32, i32, i32) {
    %c0_i32 = arith.constant 0 : i32
    %c0_i32_0 = arith.constant 0 : i32
    %c0_i32_1 = arith.constant 0 : i32
    %c0_i32_2 = arith.constant 0 : i32
    return %c0_i32, %c0_i32_0, %c0_i32_1 : i32, i32, i32
  }
  func.func @transform_7(%arg0: i32) -> (i32, i32, i32) {
    %c0_i32 = arith.constant 0 : i32
    %c0_i32_0 = arith.constant 0 : i32
    %c0_i32_1 = arith.constant 0 : i32
    %c0_i32_2 = arith.constant 0 : i32
    return %c0_i32, %c0_i32_0, %c0_i32_1 : i32, i32, i32
  }
  func.func @transform_8(%arg0: i32) -> (i32, i32, i32) {
    %c0_i32 = arith.constant 0 : i32
    %c0_i32_0 = arith.constant 0 : i32
    %c0_i32_1 = arith.constant 0 : i32
    %c0_i32_2 = arith.constant 0 : i32
    return %c0_i32, %c0_i32_0, %c0_i32_1 : i32, i32, i32
  }
  func.func @transform_9(%arg0: i32) -> (i32, i32, i32) {
    %c0_i32 = arith.constant 0 : i32
    %c0_i32_0 = arith.constant 0 : i32
    %c0_i32_1 = arith.constant 0 : i32
    %c0_i32_2 = arith.constant 0 : i32
    return %c0_i32, %c0_i32_0, %c0_i32_1 : i32, i32, i32
  }
  func.func @transform_10(%arg0: i32) -> (i32, i32, i32) {
    %c0_i32 = arith.constant 0 : i32
    %c0_i32_0 = arith.constant 0 : i32
    %c0_i32_1 = arith.constant 0 : i32
    %c0_i32_2 = arith.constant 0 : i32
    return %c0_i32, %c0_i32_0, %c0_i32_1 : i32, i32, i32
  }
  func.func @transform_11(%arg0: i32) -> (i32, i32, i32) {
    %c0_i32 = arith.constant 0 : i32
    %c0_i32_0 = arith.constant 0 : i32
    %c0_i32_1 = arith.constant 0 : i32
    %c0_i32_2 = arith.constant 0 : i32
    return %c0_i32, %c0_i32_0, %c0_i32_1 : i32, i32, i32
  }
  func.func @transform_12(%arg0: i32) -> (i32, i32) {
    %c0_i32 = arith.constant 0 : i32
    %c0_i32_0 = arith.constant 0 : i32
    %c0_i32_1 = arith.constant 0 : i32
    return %c0_i32, %c0_i32_0 : i32, i32
  }
  func.func @transform_13(%arg0: i32) -> (i32, i32, i32) {
    %c0_i32 = arith.constant 0 : i32
    %c0_i32_0 = arith.constant 0 : i32
    %c0_i32_1 = arith.constant 0 : i32
    return %arg0, %c0_i32, %c0_i32_0 : i32, i32, i32
  }
}

</mosaic_0001>

<bundles_post_ra>
// kernel: descanning_forward.1
= control target key start
LH: loop header
LB: loop body
LE: loop exit
PB: predicated region body
PF: predicated region fallthrough
CT: control target
= control target key end

     0   :  { %s3670_s25 = smov 0   ;;  %s5183_s0 = inlined_call_operand.vmem [shape: f32[2,16,256], index: 0, kind: input, shape index: {}]   ;;  %s5184_s1 = inlined_call_operand.vmem [shape: bf16[3,32,48], index: 1, kind: input, shape index: {}]   ;;  %s5185_s2 = inlined_call_operand.vmem [shape: f32[32,1], index: 2, kind: input, shape index: {}]   ;;  %s5186_s3 = inlined_call_operand.vmem [shape: f32[32,1], index: 3, kind: input, shape index: {}]   ;;  %s5187_s4 = inlined_call_operand.vmem [shape: bf16[2,3,32,96], index: 4, kind: input, shape index: {}]   ;;  %s5188_s5 = inlined_call_operand.vmem [shape: f32[2,32,1], index: 5, kind: input, shape index: {}]   ;;  %s5189_s6 = inlined_call_operand.vmem [shape: f32[2,32,1], index: 6, kind: input, shape index: {}]   ;;  %s5190_s7 = inlined_call_operand.vmem [shape: f32[2,32,2], index: 7, kind: input, shape index: {}]   ;;  %s5191_s8 = inlined_call_operand.vmem [shape: f32[2,1,2], index: 8, kind: input, shape index: {}]   ;;  %s5192_s9 = inlined_call_operand.vmem [shape: f32[2,32,2], index: 9, kind: input, shape index: {}]   ;;  %s5193_s10 = inlined_call_operand.vmem [shape: f32[2,32,1], index: 10, kind: input, shape index: {}]   ;;  %s5194_s11 = inlined_call_operand.vmem [shape: bf16[3,8,96], index: 11, kind: input, shape index: {}]   ;;  %s5195_s12 = inlined_call_operand.vmem [shape: f32[8,1], index: 12, kind: input, shape index: {}]   ;;  %s5196_s13 = inlined_call_operand.vmem [shape: f32[2,8,256], index: 13, kind: output, shape index: {}]  }
   0x1 LB: > { %s3212_s26 = sadd.s32 4294967295, %s3590_s25   ;;  %p3216_p0 = scmp.ge.s32.totalorder %s3590_s25, 1  ;;  %s3590_s25 = sphi %s3670_s25, %s23_s25  }
   0x2   : > { %p387_p1 = scmp.lt.s32.totalorder %s3590_s25, 3 }
   0x4   : > { %p388_p2 = pnand %p3216_p0, %p387_p1 }
   0x5   : > { %v444_v0 = vlaneseq (!%p388_p2)  ;;  %v3592_v1 = vmov (!%p388_p2), 0   ;;  %p431_p3 = scmp.lt.s32.totalorder (!%p388_p2), %s3212_s26, 1  ;;  %s3593_s27 = smov (!%p388_p2), 113   ;;  %vm534_vm6 = vcmask (!%p388_p2), 924672   ;;  %vm586_vm9 = vcmask (!%p388_p2), 7168  }
   0x6   : > { %391 = sbr.rel (%p388_p2) target bundleno = 3246 (0xcae), region = 72  ;;  %795 = vmatprep.mubr.bf16.mxu0 (!%p388_p2), %v3592_v1  ;;  %692 = vmatprep.mubr.bf16.mxu1 (!%p388_p2), %v3592_v1  ;;  %s3594_s28 = smov (!%p388_p2), 1   ;;  %vm744_vm10 = vcmask (!%p388_p2), 138240  }
   0x7   : > { %v445_v2 = vand.u32 (!%p388_p2), 127, %v444_v0  ;;  %3398 = vset.pattern.permute.xlu1 (!%p388_p2), %v3592_v1  ;;  %3397 = vset.pattern.permute.xlu0 (!%p388_p2), %v3592_v1  ;;  %v497_v3 = vshrl.u32 (!%p388_p2), %v444_v0, 7  ;;  %s3595_s16 = smov (!%p388_p2), 17   ;;  %s3596_s17 = smov (!%p388_p2), 111  }
   0x8   : > { %s3597_s18 = smov (!%p388_p2), 127   ;;  %s3598_s19 = smov (!%p388_p2), 126  }
   0x9   : > { %v446_v4 = vadd.s32 (!%p388_p2), 128, %v445_v2  ;;  %v451_v5 = vand.u32 (!%p388_p2), 15, %v445_v2  ;;  %v3682_v7 = vsub.s32 (!%p388_p2), 0, %v497_v3  ;;  %v502_v8 = vsub.s32 (!%p388_p2), 4, %v497_v3  ;;  %s3599_s20 = smov (!%p388_p2), 15  }
   0xb   : > { %v458_v6 = vand.u32 (!%p388_p2), 15, %v446_v4  ;;  %vm473_vm0 = vcmp.le.s32.totalorder (!%p388_p2), %v451_v5, 14  ;;  %vm471_vm3 = vcmp.ge.s32.totalorder (!%p388_p2), %v451_v5, 1 }
   0xd   : > { %vm474_vm1 = vcmp.le.s32.totalorder %v458_v6, 14  ;;  %s5227_s26 = smov (!%p431_p3, %s3212_s26), 1  ;;  %vm472_vm4 = vcmp.ge.s32.totalorder %v458_v6, 1 }
   0xe   : > { %vm520_vm2 = vmpackc.low %vm474_vm1, %vm473_vm0  ;;  %s3321_s29 = sshll.u32 %s5227_s26, 5  ;;  %vm551_vm0 = vcmask 1039360  }
   0xf   : > { %v521_v9 = vsel %vm520_vm2, 65537, %v3592_v1  ;;  %vm494_vm5 = vmpackc.low %vm472_vm4, %vm471_vm3  ;;  %s435_s15 = scalar_lea.vmem %s5183_s0, %s3321_s29  ;;  %vm820_vm3 = vcmask 121856   ;;  %vm508_vm4 = vcmask 908288  }
  0x10   : > { %v525_v10 = vrot.slane %v521_v9, %v3682_v7  ;;  %v529_v11 = vrot.slane %v521_v9, %v502_v8  ;;  %v495_v12 = vsel %vm494_vm5, 65537, %v3592_v1  ;;  %v480_v15 = vld [vmem:[%s435_s15 + $0x8] sm:$0xff]  ;;  %v482_v16 = vld [vmem:[%s435_s15 + $0x18] sm:$0xff]  ;;  %v479_v17 = vld [vmem:[%s435_s15] sm:$0xff] }
  0x11   : > { %v503_v13 = vrot.slane %v495_v12, %v502_v8  ;;  %v499_v14 = vrot.slane %v495_v12, %v3682_v7  ;;  %v481_v18 = vld [vmem:[%s435_s15 + $0x10] sm:$0xff]  ;;  %v3700_v19 = vpack.c.bf16 %v482_v16, %v480_v15  ;;  %v1001_v15 = vld [vmem:[%s5186_s3] sm:$0xff]  ;;  %v1002_v16 = vld [vmem:[%s5186_s3 + $0x8] sm:$0xff] }
  0x12   : > { %530 = vrot.lane.b32.xlu0 %v525_v10, %s3593_s27  ;;  %582 = vrot.lane.b32.xlu1 %v525_v10, %s3594_s28  ;;  %v3702_v20 = vpack.c.bf16 %v481_v18, %v479_v17  ;;  %v971_v17 = vld [vmem:[%s5185_s2 + $0x10] sm:$0xff]  ;;  %v972_v18 = vld [vmem:[%s5185_s2 + $0x18] sm:$0xff] }
  0x16   : > { %532 = vrot.lane.b32.xlu0 %v529_v11, %s3593_s27  ;;  %584 = vrot.lane.b32.xlu1 %v529_v11, %s3594_s28 }
  0x1a   : > { %830 = vrot.lane.b32.xlu1 %v529_v11, %s3595_s16  ;;  %828 = vrot.lane.b32.xlu0 %v525_v10, %s3595_s16 }
  0x1e   : > { %506 = vrot.lane.b32.xlu1 %v503_v13, %s3596_s17  ;;  %504 = vrot.lane.b32.xlu0 %v499_v14, %s3596_s17 }
  0x22   : > { %549 = vrot.lane.b32.xlu1 %v3700_v19, %s3597_s18  ;;  %547 = vrot.lane.b32.xlu0 %v3702_v20, %s3597_s18 }
  0x26   : > { %545 = vrot.lane.b32.xlu0 %v3592_v1, %s3597_s18  ;;  %557 = vrot.lane.b32.xlu1 %v3592_v1, %s3598_s19 }
  0x2a   : > { %570 = vrot.lane.b32.xlu0 %v499_v14, %s3597_s18 }
  0x84   : > { %v531_v21 = vpop.permute.xlu0 %530  ;;  %v3713_v22 = vpop.permute.xlu1 %582 }
  0x85   : > { %vm588_vm12 = vcmp.ne.s16.totalorder %v3713_v22, 0 }
  0x86   : > { %v591_v33 = vsel %vm588_vm12, %v3702_v20, 0 }
  0x88   : > { %v3715_v23 = vpop.permute.xlu0 %532  ;;  %v585_v27 = vpop.permute.xlu1 %584 }
  0x89   : > { %v3719_v24 = vsel %vm534_vm6, %v531_v21, %v3715_v23  ;;  %vm5204_vm7 = vcmp.ne.s16.totalorder %v3715_v23, 0  ;;  %v3733_v28 = vsel %vm586_vm9, %v3713_v22, %v585_v27 }
  0x8a   : > { %vm537_vm8 = vcmp.ne.s16.totalorder %v3719_v24, 0  ;;  %v541_v25 = vsel %vm5204_vm7, %v3700_v19, 0  ;;  %vm5203_vm11 = vcmp.ne.s16.totalorder %v3733_v28, 0 }
  0x8b   : > { %561 = vrot.lane.b32.xlu0 %v541_v25, %s3598_s19  ;;  %v540_v26 = vsel %vm537_vm8, %v3702_v20, 0  ;;  %v592_v32 = vsel %vm5203_vm11, %v3700_v19, 0 }
  0x8c   : > { %559 = vrot.lane.b32.xlu1 %v540_v26, %s3598_s19  ;;  %v831_v29 = vpop.permute.xlu1 %830  ;;  %v3735_v30 = vpop.permute.xlu0 %828 }
  0x8d   : > { %v3742_v31 = vsel %vm744_vm10, %v3735_v30, %v831_v29  ;;  %vm833_vm14 = vcmp.ne.s16.totalorder %v3735_v30, 0 }
  0x8e   : > { %vm834_vm13 = vcmp.ne.s16.totalorder %v3742_v31, 0  ;;  %v836_v37 = vsel %vm833_vm14, %v3702_v20, 0 }
  0x8f   : > { %816 = vrot.lane.b32.xlu0 %v499_v14, %s3599_s20  ;;  %v837_v34 = vsel %vm834_vm13, %v3700_v19, 0  ;;  %v969_v14 = vld [vmem:[%s5185_s2] sm:$0xff] }
  0x90   : > { %572 = vrot.lane.b32.xlu1 %v503_v13, %s3597_s18  ;;  %v505_v35 = vpop.permute.xlu0 %504  ;;  %v3760_v36 = vpop.permute.xlu1 %506 }
  0x91   : > { %vm5197_vm15 = vcmp.ne.s16.totalorder %v3760_v36, 0  ;;  %v3816_v58 = vsel %vm508_vm4, %v505_v35, %v3760_v36  ;;  %vm563_vm4 = vcmask 1031168  }
  0x92   : > { %v515_v39 = vsel %vm5197_vm15, %v3700_v19, 0 }
  0x93   : > { %840 = vrot.lane.b32.xlu0 %v3592_v1, %s3597_s18 }
  0x94   : > { %818 = vrot.lane.b32.xlu1 %v503_v13, %s3599_s20  ;;  %v3771_v38 = vpop.permute.xlu0 %547  ;;  %v550_v40 = vpop.permute.xlu1 %549  ;;  %v970_v13 = vld [vmem:[%s5185_s2 + $0x8] sm:$0xff]  ;;  %s3322_s20 = sshll.u32 %s5227_s26, 4 }
  0x95   : > { %v553_v41 = vsel %vm551_vm0, %v3771_v38, %v550_v40  ;;  %s440_s23 = scalar_lea.vmem %s5196_s13, %s3322_s20 }
  0x97   : > { %599 = vrot.lane.b32.xlu0 %v592_v32, %s3598_s19 }
  0x98   : > { %597 = vrot.lane.b32.xlu1 %v591_v33, %s3598_s19  ;;  %v546_v42 = vpop.permute.xlu0 %545  ;;  %v558_v45 = vpop.permute.xlu1 %557 }
  0x99   : > { %v552_v43 = vsel %vm551_vm0, %v546_v42, %v3771_v38 }
  0x9b   : > { %848 = vrot.lane.b32.xlu0 %v837_v34, %s3598_s19 }
  0x9c   : > { %3388 = vrot.lane.b32.xlu1 %v3592_v1, %s3598_s19  ;;  %v571_v44 = vpop.permute.xlu0 %570 }
  0x9f   : > { %726 = vrot.lane.b32.xlu0 %v3592_v1, %s3595_s16 }
  0xa0   : > { %846 = vrot.lane.b32.xlu1 %v836_v37, %s3598_s19 }
  0xa3   : > { %736 = vrot.lane.b32.xlu0 %v550_v40, %s3595_s16 }
  0xa4   : > { %730 = vrot.lane.b32.xlu1 %v515_v39, %s3595_s16 }
  0xa8   : > { %734 = vrot.lane.b32.xlu1 %v553_v41, %s3595_s16 }
  0xac   : > { %732 = vrot.lane.b32.xlu1 %v552_v43, %s3595_s16 }
  0xb0   : > { %623 = vrot.lane.b32.xlu1 %v3592_v1, %s3594_s28 }
  0xb4   : > { %631 = vrot.lane.b32.xlu1 %v553_v41, %s3594_s28 }
  0xfd   : > { %v562_v46 = vpop.permute.xlu0 %561 }
  0xfe   : > { %v560_v47 = vpop.permute.xlu1 %559 }
  0xff   : > { %v565_v3 = vsel %vm563_vm4, %v560_v47, %v562_v46  ;;  %v564_v6 = vsel %vm563_vm4, %v558_v45, %v560_v47 }
 0x101   : > { %v3787_v48 = vpop.permute.xlu0 %816 }
 0x102   : > { %v3789_v49 = vpop.permute.xlu1 %572  ;;  %vm5198_vm15 = vcmp.ne.s16.totalorder %v3787_v48, 0 }
 0x103   : > { %v3793_v50 = vsel %vm551_vm0, %v571_v44, %v3789_v49  ;;  %vm577_vm1 = vcmp.ne.s16.totalorder %v3789_v49, 0  ;;  %v825_v59 = vsel %vm5198_vm15, %v3702_v20, 0  ;;  %vm653_vm15 = vcmask 392192  }
 0x104   : > { %vm5199_vm2 = vcmp.ne.s16.totalorder %v3793_v50, 0  ;;  %v580_v51 = vsel %vm577_vm1, %v3700_v19, 0 }
 0x105   : > { %v841_v52 = vpop.permute.xlu0 %840  ;;  %627 = vrot.lane.b32.xlu0 %v580_v51, %s3594_s28  ;;  %v579_v53 = vsel %vm5199_vm2, %v3702_v20, 0 }
 0x106   : > { %v3392_v54 = vpack.i.bf16 %v841_v52, %v3592_v1  ;;  %625 = vrot.lane.b32.xlu1 %v579_v53, %s3594_s28  ;;  %v819_v55 = vpop.permute.xlu1 %818  ;;  %v842_v62 = vsel %vm551_vm0, %v550_v40, %v841_v52 }
 0x107   : > { %v3807_v56 = vsel %vm820_vm3, %v3787_v48, %v819_v55  ;;  %vm511_vm3 = vcmp.ne.s16.totalorder %v3816_v58, 0 }
 0x108   : > { %vm823_vm5 = vcmp.ne.s16.totalorder %v3807_v56, 0  ;;  %v514_v61 = vsel %vm511_vm3, %v3702_v20, 0  ;;  %v1004_v20 = vld [vmem:[%s5186_s3 + $0x18] sm:$0xff] }
 0x109   : > { %3393 = vrot.lane.b32.xlu0 %v3392_v54, %s3593_s27  ;;  %v826_v57 = vsel %vm823_vm5, %v3700_v19, 0  ;;  %v600_v4 = vpop.permute.xlu0 %599  ;;  %v1003_v19 = vld [vmem:[%s5186_s3 + $0x10] sm:$0xff] }
 0x10a   : > { %874 = vrot.lane.b32.xlu1 %v826_v57, %s3593_s27  ;;  %v598_v60 = vpop.permute.xlu1 %597 }
 0x10b   : > { %v603_v11 = vsel %vm563_vm4, %v598_v60, %v600_v4 }
 0x10d   : > { %872 = vrot.lane.b32.xlu0 %v825_v59, %s3593_s27  ;;  %v849_v9 = vpop.permute.xlu0 %848 }
 0x10e   : > { %742 = vrot.lane.b32.xlu1 %v562_v46, %s3595_s16  ;;  %v3389_v63 = vpop.permute.xlu1 %3388 }
 0x10f   : > { %v3391_v0 = vunpack.i.h.bf16 %v3389_v63  ;;  %v3390_v2 = vunpack.i.l.bf16 %v3389_v63  ;;  %v3534_v63 = vld [vmem:[%s5184_s1] sm:$0xff]  }
 0x111   : > { %728 = vrot.lane.b32.xlu0 %v514_v61, %s3595_s16  ;;  %v604_v5 = vsel %vm563_vm4, %v600_v4, %v3390_v2  ;;  %v853_v12 = vsel %vm563_vm4, %v849_v9, %v3391_v0  ;;  %v727_v27 = vpop.permute.xlu0 %726 }
 0x112   : > { %880 = vrot.lane.b32.xlu1 %v842_v62, %s3593_s27  ;;  %v847_v8 = vpop.permute.xlu1 %846 }
 0x113   : > { %v852_v10 = vsel %vm563_vm4, %v847_v8, %v849_v9 }
 0x115   : > { %633 = vrot.lane.b32.xlu0 %v550_v40, %s3594_s28  ;;  %v737_v32 = vpop.permute.xlu0 %736 }
 0x116   : > { %878 = vrot.lane.b32.xlu1 %v553_v41, %s3593_s27  ;;  %v731_v21 = vpop.permute.xlu1 %730 }
 0x119   : > { %740 = vrot.lane.b32.xlu0 %v565_v3, %s3595_s16 }
 0x11a   : > { %888 = vrot.lane.b32.xlu1 %v3391_v0, %s3593_s27  ;;  %v735_v25 = vpop.permute.xlu1 %734 }
 0x11b   : > { %v748_v47 = vsel %vm744_vm10, %v735_v25, %v737_v32 }
 0x11d   : > { %738 = vrot.lane.b32.xlu0 %v564_v6, %s3595_s16 }
 0x11e   : > { %639 = vrot.lane.b32.xlu1 %v604_v5, %s3594_s28  ;;  %v733_v26 = vpop.permute.xlu1 %732 }
 0x11f   : > { %v747_v53 = vsel %vm744_vm10, %v733_v26, %v735_v25  ;;  %v3539_v25 = vld [vmem:[%s5184_s1 + $0x28] sm:$0xff]  }
 0x121   : > { %629 = vrot.lane.b32.xlu0 %v3771_v38, %s3594_s28 }
 0x122   : > { %884 = vrot.lane.b32.xlu1 %v852_v10, %s3593_s27  ;;  %v624_v29 = vpop.permute.xlu1 %623 }
 0x125   : > { %637 = vrot.lane.b32.xlu0 %v603_v11, %s3594_s28 }
 0x126   : > { %980 = vperm.xlu1 %3398, %v970_v13   ;;  %v632_v33 = vpop.permute.xlu1 %631 }
 0x129   : > { %886 = vrot.lane.b32.xlu0 %v853_v12, %s3593_s27  ;;  %v3535_v12 = vld [vmem:[%s5184_s1 + $0x8] sm:$0xff]  }
 0x12a   : > { %1007 = vperm.xlu1 %3398, %v1001_v15  }
 0x12d   : > { %635 = vrot.lane.b32.xlu0 %v598_v60, %s3594_s28 }
 0x12e   : > { %985 = vperm.xlu1 %3398, %v971_v17  }
 0x131   : > { %975 = vperm.xlu0 %3397, %v969_v14  }
 0x132   : > { %1017 = vperm.xlu1 %3398, %v1003_v19   ;;  %v3536_v19 = vld [vmem:[%s5184_s1 + $0x10] sm:$0xff]  }
 0x135   : > { %1012 = vperm.xlu0 %3397, %v1002_v16  }
 0x136   : > { %3400 = vrot.lane.b32.xlu1 %v3592_v1, %s3598_s19 }
 0x139   : > { %990 = vperm.xlu0 %3397, %v972_v18  }
 0x13a   : > { %3410 = vrot.lane.b32.xlu1 %v3592_v1, %s3598_s19 }
 0x13d   : > { %1022 = vperm.xlu0 %3397, %v1004_v20   ;;  %v3537_v20 = vld [vmem:[%s5184_s1 + $0x20] sm:$0xff]  }
 0x13e   : > { %3415 = vrot.lane.b32.xlu1 %v3592_v1, %s3597_s18 }
 0x141   : > { %3405 = vrot.lane.b32.xlu0 %v3592_v1, %s3597_s18 }
 0x142   : > { %3420 = vrot.lane.b32.xlu1 %v3592_v1, %s3594_s28 }
 0x177   : > { %v628_v34 = vpop.permute.xlu0 %627 }
 0x178   : > { %v626_v35 = vpop.permute.xlu1 %625 }
 0x179   : > { %v642_v37 = vsel %vm586_vm9, %v626_v35, %v628_v34  ;;  %v641_v38 = vsel %vm586_vm9, %v624_v29, %v626_v35 }
 0x17a   : > { %660 = vmatprep.subr.bf16.mxu1 %v642_v37 }
 0x17b   : > { %v3394_v39 = vpop.permute.xlu0 %3393  ;;  %661 = vmatpush1.bf16.msra.mxu1 %v641_v38 }
 0x17c   : > { %v875_v40 = vpop.permute.xlu1 %874  ;;  %v3395_v59 = vunpack.i.l.bf16 %v3394_v39  ;;  %v3396_v2 = vunpack.i.h.bf16 %v3394_v39 }
 0x17e   : > { %v891_v0 = vsel %vm534_vm6, %v875_v40, %v3395_v59 }
 0x17f   : > { %v873_v41 = vpop.permute.xlu0 %872 }
 0x180   : > { %v743_v42 = vpop.permute.xlu1 %742  ;;  %v890_v4 = vsel %vm534_vm6, %v873_v41, %v875_v40 }
 0x183   : > { %v729_v43 = vpop.permute.xlu0 %728 }
 0x184   : > { %v746_v44 = vsel %vm744_vm10, %v729_v43, %v731_v21  ;;  %v745_v45 = vsel %vm744_vm10, %v727_v27, %v729_v43  ;;  %v881_v46 = vpop.permute.xlu1 %880  ;;  %v3538_v21 = vld [vmem:[%s5184_s1 + $0x18] sm:$0xff]  }
 0x185   : > { %763 = vmatprep.subr.bf16.mxu0 %v746_v44  ;;  %v893_v8 = vsel %vm534_vm6, %v881_v46, %v3396_v2 }
 0x186   : > { %764 = vmatpush1.bf16.msra.mxu0 %v745_v45 }
 0x187   : > { %765 = vmatprep.subr.bf16.mxu0 %v748_v47  ;;  %v634_v51 = vpop.permute.xlu0 %633 }
 0x188   : > { %v644_v52 = vsel %vm586_vm9, %v632_v33, %v634_v51  ;;  %v879_v54 = vpop.permute.xlu1 %878 }
 0x189   : > { %662 = vmatprep.subr.bf16.mxu1 %v644_v52  ;;  %v892_v10 = vsel %vm534_vm6, %v879_v54, %v881_v46 }
 0x18a   : > { %766 = vmatpush1.bf16.msra.mxu0 %v747_v53 }
 0x18b   : > { %v741_v55 = vpop.permute.xlu0 %740 }
 0x18c   : > { %v750_v57 = vsel %vm744_vm10, %v741_v55, %v743_v42  ;;  %v889_v60 = vpop.permute.xlu1 %888 }
 0x18d   : > { %767 = vmatprep.subr.bf16.mxu0 %v750_v57 }
 0x18f   : > { %v739_v61 = vpop.permute.xlu0 %738 }
 0x190   : > { %v749_v62 = vsel %vm744_vm10, %v739_v61, %v741_v55  ;;  %v640_v6 = vpop.permute.xlu1 %639 }
 0x191   : > { %768 = vmatpush1.bf16.msra.mxu0 %v749_v62 }
 0x192   : > { %908 = vmatprep.subr.bf16.mxu0 %v891_v0 }
 0x193   : > { %v630_v3 = vpop.permute.xlu0 %629 }
 0x194   : > { %3231 = vmatmul.mubr.msk.bf16.vlgmr.msra.gmra.mrb[0].mxu0 %vm653_vm15, %v3534_v63  ;;  %v643_v5 = vsel %vm586_vm9, %v630_v3, %v632_v33  ;;  %v885_v13 = vpop.permute.xlu1 %884 }
 0x195   : > { %663 = vmatpush1.bf16.msra.mxu1 %v643_v5  ;;  %909 = vmatpush1.bf16.msra.mxu0 %v890_v4 }
 0x196   : > { %910 = vmatprep.subr.bf16.mxu0 %v893_v8  ;;  %805 = vmatprep.mubr.bf16.mxu0 %v3592_v1 }
 0x197   : > { %v638_v9 = vpop.permute.xlu0 %637 }
 0x198   : > { %v646_v11 = vsel %vm586_vm9, %v638_v9, %v640_v6 }
 0x199   : > { %664 = vmatprep.subr.bf16.mxu1 %v646_v11  ;;  %911 = vmatpush1.bf16.msra.mxu0 %v892_v10 }
 0x19b   : > { %v887_v14 = vpop.permute.xlu0 %886 }
 0x19c   : > { %3232 = vmatmul.mubr.msk.bf16.gmra.mrb[4].mxu0 %vm653_vm15, %v3535_v12  ;;  %v895_v15 = vsel %vm534_vm6, %v887_v14, %v889_v60  ;;  %v894_v16 = vsel %vm534_vm6, %v885_v13, %v887_v14 }
 0x19d   : > { %912 = vmatprep.subr.bf16.mxu0 %v895_v15  ;;  %940 = vmatprep.mubr.bf16.mxu0 %v3592_v1 }
 0x19e   : > { %913 = vmatpush1.bf16.msra.mxu0 %v894_v16 }
 0x19f   : > { %v636_v17 = vpop.permute.xlu0 %635 }
 0x1a0   : > { %v645_v18 = vsel %vm586_vm9, %v636_v17, %v638_v9 }
 0x1a1   : > { %665 = vmatpush1.bf16.msra.mxu1 %v645_v18 }
 0x1a4   : > { %3227 = vmatmul.mubr.msk.bf16.vlgmr.msra.gmra.mrb[0].mxu1 %vm653_vm15, %v3536_v19  ;;  %3239 = vmatmul.mubr.msk.bf16.vlgmr.msra.gmra.mrb[0].mxu0 %vm653_vm15, %v3537_v20 }
 0x1a5   : > { %702 = vmatprep.mubr.bf16.mxu1 %v3592_v1  ;;  %950 = vmatprep.mubr.bf16.mxu0 %v3592_v1  ;;  %v981_v26 = vpop.permute.xlu1 %980 }
 0x1a9   : > { %v1008_v44 = vpop.permute.xlu1 %1007 }
 0x1ac   : > { %3228 = vmatmul.mubr.msk.bf16.gmra.mrb[4].mxu1 %vm653_vm15, %v3538_v21  ;;  %3240 = vmatmul.mubr.msk.bf16.gmra.mrb[4].mxu0 %vm653_vm15, %v3539_v25  ;;  %vm5205_vm15 = vcmp.ne.s16.totalorder %v3760_v36, 0 }
 0x1ad   : > { %1275 = vmatprep.mubr.bf16.mxu1 %v3592_v1  ;;  %2074 = vmatprep.mubr.bf16.mxu0 %v3592_v1  ;;  %v986_v15 = vpop.permute.xlu1 %985 }
 0x1b0   : > { %v976_v27 = vpop.permute.xlu0 %975 }
 0x1b1   : > { %v1018_v25 = vpop.permute.xlu1 %1017 }
 0x1b4   : > { %v1013_v52 = vpop.permute.xlu0 %1012 }
 0x1b8   : > { %v991_v12 = vpop.permute.xlu0 %990 }
 0x1bc   : > { %v1023_v20 = vpop.permute.xlu0 %1022 }
 0x277   : > { %v694_v29 = vpop.f32.mrb[0].mxu1  ;;  %v942_v32 = vpop.f32.mrb[0].mxu0 }
 0x278   : > { %v3323_v33 = vadd.f32 %v942_v32, %v694_v29  ;;  %v696_v34 = vpop.f32.mrb[1].mxu1  ;;  %v944_v35 = vpop.f32.mrb[1].mxu0 }
 0x279   : > { %v3324_v37 = vadd.f32 %v944_v35, %v696_v34  ;;  %v698_v38 = vpop.f32.mrb[2].mxu1  ;;  %v946_v39 = vpop.f32.mrb[2].mxu0 }
 0x27a   : > { %v993_v40 = vmul.f32 %v3323_v33, %v976_v27  ;;  %v3325_v41 = vadd.f32 %v946_v39, %v698_v38  ;;  %v700_v42 = vpop.f32.mrb[3].mxu1  ;;  %v948_v43 = vpop.f32.mrb[3].mxu0 }
 0x27b   : > { %v3326_v45 = vadd.f32 %v948_v43, %v700_v42  ;;  %v994_v47 = vmul.f32 %v3324_v37, %v976_v27 }
 0x27c   : > { %v3931_v46 = vadd.f32 %v1008_v44, %v993_v40  ;;  %v995_v51 = vmul.f32 %v3325_v41, %v981_v26 }
 0x27d   : > { %v996_v53 = vmul.f32 %v3326_v45, %v981_v26  ;;  %v3938_v61 = vadd.f32 %v1008_v44, %v994_v47 }
 0x27e   : > { %v3933_v54 = vadd.f32 %v1013_v52, %v995_v51  ;;  %v1033_v60 = vmax.f32 %v3931_v46, 0.0 }
 0x27f   : > { %v3935_v55 = vadd.f32 %v1013_v52, %v996_v53  ;;  %v704_v57 = vpop.f32.mrb[4].mxu1  ;;  %v952_v59 = vpop.f32.mrb[4].mxu0  ;;  %v1034_v14 = vmax.f32 %v3938_v61, 0.0 }
 0x280   : > { %v1035_v62 = vmax.f32 %v3933_v54, 0.0  ;;  %v3327_v63 = vadd.f32 %v952_v59, %v704_v57  ;;  %v706_v0 = vpop.f32.mrb[5].mxu1  ;;  %v954_v2 = vpop.f32.mrb[5].mxu0 }
 0x281   : > { %v3328_v3 = vadd.f32 %v954_v2, %v706_v0  ;;  %v708_v4 = vpop.f32.mrb[6].mxu1  ;;  %v956_v5 = vpop.f32.mrb[6].mxu0  ;;  %v1036_v8 = vmax.f32 %v3935_v55, 0.0 }
 0x282   : > { %v3945_v6 = vpack.c.bf16 %v1035_v62, %v1033_v60  ;;  %v3329_v9 = vadd.f32 %v956_v5, %v708_v4  ;;  %v710_v10 = vpop.f32.mrb[7].mxu1  ;;  %v958_v11 = vpop.f32.mrb[7].mxu0  ;;  %v997_v19 = vmul.f32 %v3327_v63, %v986_v15 }
 0x283   : > { %v3330_v13 = vadd.f32 %v958_v11, %v710_v10  ;;  %v3957_v16 = vpack.c.bf16 %v1036_v8, %v1034_v14  ;;  %v998_v32 = vmul.f32 %v3328_v3, %v986_v15  ;;  %v3401_v11 = vpop.permute.xlu1 %3400 }
 0x284   : > { %1449 = vrot.lane.b32.xlu0 %v3945_v6, %s3597_s18  ;;  %1075 = vrot.lane.b32.xlu1 %v3945_v6, %s3597_s18  ;;  %v999_v17 = vmul.f32 %v3329_v9, %v991_v12  ;;  %v1127_v18 = vsel %vm588_vm12, %v3945_v6, 0  ;;  %v1062_v27 = vsel %vm537_vm8, %v3945_v6, 0  ;;  %v3970_v29 = vadd.f32 %v1018_v25, %v997_v19 }
 0x285   : > { %v1000_v26 = vmul.f32 %v3330_v13, %v991_v12  ;;  %v1128_v35 = vsel %vm5203_vm11, %v3957_v16, 0  ;;  %v1116_v37 = vsel %vm5199_vm2, %v3945_v6, 0  ;;  %v3987_v39 = vadd.f32 %v1018_v25, %v998_v32 }
 0x286   : > { %v3965_v21 = vadd.f32 %v1023_v20, %v999_v17  ;;  %v1037_v38 = vmax.f32 %v3970_v29, 0.0  ;;  %v1063_v42 = vsel %vm5204_vm7, %v3957_v16, 0  ;;  %v1117_v45 = vsel %vm577_vm1, %v3957_v16, 0  ;;  %v3406_v17 = vpop.permute.xlu0 %3405 }
 0x287   : > { %v3976_v34 = vadd.f32 %v1023_v20, %v1000_v26  ;;  %v5202_v43 = vmax.f32 %v3987_v39, 0.0  ;;  %v1438_v51 = vsel %vm834_vm13, %v3957_v16, 0  ;;  %v1056_v57 = vsel %vm511_vm3, %v3945_v6, 0  ;;  %v4079_v12 = vpop.permute.xlu1 %3410 }
 0x288   : > { %1077 = vrot.lane.b32.xlu0 %v3957_v16, %s3597_s18  ;;  %1139 = vrot.lane.b32.xlu1 %v1127_v18, %s3598_s19  ;;  %v5201_v33 = vmax.f32 %v3965_v21, 0.0  ;;  %v1437_v3 = vsel %vm833_vm14, %v3945_v6, 0 }
 0x289   : > { %v5200_v41 = vmax.f32 %v3976_v34, 0.0 }
 0x28a   : > { %v3993_v40 = vpack.c.bf16 %v5201_v33, %v1037_v38 }
 0x28b   : > { %v4007_v44 = vpack.c.bf16 %v5200_v41, %v5202_v43  ;;  %v4081_v13 = vpop.permute.xlu1 %3415  ;;  %v1745_v41 = vld [vmem:[%s5191_s8] sm:$0x1] }
 0x28c   : > { %1451 = vrot.lane.b32.xlu0 %v3957_v16, %s3597_s18  ;;  %1097 = vrot.lane.b32.xlu1 %v1062_v27, %s3598_s19  ;;  %v1440_v52 = vsel %vm833_vm14, %v3993_v40, 0  ;;  %v1130_v53 = vsel %vm588_vm12, %v3993_v40, 0  ;;  %v1065_v59 = vsel %vm537_vm8, %v3993_v40, 0  ;;  %v1119_v0 = vsel %vm5199_vm2, %v3993_v40, 0  ;;  %vm5206_vm2 = vmmov %vm5205_vm15 }
 0x28d   : > { %v1131_v47 = vsel %vm5203_vm11, %v4007_v44, 0  ;;  %v1066_v63 = vsel %vm5204_vm7, %v4007_v44, 0  ;;  %v1120_v2 = vsel %vm577_vm1, %v4007_v44, 0  ;;  %v1060_v4 = vsel %vm5205_vm15, %v4007_v44, 0 }
 0x28e   : > { %v1057_v5 = vsel %vm5206_vm2, %v3957_v16, 0  ;;  %v1059_v9 = vsel %vm511_vm3, %v3993_v40, 0  ;;  %v1441_v10 = vsel %vm834_vm13, %v4007_v44, 0  ;;  %vm5207_vm2 = vcmp.ne.s16.totalorder %v3787_v48, 0 }
 0x28f   : > { %v4083_v15 = vpop.permute.xlu1 %3420  ;;  %vm5208_vm15 = vmmov %vm5207_vm2 }
 0x290   : > { %1141 = vrot.lane.b32.xlu0 %v1128_v35, %s3598_s19  ;;  %1178 = vrot.lane.b32.xlu1 %v1116_v37, %s3594_s28  ;;  %v3402_v35 = vunpack.i.l.bf16 %v3401_v11 }
 0x294   : > { %1099 = vrot.lane.b32.xlu0 %v1063_v42, %s3598_s19  ;;  %1081 = vrot.lane.b32.xlu1 %v3993_v40, %s3597_s18 }
 0x298   : > { %1180 = vrot.lane.b32.xlu0 %v1117_v45, %s3594_s28  ;;  %1455 = vrot.lane.b32.xlu1 %v3993_v40, %s3597_s18 }
 0x29c   : > { %1083 = vrot.lane.b32.xlu0 %v4007_v44, %s3597_s18  ;;  %1147 = vrot.lane.b32.xlu1 %v1131_v47, %s3598_s19 }
 0x2a0   : > { %1473 = vrot.lane.b32.xlu0 %v1438_v51, %s3598_s19  ;;  %3425 = vrot.lane.b32.xlu1 %v3592_v1, %s3598_s19 }
 0x2a4   : > { %1477 = vrot.lane.b32.xlu1 %v1440_v52, %s3598_s19  ;;  %1145 = vrot.lane.b32.xlu0 %v1130_v53, %s3598_s19  ;;  %v3422_v53 = vunpack.i.l.bf16 %v4083_v15 }
 0x2a8   : > { %1314 = vrot.lane.b32.xlu1 %v1056_v57, %s3595_s16  ;;  %1103 = vrot.lane.b32.xlu0 %v1065_v59, %s3598_s19 }
 0x2ac   : > { %3430 = vrot.lane.b32.xlu1 %v3592_v1, %s3595_s16  ;;  %1457 = vrot.lane.b32.xlu0 %v4007_v44, %s3597_s18 }
 0x2b0   : > { %1105 = vrot.lane.b32.xlu1 %v1066_v63, %s3598_s19  ;;  %1184 = vrot.lane.b32.xlu0 %v1119_v0, %s3594_s28 }
 0x2b4   : > { %1186 = vrot.lane.b32.xlu1 %v1120_v2, %s3594_s28  ;;  %1471 = vrot.lane.b32.xlu0 %v1437_v3, %s3598_s19 }
 0x2b8   : > { %1322 = vrot.lane.b32.xlu1 %v1060_v4, %s3595_s16  ;;  %1316 = vrot.lane.b32.xlu0 %v1057_v5, %s3595_s16 }
 0x2bc   : > { %1320 = vrot.lane.b32.xlu0 %v1059_v9, %s3595_s16  ;;  %v3403_v9 = vunpack.i.h.bf16 %v3401_v11  ;;  %v3407_v11 = vunpack.i.l.bf16 %v3406_v17 }
 0x2c0   : > { %1479 = vrot.lane.b32.xlu0 %v1441_v10, %s3598_s19 }
 0x2f6   : > { %v1076_v18 = vpop.permute.xlu1 %1075  ;;  %v4085_v19 = vpop.permute.xlu0 %1449 }
 0x2f7   : > { %1188 = vrot.lane.b32.xlu1 %v1076_v18, %s3594_s28 }
 0x2fa   : > { %v1140_v20 = vpop.permute.xlu1 %1139  ;;  %v1078_v25 = vpop.permute.xlu0 %1077 }
 0x2fb   : > { %1200 = vrot.lane.b32.xlu1 %v1140_v20, %s3594_s28  ;;  %1192 = vrot.lane.b32.xlu0 %v1078_v25, %s3594_s28  ;;  %v1086_v32 = vsel %vm551_vm0, %v1076_v18, %v1078_v25 }
 0x2fe   : > { %v4090_v26 = vpop.permute.xlu1 %1097  ;;  %v4092_v27 = vpop.permute.xlu0 %1451 }
 0x2ff   : > { %1190 = vrot.lane.b32.xlu1 %v1086_v32, %s3594_s28  ;;  %1326 = vrot.lane.b32.xlu0 %v1086_v32, %s3595_s16 }
 0x302   : > { %v1179_v37 = vpop.permute.xlu1 %1178  ;;  %v1142_v42 = vpop.permute.xlu0 %1141 }
 0x303   : > { %v1152_v45 = vsel %vm563_vm4, %v1142_v42, %v3402_v35  ;;  %v1151_v47 = vsel %vm563_vm4, %v1140_v20, %v1142_v42  ;;  %v1212_v0 = vsel %vm586_vm9, %v3422_v53, %v1179_v37  ;;  %v1085_v53 = vsel %vm551_vm0, %v3407_v11, %v1076_v18 }
 0x304   : > { %1204 = vrot.lane.b32.xlu0 %v1152_v45, %s3594_s28  ;;  %1202 = vrot.lane.b32.xlu1 %v1151_v47, %s3594_s28 }
 0x306   : > { %v1082_v51 = vpop.permute.xlu1 %1081  ;;  %v1100_v52 = vpop.permute.xlu0 %1099 }
 0x308   : > { %1194 = vrot.lane.b32.xlu0 %v1082_v51, %s3594_s28 }
 0x30a   : > { %v4103_v57 = vpop.permute.xlu1 %1455  ;;  %v1181_v59 = vpop.permute.xlu0 %1180 }
 0x30b   : > { %v1213_v63 = vsel %vm586_vm9, %v1179_v37, %v1181_v59 }
 0x30c   : > { %1243 = vmatprep.subr.bf16.mxu1 %v1213_v63 }
 0x30d   : > { %1244 = vmatpush1.bf16.msra.mxu1 %v1212_v0 }
 0x30e   : > { %v1148_v2 = vpop.permute.xlu1 %1147  ;;  %v1084_v3 = vpop.permute.xlu0 %1083 }
 0x30f   : > { %1198 = vrot.lane.b32.xlu1 %v1084_v3, %s3594_s28  ;;  %v1154_v32 = vsel %vm563_vm4, %v1148_v2, %v3403_v9  ;;  %v1088_v42 = vsel %vm551_vm0, %v1082_v51, %v1084_v3 }
 0x312   : > { %v4108_v4 = vpop.permute.xlu1 %3425  ;;  %v4110_v5 = vpop.permute.xlu0 %1473 }
 0x313   : > { %1328 = vrot.lane.b32.xlu1 %v1078_v25, %s3595_s16  ;;  %v3408_v25 = vunpack.i.h.bf16 %v3406_v17  ;;  %v3413_v17 = vunpack.i.h.bf16 %v4079_v12 }
 0x315   : > { %v1087_v47 = vsel %vm551_vm0, %v3408_v25, %v1082_v51 }
 0x316   : > { %v4113_v10 = vpop.permute.xlu1 %1477  ;;  %v1146_v20 = vpop.permute.xlu0 %1145 }
 0x317   : > { %1210 = vrot.lane.b32.xlu1 %v1154_v32, %s3594_s28  ;;  %1206 = vrot.lane.b32.xlu0 %v1146_v20, %s3594_s28  ;;  %v1153_v0 = vsel %vm563_vm4, %v1146_v20, %v1148_v2  ;;  %v3423_v32 = vunpack.i.h.bf16 %v4083_v15  ;;  %v1108_v20 = vsel %vm563_vm4, %v4090_v26, %v1100_v52  ;;  %v3412_v15 = vunpack.i.l.bf16 %v4079_v12 }
 0x318   : > { %v3417_v12 = vunpack.i.l.bf16 %v4081_v13 }
 0x31a   : > { %v4118_v35 = vpop.permute.xlu1 %1314  ;;  %v1104_v37 = vpop.permute.xlu0 %1103 }
 0x31b   : > { %1332 = vrot.lane.b32.xlu1 %v1088_v42, %s3595_s16  ;;  %1196 = vrot.lane.b32.xlu0 %v1088_v42, %s3594_s28  ;;  %v1109_v18 = vsel %vm563_vm4, %v3413_v17, %v1104_v37  ;;  %v1434_v17 = vsel %vm5208_vm15, %v3993_v40, 0  ;;  %vm1731_vm15 = vcmask 15360  }
 0x31e   : > { %v4123_v45 = vpop.permute.xlu1 %3430  ;;  %v1458_v59 = vpop.permute.xlu0 %1457 }
 0x31f   : > { %1330 = vrot.lane.b32.xlu1 %v1087_v47, %s3595_s16  ;;  %1324 = vrot.lane.b32.xlu0 %v1085_v53, %s3595_s16  ;;  %v1431_v53 = vsel %vm5207_vm2, %v3945_v6, 0  ;;  %v3427_v6 = vunpack.i.l.bf16 %v4108_v4  ;;  %vm1236_vm2 = vcmask 785408  }
 0x322   : > { %v1106_v63 = vpop.permute.xlu1 %1105  ;;  %v1185_v9 = vpop.permute.xlu0 %1184 }
 0x323   : > { %1340 = vrot.lane.b32.xlu1 %v1100_v52, %s3595_s16  ;;  %1208 = vrot.lane.b32.xlu0 %v1153_v0, %s3594_s28  ;;  %v1214_v2 = vsel %vm586_vm9, %v3423_v32, %v1185_v9  ;;  %v1110_v25 = vsel %vm563_vm4, %v1104_v37, %v1106_v63  ;;  %v1435_v52 = vsel %vm823_vm5, %v4007_v44, 0  ;;  %v1462_v37 = vsel %vm551_vm0, %v4092_v27, %v3417_v12 }
 0x324   : > { %v1461_v44 = vsel %vm551_vm0, %v4085_v19, %v4092_v27  ;;  %v1463_v0 = vsel %vm551_vm0, %v4103_v57, %v1458_v59  ;;  %v3428_v27 = vunpack.i.h.bf16 %v4108_v4  ;;  %v1484_v32 = vsel %vm563_vm4, %v4110_v5, %v3427_v6 }
 0x326   : > { %v1187_v51 = vpop.permute.xlu1 %1186  ;;  %v1472_v11 = vpop.permute.xlu0 %1471 }
 0x327   : > { %1342 = vrot.lane.b32.xlu1 %v1109_v18, %s3595_s16  ;;  %1334 = vrot.lane.b32.xlu0 %v1084_v3, %s3595_s16  ;;  %v1215_v42 = vsel %vm586_vm9, %v1185_v9, %v1187_v51  ;;  %v1107_v3 = vsel %vm563_vm4, %v3412_v15, %v4090_v26  ;;  %v1432_v26 = vsel %vm823_vm5, %v3957_v16, 0  ;;  %v3418_v16 = vunpack.i.h.bf16 %v4081_v13  ;;  %v1635_v51 = vld [vmem:[%s5188_s5] sm:$0xff]  ;;  %v1637_v18 = vld [vmem:[%s5188_s5 + $0x10] sm:$0xff] }
 0x328   : > { %1245 = vmatprep.subr.bf16.mxu1 %v1215_v42  ;;  %v1483_v4 = vsel %vm563_vm4, %v1472_v11, %v4110_v5  ;;  %v1670_v5 = vld [vmem:[%s5189_s6 + $0x18] sm:$0xff]  ;;  %v1668_v42 = vld [vmem:[%s5189_s6 + $0x8] sm:$0xff] }
 0x329   : > { %1246 = vmatpush1.bf16.msra.mxu1 %v1214_v2  ;;  %v1464_v9 = vsel %vm551_vm0, %v1458_v59, %v3418_v16  ;;  %v1638_v59 = vld [vmem:[%s5188_s5 + $0x18] sm:$0xff]  ;;  %v1669_v2 = vld [vmem:[%s5189_s6 + $0x10] sm:$0xff] }
 0x32a   : > { %v4161_v47 = vpop.permute.xlu0 %1316 }
 0x32b   : > { %3435 = vrot.lane.b32.xlu1 %v3592_v1, %s3593_s27  ;;  %1338 = vrot.lane.b32.xlu0 %v1108_v20, %s3595_s16  ;;  %v1323_v20 = vpop.permute.xlu1 %1322 }
 0x32f   : > { %1344 = vrot.lane.b32.xlu1 %v1110_v25, %s3595_s16  ;;  %1336 = vrot.lane.b32.xlu0 %v1107_v3, %s3595_s16 }
 0x333   : > { %1516 = vrot.lane.b32.xlu1 %v1435_v52, %s3593_s27  ;;  %1346 = vrot.lane.b32.xlu0 %v1106_v63, %s3595_s16  ;;  %v4174_v63 = vpop.permute.xlu0 %1320 }
 0x337   : > { %1522 = vrot.lane.b32.xlu1 %v1462_v37, %s3593_s27  ;;  %1510 = vrot.lane.b32.xlu0 %v1432_v26, %s3593_s27  ;;  %v1480_v19 = vpop.permute.xlu0 %1479 }
 0x338   : > { %v1486_v57 = vsel %vm563_vm4, %v1480_v19, %v3428_v27  ;;  %v1485_v40 = vsel %vm563_vm4, %v4113_v10, %v1480_v19  ;;  %v1667_v10 = vld [vmem:[%s5189_s6] sm:$0xff] }
 0x33b   : > { %1520 = vrot.lane.b32.xlu1 %v1461_v44, %s3593_s27  ;;  %1508 = vrot.lane.b32.xlu0 %v1431_v53, %s3593_s27 }
 0x33f   : > { %1526 = vrot.lane.b32.xlu1 %v1463_v0, %s3593_s27  ;;  %1514 = vrot.lane.b32.xlu0 %v1434_v17, %s3593_s27 }
 0x343   : > { %1536 = vrot.lane.b32.xlu1 %v3427_v6, %s3593_s27  ;;  %3440 = vrot.lane.b32.xlu0 %v4081_v13, %s3593_s27  ;;  %v1636_v13 = vld [vmem:[%s5188_s5 + $0x8] sm:$0xff] }
 0x347   : > { %1540 = vrot.lane.b32.xlu1 %v1486_v57, %s3593_s27  ;;  %1528 = vrot.lane.b32.xlu0 %v1464_v9, %s3593_s27 }
 0x34b   : > { %1538 = vrot.lane.b32.xlu1 %v1485_v40, %s3593_s27  ;;  %1534 = vrot.lane.b32.xlu0 %v1484_v32, %s3593_s27 }
 0x34f   : > { %1646 = vperm.xlu1 %3398, %v1636_v13   ;;  %1532 = vrot.lane.b32.xlu0 %v1483_v4, %s3593_s27 }
 0x353   : > { %1673 = vperm.xlu1 %3398, %v1667_v10   ;;  %1542 = vrot.lane.b32.xlu0 %v3428_v27, %s3593_s27 }
 0x357   : > { %1656 = vperm.xlu1 %3398, %v1638_v59   ;;  %1641 = vperm.xlu0 %3397, %v1635_v51  }
 0x35b   : > { %1688 = vperm.xlu1 %3398, %v1670_v5   ;;  %1651 = vperm.xlu0 %3397, %v1637_v18   ;;  %v3432_v18 = vunpack.i.l.bf16 %v4123_v45 }
 0x35f   : > { %1678 = vperm.xlu0 %3397, %v1668_v42   ;;  %v3540_v42 = vld [vmem:[%s5187_s4 + $0x10] sm:$0xff]  }
 0x363   : > { %1683 = vperm.xlu0 %3397, %v1669_v2   ;;  %v1349_v2 = vsel %vm744_vm10, %v4118_v35, %v4161_v47 }
 0x369   : > { %v1189_v15 = vpop.permute.xlu1 %1188 }
 0x36d   : > { %v1201_v25 = vpop.permute.xlu1 %1200  ;;  %v1193_v3 = vpop.permute.xlu0 %1192 }
 0x371   : > { %v1191_v11 = vpop.permute.xlu1 %1190  ;;  %v1327_v37 = vpop.permute.xlu0 %1326 }
 0x372   : > { %v1217_v52 = vsel %vm586_vm9, %v1191_v11, %v1193_v3  ;;  %v1216_v12 = vsel %vm586_vm9, %v1189_v15, %v1191_v11  ;;  %v3433_v3 = vunpack.i.h.bf16 %v4123_v45  ;;  %v1348_v11 = vsel %vm744_vm10, %v3432_v18, %v4118_v35  ;;  %v3541_v45 = vld [vmem:[%s5187_s4 + $0x18] sm:$0xff]  }
 0x373   : > { %1247 = vmatprep.subr.bf16.mxu1 %v1217_v52  ;;  %v1351_v52 = vsel %vm744_vm10, %v4174_v63, %v1323_v20 }
 0x374   : > { %1248 = vmatpush1.bf16.msra.mxu1 %v1216_v12 }
 0x376   : > { %v1203_v26 = vpop.permute.xlu1 %1202  ;;  %v1205_v44 = vpop.permute.xlu0 %1204 }
 0x377   : > { %v1221_v40 = vsel %vm586_vm9, %v1203_v26, %v1205_v44  ;;  %v1220_v4 = vsel %vm586_vm9, %v1201_v25, %v1203_v26  ;;  %v1350_v26 = vsel %vm744_vm10, %v3433_v3, %v4174_v63  ;;  %v3543_v3 = vld [vmem:[%s5187_s4 + $0x8] sm:$0xff]  }
 0x37a   : > { %v1195_v16 = vpop.permute.xlu0 %1194 }
 0x381   : > { %v1199_v53 = vpop.permute.xlu1 %1198 }
 0x385   : > { %v1329_v0 = vpop.permute.xlu1 %1328 }
 0x386   : > { %v1353_v44 = vsel %vm744_vm10, %v1327_v37, %v1329_v0 }
 0x389   : > { %v1211_v17 = vpop.permute.xlu1 %1210  ;;  %v1207_v6 = vpop.permute.xlu0 %1206 }
 0x38d   : > { %v1333_v19 = vpop.permute.xlu1 %1332  ;;  %v1197_v27 = vpop.permute.xlu0 %1196 }
 0x38e   : > { %v1219_v57 = vsel %vm586_vm9, %v1197_v27, %v1199_v53  ;;  %v1218_v9 = vsel %vm586_vm9, %v1195_v16, %v1197_v27 }
 0x38f   : > { %1249 = vmatprep.subr.bf16.mxu1 %v1219_v57 }
 0x390   : > { %1250 = vmatpush1.bf16.msra.mxu1 %v1218_v9 }
 0x391   : > { %1251 = vmatprep.subr.bf16.mxu1 %v1221_v40  ;;  %v1331_v32 = vpop.permute.xlu1 %1330  ;;  %v1325_v13 = vpop.permute.xlu0 %1324 }
 0x392   : > { %v1352_v20 = vsel %vm744_vm10, %v1325_v13, %v1327_v37 }
 0x394   : > { %1252 = vmatpush1.bf16.msra.mxu1 %v1220_v4 }
 0x395   : > { %v1341_v10 = vpop.permute.xlu1 %1340  ;;  %v1209_v59 = vpop.permute.xlu0 %1208 }
 0x396   : > { %v1223_v51 = vsel %vm586_vm9, %v1209_v59, %v1211_v17  ;;  %v1222_v5 = vsel %vm586_vm9, %v1207_v6, %v1209_v59  ;;  %v1354_v6 = vsel %vm744_vm10, %v1331_v32, %v1333_v19 }
 0x397   : > { %1253 = vmatprep.subr.bf16.mxu1 %v1223_v51 }
 0x398   : > { %1254 = vmatpush1.bf16.msra.mxu1 %v1222_v5 }
 0x399   : > { %v1343_v15 = vpop.permute.xlu1 %1342  ;;  %1378 = vmatprep.subr.bf16.mxu1 %v1349_v2  ;;  %v1335_v25 = vpop.permute.xlu0 %1334 }
 0x39a   : > { %v1355_v16 = vsel %vm744_vm10, %v1333_v19, %v1335_v25  ;;  %v3542_v19 = vld [vmem:[%s5187_s4] sm:$0xff]  }
 0x39b   : > { %3247 = vmatmul.mubr.msk.bf16.vlgmr.msra.gmra.mrb[8].mxu1 %vm1236_vm2, %v3540_v42 }
 0x39c   : > { %1379 = vmatpush1.bf16.msra.mxu1 %v1348_v11  ;;  %1285 = vmatprep.mubr.bf16.mxu1 %v3592_v1 }
 0x39d   : > { %v3436_v12 = vpop.permute.xlu1 %3435  ;;  %1380 = vmatprep.subr.bf16.mxu1 %v1351_v52  ;;  %v1339_v47 = vpop.permute.xlu0 %1338 }
 0x39e   : > { %v1357_v0 = vsel %vm744_vm10, %v1339_v47, %v1341_v10  ;;  %v3437_v9 = vunpack.i.l.bf16 %v3436_v12  ;;  %v3438_v32 = vunpack.i.h.bf16 %v3436_v12 }
 0x3a0   : > { %1381 = vmatpush1.bf16.msra.mxu1 %v1350_v26 }
 0x3a1   : > { %v1345_v35 = vpop.permute.xlu1 %1344  ;;  %1382 = vmatprep.subr.bf16.mxu1 %v1353_v44  ;;  %v1337_v53 = vpop.permute.xlu0 %1336 }
 0x3a2   : > { %v1356_v37 = vsel %vm744_vm10, %v1337_v53, %v1339_v47  ;;  %v1358_v59 = vsel %vm744_vm10, %v1343_v15, %v1345_v35 }
 0x3a3   : > { %3248 = vmatmul.mubr.msk.bf16.gmra.mrb[12].mxu1 %vm1236_vm2, %v3541_v45 }
 0x3a4   : > { %1383 = vmatpush1.bf16.msra.mxu1 %v1352_v20  ;;  %1410 = vmatprep.mubr.bf16.mxu1 %v3592_v1 }
 0x3a5   : > { %v1517_v63 = vpop.permute.xlu1 %1516  ;;  %1384 = vmatprep.subr.bf16.mxu1 %v1355_v16  ;;  %v1347_v17 = vpop.permute.xlu0 %1346 }
 0x3a6   : > { %v1359_v40 = vsel %vm744_vm10, %v1345_v35, %v1347_v17  ;;  %v1547_v42 = vsel %vm534_vm6, %v1517_v63, %v3438_v32 }
 0x3a8   : > { %1385 = vmatpush1.bf16.msra.mxu1 %v1354_v6 }
 0x3a9   : > { %v1523_v27 = vpop.permute.xlu1 %1522  ;;  %1386 = vmatprep.subr.bf16.mxu1 %v1357_v0  ;;  %v1511_v57 = vpop.permute.xlu0 %1510 }
 0x3aa   : > { %v1545_v10 = vsel %vm534_vm6, %v1511_v57, %v3437_v9 }
 0x3ac   : > { %1387 = vmatpush1.bf16.msra.mxu1 %v1356_v37  ;;  %v3545_v37 = vld [vmem:[%s5187_s4 + $0x28] sm:$0xff]  }
 0x3ad   : > { %v1521_v13 = vpop.permute.xlu1 %1520  ;;  %1388 = vmatprep.subr.bf16.mxu1 %v1359_v40  ;;  %v1509_v4 = vpop.permute.xlu0 %1508 }
 0x3ae   : > { %v1544_v18 = vsel %vm534_vm6, %v1509_v4, %v1511_v57  ;;  %v1548_v26 = vsel %vm534_vm6, %v1521_v13, %v1523_v27  ;;  %v3544_v57 = vld [vmem:[%s5187_s4 + $0x20] sm:$0xff]  }
 0x3b0   : > { %1389 = vmatpush1.bf16.msra.mxu1 %v1358_v59 }
 0x3b1   : > { %1574 = vmatprep.subr.bf16.mxu1 %v1545_v10  ;;  %v1515_v51 = vpop.permute.xlu0 %1514  ;;  %v1527_v5 = vpop.permute.xlu1 %1526 }
 0x3b2   : > { %v1546_v25 = vsel %vm534_vm6, %v1515_v51, %v1517_v63 }
 0x3b3   : > { %3251 = vmatmul.mubr.msk.bf16.vlgmr.msra.gmra.mrb[8].mxu1 %vm1236_vm2, %v3542_v19 }
 0x3b4   : > { %1575 = vmatpush1.bf16.msra.mxu1 %v1544_v18  ;;  %1420 = vmatprep.mubr.bf16.mxu1 %v3592_v1 }
 0x3b5   : > { %1576 = vmatprep.subr.bf16.mxu1 %v1547_v42  ;;  %v3441_v2 = vpop.permute.xlu0 %3440  ;;  %v1537_v11 = vpop.permute.xlu1 %1536 }
 0x3b6   : > { %v3442_v15 = vunpack.i.l.bf16 %v3441_v2  ;;  %v3443_v47 = vunpack.i.h.bf16 %v3441_v2 }
 0x3b8   : > { %1577 = vmatpush1.bf16.msra.mxu1 %v1546_v25  ;;  %v1549_v52 = vsel %vm534_vm6, %v1523_v27, %v3442_v15 }
 0x3b9   : > { %v1529_v12 = vpop.permute.xlu0 %1528  ;;  %1578 = vmatprep.subr.bf16.mxu1 %v1549_v52  ;;  %v1541_v35 = vpop.permute.xlu1 %1540 }
 0x3ba   : > { %v1551_v45 = vsel %vm534_vm6, %v1529_v12, %v3443_v47  ;;  %v1550_v53 = vsel %vm534_vm6, %v1527_v5, %v1529_v12 }
 0x3bb   : > { %3252 = vmatmul.mubr.msk.bf16.gmra.mrb[12].mxu1 %vm1236_vm2, %v3543_v3 }
 0x3bc   : > { %1579 = vmatpush1.bf16.msra.mxu1 %v1548_v26  ;;  %1606 = vmatprep.mubr.bf16.mxu1 %v3592_v1 }
 0x3bd   : > { %v1535_v44 = vpop.permute.xlu0 %1534  ;;  %1580 = vmatprep.subr.bf16.mxu1 %v1551_v45  ;;  %v1539_v17 = vpop.permute.xlu1 %1538 }
 0x3be   : > { %v1553_v20 = vsel %vm534_vm6, %v1535_v44, %v1537_v11  ;;  %v1554_v27 = vsel %vm534_vm6, %v1539_v17, %v1541_v35 }
 0x3c0   : > { %1581 = vmatpush1.bf16.msra.mxu1 %v1550_v53 }
 0x3c1   : > { %v1533_v16 = vpop.permute.xlu0 %1532  ;;  %1582 = vmatprep.subr.bf16.mxu1 %v1553_v20 }
 0x3c2   : > { %v1552_v63 = vsel %vm534_vm6, %v1533_v16, %v1535_v44 }
 0x3c4   : > { %1583 = vmatpush1.bf16.msra.mxu1 %v1552_v63 }
 0x3c5   : > { %v1543_v6 = vpop.permute.xlu0 %1542 }
 0x3c6   : > { %v1555_v0 = vsel %vm534_vm6, %v1541_v35, %v1543_v6 }
 0x3c7   : > { %1584 = vmatprep.subr.bf16.mxu1 %v1555_v0 }
 0x3c8   : > { %1585 = vmatpush1.bf16.msra.mxu1 %v1554_v27 }
 0x3cb   : > { %3259 = vmatmul.mubr.msk.bf16.vlgmr.msra.gmra.mrb[8].mxu1 %vm1236_vm2, %v3544_v57 }
 0x3cc   : > { %1616 = vmatprep.mubr.bf16.mxu1 %v3592_v1 }
 0x3ce   : > { %v1647_v40 = vpop.permute.xlu1 %1646 }
 0x3d2   : > { %v1674_v4 = vpop.permute.xlu1 %1673 }
 0x3d3   : > { %3260 = vmatmul.mubr.msk.bf16.gmra.mrb[12].mxu1 %vm1236_vm2, %v3545_v37 }
 0x3d4   : > { %2858 = vmatprep.mubr.bf16.mxu1 %v3592_v1 }
 0x3d6   : > { %v1642_v9 = vpop.permute.xlu0 %1641  ;;  %v1657_v52 = vpop.permute.xlu1 %1656 }
 0x3da   : > { %v1652_v13 = vpop.permute.xlu0 %1651  ;;  %v1689_v37 = vpop.permute.xlu1 %1688 }
 0x3de   : > { %v1679_v2 = vpop.permute.xlu0 %1678 }
 0x3e2   : > { %v1684_v16 = vpop.permute.xlu0 %1683 }
 0x49e   : > { %v1608_v59 = vpop.f32.mrb[8].mxu1 }
 0x49f   : > { %v1659_v19 = vmul.f32 %v1642_v9, %v1608_v59  ;;  %v1610_v32 = vpop.f32.mrb[9].mxu1 }
 0x4a0   : > { %v1660_v10 = vmul.f32 %v1642_v9, %v1610_v32  ;;  %v1612_v51 = vpop.f32.mrb[10].mxu1 }
 0x4a1   : > { %v4295_v5 = vadd.f32 %v1674_v4, %v1659_v19  ;;  %v1661_v18 = vmul.f32 %v1647_v40, %v1612_v51  ;;  %v1614_v42 = vpop.f32.mrb[11].mxu1 }
 0x4a2   : > { %v4297_v15 = vadd.f32 %v1674_v4, %v1660_v10  ;;  %v1662_v25 = vmul.f32 %v1647_v40, %v1614_v42 }
 0x4a3   : > { %v1699_v3 = vmax.f32 %v4295_v5, 0.0  ;;  %v4300_v11 = vadd.f32 %v1679_v2, %v1661_v18 }
 0x4a4   : > { %v1700_v12 = vmax.f32 %v4297_v15, 0.0  ;;  %v4303_v47 = vadd.f32 %v1679_v2, %v1662_v25 }
 0x4a5   : > { %v1701_v26 = vmax.f32 %v4300_v11, 0.0 }
 0x4a6   : > { %v1702_v45 = vmax.f32 %v4303_v47, 0.0  ;;  %v1618_v44 = vpop.f32.mrb[12].mxu1  ;;  %v1707_v35 = vadd.f32 %v1700_v12, %v1699_v3 }
 0x4a7   : > { %v1663_v53 = vmul.f32 %v1652_v13, %v1618_v44  ;;  %v1620_v20 = vpop.f32.mrb[13].mxu1 }
 0x4a8   : > { %v1664_v63 = vmul.f32 %v1652_v13, %v1620_v20  ;;  %1708 = vadd.xlane.f32.xlu0 %v1707_v35  ;;  %v1622_v17 = vpop.f32.mrb[14].mxu1  ;;  %v1710_v6 = vadd.f32 %v1702_v45, %v1701_v26  ;;  %v1723_v35 = vld [vmem:[%s5190_s7] sm:$0xff]  ;;  %v1725_v20 = vld [vmem:[%s5190_s7 + $0x10] sm:$0xff] }
 0x4a9   : > { %v4315_v0 = vadd.f32 %v1684_v16, %v1663_v53  ;;  %v1665_v27 = vmul.f32 %v1657_v52, %v1622_v17  ;;  %v1624_v57 = vpop.f32.mrb[15].mxu1 }
 0x4aa   : > { %v4317_v9 = vadd.f32 %v1684_v16, %v1664_v63  ;;  %v1666_v40 = vmul.f32 %v1657_v52, %v1624_v57  ;;  %1711 = vadd.xlane.f32.xlu1 %v1710_v6  ;;  %v1724_v52 = vld [vmem:[%s5190_s7 + $0x8] sm:$0xff]  ;;  %v1726_v57 = vld [vmem:[%s5190_s7 + $0x18] sm:$0xff] }
 0x4ab   : > { %v1703_v4 = vmax.f32 %v4315_v0, 0.0  ;;  %v4320_v59 = vadd.f32 %v1689_v37, %v1665_v27 }
 0x4ac   : > { %v1704_v13 = vmax.f32 %v4317_v9, 0.0  ;;  %v4323_v19 = vadd.f32 %v1689_v37, %v1666_v40 }
 0x4ad   : > { %v1705_v32 = vmax.f32 %v4320_v59, 0.0 }
 0x4ae   : > { %v1706_v10 = vmax.f32 %v4323_v19, 0.0  ;;  %v1713_v51 = vadd.f32 %v1704_v13, %v1703_v4 }
 0x4b0   : > { %1714 = vadd.xlane.f32.xlu0 %v1713_v51  ;;  %v1716_v18 = vadd.f32 %v1706_v10, %v1705_v32 }
 0x4b4   : > { %1717 = vadd.xlane.f32.xlu0 %v1716_v18 }
 0x535   : > { %v1709_v42 = vpop.xlane.xlu0 %1708 }
 0x536   : > { %v1719_v44 = vmul.f32 0.00390625, %v1709_v42 }
 0x537   : > { %v1712_v2 = vpop.xlane.xlu1 %1711 }
 0x538   : > { %v1720_v25 = vmul.f32 0.00390625, %v1712_v2  ;;  %v1727_v63 = vmul.f32 %v1723_v35, %v1719_v44 }
 0x53a   : > { %v1728_v53 = vmul.f32 %v1724_v52, %v1720_v25  ;;  %v1732_v40 = vsel %vm1731_vm15, %v1727_v63, 0.0 }
 0x53c   : > { %v1733_v6 = vsel %vm1731_vm15, %v1728_v53, 0.0 }
 0x53d   : > { %v1715_v16 = vpop.xlane.xlu0 %1714  ;;  %v1734_v42 = vadd.f32 %v1733_v6, %v1732_v40  ;;  %v1749_v6 = vld [vmem:[%s5192_s9 + $0x8] sm:$0xff]  ;;  %v1750_v40 = vld [vmem:[%s5192_s9 + $0x10] sm:$0xff] }
 0x53e   : > { %v1721_v17 = vmul.f32 0.00390625, %v1715_v16 }
 0x540   : > { %v1729_v27 = vmul.f32 %v1725_v20, %v1721_v17 }
 0x541   : > { %v1718_v37 = vpop.xlane.xlu0 %1717 }
 0x542   : > { %v1735_v51 = vsel %vm1731_vm15, %v1729_v27, 0.0  ;;  %v1722_v18 = vmul.f32 0.00390625, %v1718_v37  ;;  %v1748_v27 = vld [vmem:[%s5192_s9] sm:$0xff]  ;;  %v1751_v37 = vld [vmem:[%s5192_s9 + $0x18] sm:$0xff] }
 0x543   : > { %v1736_v25 = vadd.f32 %v1735_v51, %v1734_v42 }
 0x544   : > { %v1730_v2 = vmul.f32 %v1726_v57, %v1722_v18 }
 0x546   : > { %v1737_v52 = vsel %vm1731_vm15, %v1730_v2, 0.0 }
 0x547   : > { %v1738_v44 = vadd.f32 %v1737_v52, %v1736_v25  ;;  %v1773_v52 = vld [vmem:[%s5193_s10 + $0x8] sm:$0xff] }
 0x549   : > { %v1739_v35 = vrot.slane %v1738_v44, 4 }
 0x54b   : > { %v1740_v16 = vadd.f32 %v1739_v35, %v1738_v44  ;;  %v1772_v44 = vld [vmem:[%s5193_s10] sm:$0xff] }
 0x54d   : > { %v1741_v53 = vrot.slane %v1740_v16, 2 }
 0x54f   : > { %v1742_v20 = vadd.f32 %v1741_v53, %v1740_v16 }
 0x551   : > { %v1743_v17 = vrot.slane %v1742_v20, 1 }
 0x553   : > { %v1744_v33 = vadd.f32 %v1743_v17, %v1742_v20  ;;  %v1775_v17 = vld [vmem:[%s5193_s10 + $0x18] sm:$0xff] }
 0x555   : > { %v1746_v63 = vadd.f32 %v1745_v41, %v1744_v33 }
 0x557   : > { %v1747_v43 = vmax.f32 %v1746_v63, 0.0  ;;  %v1774_v63 = vld [vmem:[%s5193_s10 + $0x10] sm:$0xff] }
 0x559   : > { %v1755_v57 = vrot.slane %v1747_v43, %v3682_v7 }
 0x55b   : > { %v1757_v33 = vmul.f32 %v1755_v57, %v1749_v6  ;;  %v1756_v41 = vmul.f32 %v1755_v57, %v1748_v27  ;;  %v1759_v42 = vmul.f32 %v1755_v57, %v1751_v37  ;;  %v1758_v2 = vmul.f32 %v1755_v57, %v1750_v40 }
 0x55d   : > { %v1763_v51 = vsel %vm1731_vm15, %v1757_v33, 0.0  ;;  %v1760_v18 = vsel %vm1731_vm15, %v1756_v41, 0.0  ;;  %v1769_v43 = vsel %vm1731_vm15, %v1759_v42, 0.0  ;;  %v1766_v25 = vsel %vm1731_vm15, %v1758_v2, 0.0 }
 0x55e   : > { %1764 = vadd.xlane.f32.xlu0 %v1763_v51  ;;  %1761 = vadd.xlane.f32.xlu1 %v1760_v18 }
 0x562   : > { %1770 = vadd.xlane.f32.xlu0 %v1769_v43  ;;  %1767 = vadd.xlane.f32.xlu1 %v1766_v25 }
 0x5eb   : > { %v1765_v35 = vpop.xlane.xlu0 %1764  ;;  %v1762_v16 = vpop.xlane.xlu1 %1761 }
 0x5ec   : > { %v1777_v53 = vadd.f32 %v1773_v52, %v1765_v35  ;;  %v1776_v20 = vadd.f32 %v1772_v44, %v1762_v16 }
 0x5ee   : > { %v3262_v6 = vmul.f32 -1.442695, %v1777_v53  ;;  %v3261_v27 = vmul.f32 -1.442695, %v1776_v20 }
 0x5ef   : > { %v1771_v57 = vpop.xlane.xlu0 %1770  ;;  %v1768_v37 = vpop.xlane.xlu1 %1767 }
 0x5f0   : > { %3552 = vpow2.f32 %v3262_v6  ;;  %v1779_v40 = vadd.f32 %v1775_v17, %v1771_v57  ;;  %v1778_v33 = vadd.f32 %v1774_v63, %v1768_v37 }
 0x5f1   : > { %3554 = vpow2.f32 %v3261_v27 }
 0x5f2   : > { %v3264_v41 = vmul.f32 -1.442695, %v1779_v40  ;;  %v3263_v51 = vmul.f32 -1.442695, %v1778_v33 }
 0x5f4   : > { %3556 = vpow2.f32 %v3264_v41 }
 0x5f5   : > { %3558 = vpow2.f32 %v3263_v51 }
 0x5fa   : > { %v3553_v18 = vpop.eup %3552 }
 0x5fb   : > { %v3555_v42 = vpop.eup %3554  ;;  %v1793_v2 = vadd.f32 1.0, %v3553_v18 }
 0x5fc   : > { %v1792_v43 = vadd.f32 1.0, %v3555_v42 }
 0x5fd   : > { %3560 = vrcp.f32 %v1793_v2 }
 0x5fe   : > { %v3557_v25 = vpop.eup %3556  ;;  %3562 = vrcp.f32 %v1792_v43 }
 0x5ff   : > { %v3559_v52 = vpop.eup %3558  ;;  %v1795_v35 = vadd.f32 1.0, %v3557_v25 }
 0x600   : > { %v1794_v44 = vadd.f32 1.0, %v3559_v52 }
 0x602   : > { %3564 = vrcp.f32 %v1794_v44 }
 0x603   : > { %3566 = vrcp.f32 %v1795_v35 }
 0x607   : > { %v3561_v16 = vpop.eup %3560 }
 0x608   : > { %v3563_v53 = vpop.eup %3562  ;;  %1811 = vperm.xlu0 %3397, %v3561_v16  }
 0x609   : > { %1806 = vperm.xlu1 %3398, %v3563_v53  }
 0x60c   : > { %v3565_v20 = vpop.eup %3564  ;;  %3445 = vrot.lane.b32.xlu0 %v3592_v1, %s3598_s19 }
 0x60d   : > { %1816 = vperm.xlu1 %3398, %v3565_v20   ;;  %v3567_v17 = vpop.eup %3566 }
 0x610   : > { %3455 = vrot.lane.b32.xlu0 %v3592_v1, %s3598_s19 }
 0x611   : > { %1821 = vperm.xlu1 %3398, %v3567_v17  }
 0x614   : > { %3460 = vrot.lane.b32.xlu0 %v3592_v1, %s3597_s18 }
 0x615   : > { %3450 = vrot.lane.b32.xlu1 %v3592_v1, %s3597_s18 }
 0x618   : > { %3465 = vrot.lane.b32.xlu0 %v3592_v1, %s3594_s28 }
 0x61c   : > { %3470 = vrot.lane.b32.xlu0 %v3592_v1, %s3598_s19 }
 0x620   : > { %3475 = vrot.lane.b32.xlu0 %v3592_v1, %s3595_s16 }
 0x687   : > { %v1812_v63 = vpop.permute.xlu0 %1811 }
 0x688   : > { %v1826_v6 = vmul.f32 %v1812_v63, %v1701_v26  ;;  %v1827_v27 = vmul.f32 %v1812_v63, %v1702_v45  ;;  %v1807_v57 = vpop.permute.xlu1 %1806  ;;  %v5211_v45 = vmax.f32 %v3976_v34, 0.0 }
 0x689   : > { %v1824_v37 = vmul.f32 %v1807_v57, %v1699_v3  ;;  %v1825_v40 = vmul.f32 %v1807_v57, %v1700_v12  ;;  %v5210_v12 = vmax.f32 %v3965_v21, 0.0 }
 0x68a   : > { %v4407_v33 = vadd.f32 %v1826_v6, %v1035_v62  ;;  %v4411_v41 = vadd.f32 %v1827_v27, %v1036_v8 }
 0x68b   : > { %v4415_v11 = vadd.f32 %v1824_v37, %v1033_v60  ;;  %v4419_v47 = vadd.f32 %v1825_v40, %v1034_v14  ;;  %v5209_v14 = vmax.f32 %v3987_v39, 0.0  ;;  %v3446_v53 = vpop.permute.xlu0 %3445 }
 0x68c   : > { %v1817_v5 = vpop.permute.xlu1 %1816 }
 0x68d   : > { %v4423_v15 = vpack.c.bf16 %v4407_v33, %v4415_v11  ;;  %v4427_v54 = vpack.c.bf16 %v4411_v41, %v4419_v47  ;;  %v1828_v55 = vmul.f32 %v1817_v5, %v1703_v4  ;;  %v1829_v46 = vmul.f32 %v1817_v5, %v1704_v13 }
 0x68f   : > { %1876 = vrot.lane.b32.xlu1 %v4427_v54, %s3597_s18  ;;  %1874 = vrot.lane.b32.xlu0 %v4423_v15, %s3597_s18  ;;  %v4443_v8 = vadd.f32 %v1828_v55, %v1037_v38  ;;  %v4447_v3 = vadd.f32 %v1829_v46, %v5209_v14  ;;  %v1927_v21 = vsel %vm588_vm12, %v4423_v15, 0  ;;  %v1928_v38 = vsel %vm5203_vm11, %v4427_v54, 0  ;;  %v4557_v20 = vpop.permute.xlu0 %3455 }
 0x690   : > { %v1822_v60 = vpop.permute.xlu1 %1821  ;;  %v1861_v39 = vsel %vm537_vm8, %v4423_v15, 0  ;;  %v1862_v19 = vsel %vm5204_vm7, %v4427_v54, 0  ;;  %v1917_v18 = vsel %vm577_vm1, %v4427_v54, 0  ;;  %v1855_v42 = vsel %vm511_vm3, %v4423_v15, 0 }
 0x691   : > { %v1830_v61 = vmul.f32 %v1822_v60, %v1705_v32  ;;  %v1831_v62 = vmul.f32 %v1822_v60, %v1706_v10  ;;  %v2237_v25 = vsel %vm834_vm13, %v4427_v54, 0  ;;  %v2236_v52 = vsel %vm833_vm14, %v4423_v15, 0 }
 0x693   : > { %v4451_v26 = vadd.f32 %v1830_v61, %v5210_v12  ;;  %v4455_v0 = vadd.f32 %v1831_v62, %v5211_v45  ;;  %v4559_v17 = vpop.permute.xlu0 %3460 }
 0x694   : > { %v3451_v57 = vpop.permute.xlu1 %3450 }
 0x695   : > { %v4459_v9 = vpack.c.bf16 %v4451_v26, %v4443_v8  ;;  %v4463_v29 = vpack.c.bf16 %v4455_v0, %v4447_v3 }
 0x697   : > { %1882 = vrot.lane.b32.xlu1 %v4463_v29, %s3597_s18  ;;  %1880 = vrot.lane.b32.xlu0 %v4459_v9, %s3597_s18  ;;  %v1931_v34 = vsel %vm5203_vm11, %v4463_v29, 0  ;;  %v1865_v4 = vsel %vm5204_vm7, %v4463_v29, 0  ;;  %v1930_v59 = vsel %vm588_vm12, %v4459_v9, 0  ;;  %vm5212_vm11 = vcmp.ne.s16.totalorder %v3793_v50, 0  ;;  %v4561_v63 = vpop.permute.xlu0 %3465 }
 0x698   : > { %v1916_v13 = vsel %vm5212_vm11, %v4423_v15, 0  ;;  %v1920_v32 = vsel %vm577_vm1, %v4463_v29, 0  ;;  %v1864_v10 = vsel %vm537_vm8, %v4459_v9, 0  ;;  %v2239_v51 = vsel %vm833_vm14, %v4459_v9, 0 }
 0x699   : > { %v1919_v2 = vsel %vm5212_vm11, %v4459_v9, 0  ;;  %vm5213_vm7 = vcmp.ne.s16.totalorder %v3760_v36, 0  ;;  %v2240_v44 = vsel %vm834_vm13, %v4463_v29, 0  ;;  %v1858_v16 = vsel %vm511_vm3, %v4459_v9, 0 }
 0x69a   : > { %v1859_v43 = vsel %vm5213_vm7, %v4463_v29, 0  ;;  %v1856_v35 = vsel %vm5213_vm7, %v4427_v54, 0  ;;  %vm5214_vm11 = vcmp.ne.s16.totalorder %v3787_v48, 0 }
 0x69b   : > { %2250 = vrot.lane.b32.xlu1 %v4427_v54, %s3597_s18  ;;  %2254 = vrot.lane.b32.xlu0 %v4459_v9, %s3597_s18  ;;  %v4563_v6 = vpop.permute.xlu0 %3470  ;;  %vm5215_vm7 = vmmov %vm5214_vm11 }
 0x69f   : > { %2248 = vrot.lane.b32.xlu1 %v4423_v15, %s3597_s18  ;;  %1939 = vrot.lane.b32.xlu0 %v1927_v21, %s3598_s19  ;;  %v4565_v27 = vpop.permute.xlu0 %3475 }
 0x6a3   : > { %2256 = vrot.lane.b32.xlu1 %v4463_v29, %s3597_s18  ;;  %1947 = vrot.lane.b32.xlu0 %v1931_v34, %s3598_s19 }
 0x6a7   : > { %1941 = vrot.lane.b32.xlu1 %v1928_v38, %s3598_s19  ;;  %1896 = vrot.lane.b32.xlu0 %v1861_v39, %s3598_s19 }
 0x6ab   : > { %1904 = vrot.lane.b32.xlu0 %v1865_v4, %s3598_s19  ;;  %1945 = vrot.lane.b32.xlu1 %v1930_v59, %s3598_s19  ;;  %v3448_v4 = vunpack.i.h.bf16 %v3446_v53 }
 0x6af   : > { %1978 = vrot.lane.b32.xlu0 %v1916_v13, %s3594_s28  ;;  %1898 = vrot.lane.b32.xlu1 %v1862_v19, %s3598_s19  ;;  %v3452_v19 = vunpack.i.l.bf16 %v3451_v57 }
 0x6b3   : > { %1986 = vrot.lane.b32.xlu0 %v1920_v32, %s3594_s28  ;;  %1902 = vrot.lane.b32.xlu1 %v1864_v10, %s3598_s19 }
 0x6b7   : > { %2276 = vrot.lane.b32.xlu0 %v2239_v51, %s3598_s19  ;;  %1980 = vrot.lane.b32.xlu1 %v1917_v18, %s3594_s28  ;;  %v3453_v51 = vunpack.i.h.bf16 %v3451_v57 }
 0x6bb   : > { %2113 = vrot.lane.b32.xlu0 %v1855_v42, %s3595_s16  ;;  %1984 = vrot.lane.b32.xlu1 %v1919_v2, %s3594_s28 }
 0x6bf   : > { %2121 = vrot.lane.b32.xlu0 %v1859_v43, %s3595_s16  ;;  %2272 = vrot.lane.b32.xlu1 %v2237_v25, %s3598_s19  ;;  %v3447_v43 = vunpack.i.l.bf16 %v3446_v53 }
 0x6c3   : > { %2270 = vrot.lane.b32.xlu1 %v2236_v52, %s3598_s19  ;;  %v3467_v52 = vunpack.i.l.bf16 %v4561_v63 }
 0x6c7   : > { %2278 = vrot.lane.b32.xlu1 %v2240_v44, %s3598_s19 }
 0x6cb   : > { %2115 = vrot.lane.b32.xlu1 %v1856_v35, %s3595_s16 }
 0x6cf   : > { %2119 = vrot.lane.b32.xlu1 %v1858_v16, %s3595_s16 }
 0x701   : > { %v1875_v37 = vpop.permute.xlu0 %1874  ;;  %v1877_v40 = vpop.permute.xlu1 %1876 }
 0x702   : > { %1988 = vrot.lane.b32.xlu0 %v1875_v37, %s3594_s28  ;;  %1992 = vrot.lane.b32.xlu1 %v1877_v40, %s3594_s28  ;;  %v1885_v12 = vsel %vm551_vm0, %v1875_v37, %v1877_v40  ;;  %v1884_v42 = vsel %vm551_vm0, %v3452_v19, %v1875_v37  ;;  %v3468_v37 = vunpack.i.h.bf16 %v4561_v63  ;;  %v2234_v63 = vsel %vm823_vm5, %v4463_v29, 0 }
 0x703   : > { %v3462_v29 = vunpack.i.l.bf16 %v4559_v17 }
 0x709   : > { %v1881_v5 = vpop.permute.xlu0 %1880  ;;  %v1883_v55 = vpop.permute.xlu1 %1882 }
 0x70a   : > { %1994 = vrot.lane.b32.xlu1 %v1881_v5, %s3594_s28  ;;  %1998 = vrot.lane.b32.xlu0 %v1883_v55, %s3594_s28  ;;  %v1887_v61 = vsel %vm551_vm0, %v1881_v5, %v1883_v55  ;;  %v1886_v2 = vsel %vm551_vm0, %v3453_v51, %v1881_v5 }
 0x70d   : > { %v4571_v46 = vpop.permute.xlu0 %2254  ;;  %v4573_v60 = vpop.permute.xlu1 %2250 }
 0x70e   : > { %1996 = vrot.lane.b32.xlu1 %v1887_v61, %s3594_s28  ;;  %2127 = vrot.lane.b32.xlu0 %v1877_v40, %s3595_s16 }
 0x711   : > { %v1940_v62 = vpop.permute.xlu0 %1939  ;;  %v4578_v14 = vpop.permute.xlu1 %2248 }
 0x712   : > { %1990 = vrot.lane.b32.xlu0 %v1885_v12, %s3594_s28  ;;  %v2260_v19 = vsel %vm551_vm0, %v4578_v14, %v4573_v60  ;;  %v2233_v14 = vsel %vm5215_vm7, %v4459_v9, 0 }
 0x715   : > { %v1948_v45 = vpop.permute.xlu0 %1947  ;;  %v4582_v21 = vpop.permute.xlu1 %2256 }
 0x716   : > { %2000 = vrot.lane.b32.xlu0 %v1940_v62, %s3594_s28  ;;  %v1954_v13 = vsel %vm563_vm4, %v1948_v45, %v3448_v4  ;;  %v2261_v4 = vsel %vm551_vm0, %v4573_v60, %v3462_v29  ;;  %v3472_v60 = vunpack.i.l.bf16 %v4563_v6 }
 0x719   : > { %v1942_v34 = vpop.permute.xlu1 %1941  ;;  %v1897_v39 = vpop.permute.xlu0 %1896 }
 0x71a   : > { %v1951_v38 = vsel %vm563_vm4, %v1940_v62, %v1942_v34  ;;  %v1952_v35 = vsel %vm563_vm4, %v1942_v34, %v3447_v43  ;;  %v2231_v34 = vsel %vm823_vm5, %v4427_v54, 0  ;;  %v3292_v43 = vld [vmem:[%s5188_s5 + $0x38] sm:$0xff] }
 0x71b   : > { %2002 = vrot.lane.b32.xlu0 %v1951_v38, %s3594_s28 }
 0x71d   : > { %v1946_v59 = vpop.permute.xlu1 %1945  ;;  %v1905_v32 = vpop.permute.xlu0 %1904 }
 0x71e   : > { %2006 = vrot.lane.b32.xlu1 %v1946_v59, %s3594_s28  ;;  %v1953_v5 = vsel %vm563_vm4, %v1946_v59, %v1948_v45  ;;  %v3458_v45 = vunpack.i.h.bf16 %v4557_v20  ;;  %v3457_v59 = vunpack.i.l.bf16 %v4557_v20  ;;  %v2262_v20 = vsel %vm551_vm0, %v4571_v46, %v4582_v21 }
 0x71f   : > { %2010 = vrot.lane.b32.xlu0 %v1954_v13, %s3594_s28 }
 0x720   : > { %v1906_v54 = vsel %vm563_vm4, %v3457_v59, %v1897_v39 }
 0x721   : > { %v1899_v10 = vpop.permute.xlu1 %1898  ;;  %v1979_v25 = vpop.permute.xlu0 %1978 }
 0x722   : > { %2125 = vrot.lane.b32.xlu1 %v1885_v12, %s3595_s16  ;;  %v2012_v57 = vsel %vm586_vm9, %v3467_v52, %v1979_v25  ;;  %v1907_v38 = vsel %vm563_vm4, %v1897_v39, %v1899_v10  ;;  %v3463_v39 = vunpack.i.h.bf16 %v4559_v17  ;;  %v3296_v52 = vld [vmem:[%s5189_s6 + $0x38] sm:$0xff] }
 0x723   : > { %2131 = vrot.lane.b32.xlu0 %v1887_v61, %s3595_s16 }
 0x725   : > { %v1903_v18 = vpop.permute.xlu1 %1902  ;;  %v1987_v53 = vpop.permute.xlu0 %1986 }
 0x726   : > { %2123 = vrot.lane.b32.xlu1 %v1884_v42, %s3595_s16  ;;  %v1909_v12 = vsel %vm563_vm4, %v1903_v18, %v1905_v32  ;;  %v2263_v42 = vsel %vm551_vm0, %v4582_v21, %v3463_v39 }
 0x727   : > { %2129 = vrot.lane.b32.xlu0 %v1886_v2, %s3595_s16  ;;  %v3293_v2 = vld [vmem:[%s5189_s6 + $0x20] sm:$0xff] }
 0x729   : > { %v1981_v44 = vpop.permute.xlu1 %1980 }
 0x72a   : > { %2004 = vrot.lane.b32.xlu1 %v1952_v35, %s3594_s28  ;;  %v2013_v16 = vsel %vm586_vm9, %v1979_v25, %v1981_v44  ;;  %v3289_v25 = vld [vmem:[%s5188_s5 + $0x20] sm:$0xff]  ;;  %v3291_v44 = vld [vmem:[%s5188_s5 + $0x30] sm:$0xff]  ;;  %v3294_v35 = vld [vmem:[%s5189_s6 + $0x28] sm:$0xff] }
 0x72b   : > { %2042 = vmatprep.subr.bf16.mxu0 %v2013_v16  ;;  %2139 = vrot.lane.b32.xlu0 %v1899_v10, %s3595_s16  ;;  %v2230_v10 = vsel %vm5214_vm11, %v4423_v15, 0  ;;  %v3473_v15 = vunpack.i.h.bf16 %v4563_v6  ;;  %v3290_v6 = vld [vmem:[%s5188_s5 + $0x28] sm:$0xff]  ;;  %v3295_v16 = vld [vmem:[%s5189_s6 + $0x30] sm:$0xff]  ;;  %vm5217_vm11 = vcmp.ne.s16.totalorder %v3715_v23, 0 }
 0x72c   : > { %2043 = vmatpush1.bf16.msra.mxu0 %v2012_v57 }
 0x72d   : > { %v1985_v40 = vpop.permute.xlu1 %1984 }
 0x72e   : > { %2008 = vrot.lane.b32.xlu1 %v1953_v5, %s3594_s28  ;;  %v2015_v61 = vsel %vm586_vm9, %v1985_v40, %v1987_v53  ;;  %v2014_v62 = vsel %vm586_vm9, %v3468_v37, %v1985_v40 }
 0x72f   : > { %2044 = vmatprep.subr.bf16.mxu0 %v2015_v61  ;;  %3480 = vrot.lane.b32.xlu0 %v3592_v1, %s3593_s27 }
 0x730   : > { %2045 = vmatpush1.bf16.msra.mxu0 %v2014_v62 }
 0x731   : > { %v2273_v13 = vpop.permute.xlu1 %2272 }
 0x732   : > { %2133 = vrot.lane.b32.xlu1 %v1883_v55, %s3595_s16  ;;  %v1908_v55 = vsel %vm563_vm4, %v3458_v45, %v1903_v18  ;;  %v2277_v18 = vpop.permute.xlu0 %2276 }
 0x733   : > { %2315 = vrot.lane.b32.xlu0 %v2234_v63, %s3593_s27 }
 0x736   : > { %2145 = vrot.lane.b32.xlu1 %v1905_v32, %s3595_s16  ;;  %v2271_v32 = vpop.permute.xlu1 %2270  ;;  %v2114_v57 = vpop.permute.xlu0 %2113 }
 0x737   : > { %2143 = vrot.lane.b32.xlu0 %v1909_v12, %s3595_s16  ;;  %v2282_v21 = vsel %vm563_vm4, %v2271_v32, %v2273_v13 }
 0x73a   : > { %2309 = vrot.lane.b32.xlu1 %v2231_v34, %s3593_s27  ;;  %v2279_v51 = vpop.permute.xlu1 %2278  ;;  %v2122_v53 = vpop.permute.xlu0 %2121 }
 0x73b   : > { %2141 = vrot.lane.b32.xlu0 %v1908_v55, %s3595_s16  ;;  %v2285_v46 = vsel %vm563_vm4, %v2279_v51, %v3473_v15  ;;  %v2284_v9 = vsel %vm563_vm4, %v2277_v18, %v2279_v51 }
 0x73e   : > { %2137 = vrot.lane.b32.xlu1 %v1907_v38, %s3595_s16  ;;  %v2116_v37 = vpop.permute.xlu1 %2115 }
 0x73f   : > { %2321 = vrot.lane.b32.xlu0 %v2261_v4, %s3593_s27 }
 0x742   : > { %2135 = vrot.lane.b32.xlu1 %v1906_v54, %s3595_s16  ;;  %v2120_v40 = vpop.permute.xlu1 %2119 }
 0x743   : > { %2319 = vrot.lane.b32.xlu0 %v2260_v19, %s3593_s27 }
 0x746   : > { %2307 = vrot.lane.b32.xlu1 %v2230_v10, %s3593_s27 }
 0x747   : > { %2325 = vrot.lane.b32.xlu0 %v2262_v20, %s3593_s27 }
 0x74a   : > { %2313 = vrot.lane.b32.xlu1 %v2233_v14, %s3593_s27 }
 0x74b   : > { %2335 = vrot.lane.b32.xlu0 %v3472_v60, %s3593_s27 }
 0x74e   : > { %3485 = vrot.lane.b32.xlu1 %v4559_v17, %s3593_s27  ;;  %v2283_v17 = vsel %vm563_vm4, %v2273_v13, %v3472_v60 }
 0x74f   : > { %2339 = vrot.lane.b32.xlu0 %v2285_v46, %s3593_s27 }
 0x752   : > { %2327 = vrot.lane.b32.xlu1 %v2263_v42, %s3593_s27 }
 0x753   : > { %2337 = vrot.lane.b32.xlu0 %v2284_v9, %s3593_s27 }
 0x756   : > { %2333 = vrot.lane.b32.xlu1 %v2283_v17, %s3593_s27  ;;  %v2148_v17 = vsel %vm744_vm10, %v2114_v57, %v2116_v37 }
 0x757   : > { %2446 = vperm.xlu0 %3397, %v3290_v6   ;;  %v3546_v6 = vld [vmem:[%s5187_s4 + $0x40] sm:$0xff]  }
 0x75a   : > { %2331 = vrot.lane.b32.xlu1 %v2282_v21, %s3593_s27 }
 0x75b   : > { %2474 = vperm.xlu0 %3397, %v3293_v2   ;;  %v3477_v2 = vunpack.i.l.bf16 %v4565_v27 }
 0x75e   : > { %2341 = vrot.lane.b32.xlu1 %v3473_v15, %s3593_s27 }
 0x75f   : > { %2456 = vperm.xlu0 %3397, %v3292_v43  }
 0x762   : > { %2441 = vperm.xlu1 %3398, %v3289_v25   ;;  %v2147_v25 = vsel %vm744_vm10, %v3477_v2, %v2114_v57 }
 0x763   : > { %2489 = vperm.xlu0 %3397, %v3296_v52   ;;  %v2150_v52 = vsel %vm744_vm10, %v2120_v40, %v2122_v53 }
 0x766   : > { %2451 = vperm.xlu1 %3398, %v3291_v44   ;;  %v3478_v44 = vunpack.i.h.bf16 %v4565_v27 }
 0x768   : > { %v2149_v37 = vsel %vm744_vm10, %v3478_v44, %v2120_v40 }
 0x76a   : > { %2479 = vperm.xlu1 %3398, %v3294_v35  }
 0x76e   : > { %2484 = vperm.xlu1 %3398, %v3295_v16  }
 0x774   : > { %v1989_v5 = vpop.permute.xlu0 %1988  ;;  %v1993_v61 = vpop.permute.xlu1 %1992 }
 0x77c   : > { %v1999_v62 = vpop.permute.xlu0 %1998  ;;  %v1995_v63 = vpop.permute.xlu1 %1994 }
 0x780   : > { %v2128_v12 = vpop.permute.xlu0 %2127  ;;  %v1997_v45 = vpop.permute.xlu1 %1996 }
 0x781   : > { %v2019_v38 = vsel %vm586_vm9, %v1997_v45, %v1999_v62  ;;  %v2018_v59 = vsel %vm586_vm9, %v1995_v63, %v1997_v45 }
 0x784   : > { %v1991_v34 = vpop.permute.xlu0 %1990 }
 0x785   : > { %v2017_v55 = vsel %vm586_vm9, %v1991_v34, %v1993_v61  ;;  %v2016_v29 = vsel %vm586_vm9, %v1989_v5, %v1991_v34  ;;  %v3547_v5 = vld [vmem:[%s5187_s4 + $0x48] sm:$0xff]  }
 0x786   : > { %2046 = vmatprep.subr.bf16.mxu0 %v2017_v55 }
 0x787   : > { %2047 = vmatpush1.bf16.msra.mxu0 %v2016_v29 }
 0x788   : > { %v2001_v4 = vpop.permute.xlu0 %2000  ;;  %2048 = vmatprep.subr.bf16.mxu0 %v2019_v38 }
 0x78b   : > { %2049 = vmatpush1.bf16.msra.mxu0 %v2018_v59 }
 0x78d   : > { %v2003_v13 = vpop.permute.xlu0 %2002 }
 0x78e   : > { %v2020_v15 = vsel %vm586_vm9, %v2001_v4, %v2003_v13 }
 0x790   : > { %v2007_v54 = vpop.permute.xlu1 %2006 }
 0x791   : > { %v2011_v19 = vpop.permute.xlu0 %2010 }
 0x794   : > { %v2126_v32 = vpop.permute.xlu1 %2125 }
 0x795   : > { %v2132_v10 = vpop.permute.xlu0 %2131  ;;  %v2152_v61 = vsel %vm744_vm10, %v2126_v32, %v2128_v12 }
 0x798   : > { %v2124_v20 = vpop.permute.xlu1 %2123 }
 0x799   : > { %v2130_v39 = vpop.permute.xlu0 %2129  ;;  %v2151_v53 = vsel %vm744_vm10, %v2124_v20, %v2126_v32 }
 0x79a   : > { %v2153_v45 = vsel %vm744_vm10, %v2130_v39, %v2132_v10 }
 0x79c   : > { %v2005_v60 = vpop.permute.xlu1 %2004 }
 0x79d   : > { %v2140_v14 = vpop.permute.xlu0 %2139  ;;  %v2021_v51 = vsel %vm586_vm9, %v2003_v13, %v2005_v60 }
 0x79e   : > { %2050 = vmatprep.subr.bf16.mxu0 %v2021_v51 }
 0x79f   : > { %2051 = vmatpush1.bf16.msra.mxu0 %v2020_v15 }
 0x7a0   : > { %v2009_v46 = vpop.permute.xlu1 %2008 }
 0x7a1   : > { %v3481_v18 = vpop.permute.xlu0 %3480  ;;  %v2023_v42 = vsel %vm586_vm9, %v2009_v46, %v2011_v19  ;;  %v2022_v9 = vsel %vm586_vm9, %v2007_v54, %v2009_v46  ;;  %v3548_v54 = vld [vmem:[%s5187_s4 + $0x30] sm:$0xff]   ;;  %v3549_v46 = vld [vmem:[%s5187_s4 + $0x38] sm:$0xff]  }
 0x7a2   : > { %2052 = vmatprep.subr.bf16.mxu0 %v2023_v42  ;;  %v3482_v29 = vunpack.i.l.bf16 %v3481_v18  ;;  %v3483_v19 = vunpack.i.h.bf16 %v3481_v18 }
 0x7a3   : > { %2053 = vmatpush1.bf16.msra.mxu0 %v2022_v9 }
 0x7a4   : > { %2177 = vmatprep.subr.bf16.mxu0 %v2148_v17  ;;  %v2134_v21 = vpop.permute.xlu1 %2133 }
 0x7a5   : > { %v2316_v43 = vpop.permute.xlu0 %2315  ;;  %v2154_v27 = vsel %vm744_vm10, %v2132_v10, %v2134_v21 }
 0x7a6   : > { %3275 = vmatmul.mubr.msk.bf16.vlgmr.msra.gmra.mrb[8].mxu0 %vm1236_vm2, %v3546_v6  ;;  %v2346_v60 = vsel %vm534_vm6, %v2316_v43, %v3483_v19 }
 0x7a7   : > { %2178 = vmatpush1.bf16.msra.mxu0 %v2147_v25  ;;  %2084 = vmatprep.mubr.bf16.mxu0 %v3592_v1 }
 0x7a8   : > { %2179 = vmatprep.subr.bf16.mxu0 %v2150_v52  ;;  %v2146_v35 = vpop.permute.xlu1 %2145 }
 0x7a9   : > { %v2144_v16 = vpop.permute.xlu0 %2143 }
 0x7aa   : > { %v2158_v4 = vsel %vm744_vm10, %v2144_v16, %v2146_v35 }
 0x7ab   : > { %2180 = vmatpush1.bf16.msra.mxu0 %v2149_v37 }
 0x7ac   : > { %2181 = vmatprep.subr.bf16.mxu0 %v2152_v61  ;;  %v2310_v57 = vpop.permute.xlu1 %2309 }
 0x7ad   : > { %v2142_v62 = vpop.permute.xlu0 %2141  ;;  %v2344_v32 = vsel %vm534_vm6, %v2310_v57, %v3482_v29 }
 0x7ae   : > { %3276 = vmatmul.mubr.msk.bf16.gmra.mrb[12].mxu0 %vm1236_vm2, %v3547_v5  ;;  %v2157_v13 = vsel %vm744_vm10, %v2142_v62, %v2144_v16  ;;  %v3551_v62 = vld [vmem:[%s5187_s4 + $0x58] sm:$0xff]  }
 0x7af   : > { %2182 = vmatpush1.bf16.msra.mxu0 %v2151_v53  ;;  %2209 = vmatprep.mubr.bf16.mxu0 %v3592_v1 }
 0x7b0   : > { %2183 = vmatprep.subr.bf16.mxu0 %v2154_v27  ;;  %v2138_v40 = vpop.permute.xlu1 %2137 }
 0x7b1   : > { %v2322_v63 = vpop.permute.xlu0 %2321  ;;  %v2156_v12 = vsel %vm744_vm10, %v2138_v40, %v2140_v14 }
 0x7b3   : > { %2184 = vmatpush1.bf16.msra.mxu0 %v2153_v45 }
 0x7b4   : > { %2185 = vmatprep.subr.bf16.mxu0 %v2156_v12  ;;  %v2136_v34 = vpop.permute.xlu1 %2135 }
 0x7b5   : > { %v2155_v55 = vsel %vm744_vm10, %v2136_v34, %v2138_v40  ;;  %v2320_v38 = vpop.permute.xlu0 %2319 }
 0x7b6   : > { %v2347_v17 = vsel %vm534_vm6, %v2320_v38, %v2322_v63 }
 0x7b7   : > { %2186 = vmatpush1.bf16.msra.mxu0 %v2155_v55 }
 0x7b8   : > { %2187 = vmatprep.subr.bf16.mxu0 %v2158_v4  ;;  %v2308_v59 = vpop.permute.xlu1 %2307 }
 0x7b9   : > { %v2326_v20 = vpop.permute.xlu0 %2325  ;;  %v2343_v39 = vsel %vm534_vm6, %v2308_v59, %v2310_v57  ;;  %v3550_v57 = vld [vmem:[%s5187_s4 + $0x50] sm:$0xff]  }
 0x7bb   : > { %2188 = vmatpush1.bf16.msra.mxu0 %v2157_v13 }
 0x7bc   : > { %2373 = vmatprep.subr.bf16.mxu0 %v2344_v32  ;;  %v2314_v10 = vpop.permute.xlu1 %2313 }
 0x7bd   : > { %v2345_v15 = vsel %vm534_vm6, %v2314_v10, %v2316_v43  ;;  %v2336_v18 = vpop.permute.xlu0 %2335 }
 0x7be   : > { %3279 = vmatmul.mubr.msk.bf16.vlgmr.msra.gmra.mrb[8].mxu0 %vm1236_vm2, %v3548_v54 }
 0x7bf   : > { %2374 = vmatpush1.bf16.msra.mxu0 %v2343_v39  ;;  %2219 = vmatprep.mubr.bf16.mxu0 %v3592_v1 }
 0x7c0   : > { %2375 = vmatprep.subr.bf16.mxu0 %v2346_v60  ;;  %v3486_v14 = vpop.permute.xlu1 %3485 }
 0x7c1   : > { %v3487_v51 = vunpack.i.l.bf16 %v3486_v14  ;;  %v3488_v6 = vunpack.i.h.bf16 %v3486_v14  ;;  %v2340_v43 = vpop.permute.xlu0 %2339 }
 0x7c3   : > { %2376 = vmatpush1.bf16.msra.mxu0 %v2345_v15  ;;  %v2348_v42 = vsel %vm534_vm6, %v2322_v63, %v3487_v51 }
 0x7c4   : > { %v2328_v9 = vpop.permute.xlu1 %2327  ;;  %2377 = vmatprep.subr.bf16.mxu0 %v2348_v42 }
 0x7c5   : > { %v2350_v2 = vsel %vm534_vm6, %v2328_v9, %v3488_v6  ;;  %v2349_v25 = vsel %vm534_vm6, %v2326_v20, %v2328_v9  ;;  %v2338_v16 = vpop.permute.xlu0 %2337 }
 0x7c6   : > { %3280 = vmatmul.mubr.msk.bf16.gmra.mrb[12].mxu0 %vm1236_vm2, %v3549_v46  ;;  %v2353_v61 = vsel %vm534_vm6, %v2338_v16, %v2340_v43 }
 0x7c7   : > { %2378 = vmatpush1.bf16.msra.mxu0 %v2347_v17  ;;  %2405 = vmatprep.mubr.bf16.mxu0 %v3592_v1 }
 0x7c8   : > { %v2334_v21 = vpop.permute.xlu1 %2333  ;;  %2379 = vmatprep.subr.bf16.mxu0 %v2350_v2 }
 0x7c9   : > { %v2352_v52 = vsel %vm534_vm6, %v2334_v21, %v2336_v18 }
 0x7cb   : > { %2380 = vmatpush1.bf16.msra.mxu0 %v2349_v25 }
 0x7cc   : > { %v2332_v44 = vpop.permute.xlu1 %2331  ;;  %2381 = vmatprep.subr.bf16.mxu0 %v2352_v52 }
 0x7cd   : > { %v2351_v35 = vsel %vm534_vm6, %v2332_v44, %v2334_v21 }
 0x7cf   : > { %2382 = vmatpush1.bf16.msra.mxu0 %v2351_v35 }
 0x7d0   : > { %v2342_v37 = vpop.permute.xlu1 %2341 }
 0x7d1   : > { %v2354_v5 = vsel %vm534_vm6, %v2340_v43, %v2342_v37 }
 0x7d2   : > { %2383 = vmatprep.subr.bf16.mxu0 %v2354_v5 }
 0x7d3   : > { %2384 = vmatpush1.bf16.msra.mxu0 %v2353_v61 }
 0x7d6   : > { %3287 = vmatmul.mubr.msk.bf16.vlgmr.msra.gmra.mrb[8].mxu0 %vm1236_vm2, %v3550_v57  ;;  %v2447_v27 = vpop.permute.xlu0 %2446 }
 0x7d7   : > { %2415 = vmatprep.mubr.bf16.mxu0 %v3592_v1 }
 0x7da   : > { %v2475_v63 = vpop.permute.xlu0 %2474 }
 0x7de   : > { %3288 = vmatmul.mubr.msk.bf16.gmra.mrb[12].mxu0 %vm1236_vm2, %v3551_v62  ;;  %v2457_v20 = vpop.permute.xlu0 %2456 }
 0x7df   : > { %3136 = vmatprep.mubr.bf16.mxu0 %v3592_v1 }
 0x7e1   : > { %v2442_v53 = vpop.permute.xlu1 %2441 }
 0x7e2   : > { %v2490_v52 = vpop.permute.xlu0 %2489 }
 0x7e5   : > { %v2452_v40 = vpop.permute.xlu1 %2451 }
 0x7e9   : > { %v2480_v13 = vpop.permute.xlu1 %2479 }
 0x7ed   : > { %v2485_v9 = vpop.permute.xlu1 %2484 }
 0x8a9   : > { %v2407_v45 = vpop.f32.mrb[8].mxu0 }
 0x8aa   : > { %v2459_v12 = vmul.f32 %v2442_v53, %v2407_v45  ;;  %v2409_v34 = vpop.f32.mrb[9].mxu0 }
 0x8ab   : > { %v2460_v55 = vmul.f32 %v2442_v53, %v2409_v34  ;;  %v2411_v29 = vpop.f32.mrb[10].mxu0 }
 0x8ac   : > { %v4755_v38 = vadd.f32 %v2475_v63, %v2459_v12  ;;  %v2461_v4 = vmul.f32 %v2447_v27, %v2411_v29  ;;  %v2413_v59 = vpop.f32.mrb[11].mxu0 }
 0x8ad   : > { %v4757_v54 = vadd.f32 %v2475_v63, %v2460_v55  ;;  %v2462_v19 = vmul.f32 %v2447_v27, %v2413_v59  ;;  %v3298_v63 = vld [vmem:[%s5190_s7 + $0x28] sm:$0xff]  ;;  %v3297_v55 = vld [vmem:[%s5190_s7 + $0x20] sm:$0xff]  ;;  %v3299_v59 = vld [vmem:[%s5190_s7 + $0x30] sm:$0xff] }
 0x8ae   : > { %v2500_v32 = vmax.f32 %v4755_v38, 0.0  ;;  %v4760_v10 = vadd.f32 %v2480_v13, %v2461_v4 }
 0x8af   : > { %v2501_v39 = vmax.f32 %v4757_v54, 0.0  ;;  %v4763_v60 = vadd.f32 %v2480_v13, %v2462_v19 }
 0x8b0   : > { %v2502_v14 = vmax.f32 %v4760_v10, 0.0 }
 0x8b1   : > { %v2503_v51 = vmax.f32 %v4763_v60, 0.0  ;;  %v2417_v15 = vpop.f32.mrb[12].mxu0  ;;  %v2508_v46 = vadd.f32 %v2501_v39, %v2500_v32 }
 0x8b2   : > { %v2463_v18 = vmul.f32 %v2452_v40, %v2417_v15  ;;  %v2419_v42 = vpop.f32.mrb[13].mxu0  ;;  %v3300_v15 = vld [vmem:[%s5190_s7 + $0x38] sm:$0xff] }
 0x8b3   : > { %v2464_v6 = vmul.f32 %v2452_v40, %v2419_v42  ;;  %2509 = vadd.xlane.f32.xlu1 %v2508_v46  ;;  %v2421_v17 = vpop.f32.mrb[14].mxu0  ;;  %v2511_v2 = vadd.f32 %v2503_v51, %v2502_v14 }
 0x8b4   : > { %v4775_v21 = vadd.f32 %v2485_v9, %v2463_v18  ;;  %v2465_v43 = vmul.f32 %v2457_v20, %v2421_v17  ;;  %v2423_v25 = vpop.f32.mrb[15].mxu0 }
 0x8b5   : > { %v4777_v44 = vadd.f32 %v2485_v9, %v2464_v6  ;;  %v2466_v35 = vmul.f32 %v2457_v20, %v2423_v25  ;;  %2512 = vadd.xlane.f32.xlu0 %v2511_v2 }
 0x8b6   : > { %v2504_v16 = vmax.f32 %v4775_v21, 0.0  ;;  %v4780_v37 = vadd.f32 %v2490_v52, %v2465_v43 }
 0x8b7   : > { %v2505_v5 = vmax.f32 %v4777_v44, 0.0  ;;  %v4783_v61 = vadd.f32 %v2490_v52, %v2466_v35 }
 0x8b8   : > { %v2506_v57 = vmax.f32 %v4780_v37, 0.0 }
 0x8b9   : > { %v2507_v62 = vmax.f32 %v4783_v61, 0.0  ;;  %v2514_v53 = vadd.f32 %v2505_v5, %v2504_v16 }
 0x8bb   : > { %2515 = vadd.xlane.f32.xlu0 %v2514_v53  ;;  %v2517_v27 = vadd.f32 %v2507_v62, %v2506_v57 }
 0x8bd   : > { %2518 = vadd.xlane.f32.xlu1 %v2517_v27 }
 0x940   : > { %v2510_v40 = vpop.xlane.xlu1 %2509 }
 0x941   : > { %v2520_v12 = vmul.f32 0.00390625, %v2510_v40 }
 0x942   : > { %v2513_v45 = vpop.xlane.xlu0 %2512 }
 0x943   : > { %v2521_v34 = vmul.f32 0.00390625, %v2513_v45  ;;  %v2529_v4 = vmul.f32 %v3297_v55, %v2520_v12  ;;  %v3301_v45 = vld [vmem:[%s5191_s8 + $0x1] sm:$0x1] }
 0x945   : > { %v2530_v29 = vmul.f32 %v3298_v63, %v2521_v34  ;;  %v2533_v18 = vsel %vm1731_vm15, %v2529_v4, 0.0  ;;  %v3302_v4 = vld [vmem:[%s5192_s9 + $0x20] sm:$0xff] }
 0x947   : > { %v2534_v19 = vsel %vm1731_vm15, %v2530_v29, 0.0  ;;  %v3303_v29 = vld [vmem:[%s5192_s9 + $0x28] sm:$0xff] }
 0x948   : > { %v2516_v13 = vpop.xlane.xlu0 %2515  ;;  %v2535_v6 = vadd.f32 %v2534_v19, %v2533_v18  ;;  %v3304_v19 = vld [vmem:[%s5192_s9 + $0x30] sm:$0xff] }
 0x949   : > { %v2522_v20 = vmul.f32 0.00390625, %v2516_v13  ;;  %v3305_v13 = vld [vmem:[%s5192_s9 + $0x38] sm:$0xff] }
 0x94a   : > { %v2519_v46 = vpop.xlane.xlu1 %2518 }
 0x94b   : > { %v2531_v42 = vmul.f32 %v3299_v59, %v2522_v20  ;;  %v2523_v9 = vmul.f32 0.00390625, %v2519_v46 }
 0x94d   : > { %v2536_v17 = vsel %vm1731_vm15, %v2531_v42, 0.0  ;;  %v2532_v2 = vmul.f32 %v3300_v15, %v2523_v9 }
 0x94e   : > { %v2537_v43 = vadd.f32 %v2536_v17, %v2535_v6  ;;  %v3307_v17 = vld [vmem:[%s5193_s10 + $0x28] sm:$0xff] }
 0x94f   : > { %v2538_v25 = vsel %vm1731_vm15, %v2532_v2, 0.0  ;;  %v3306_v2 = vld [vmem:[%s5193_s10 + $0x20] sm:$0xff] }
 0x950   : > { %v2539_v52 = vadd.f32 %v2538_v25, %v2537_v43 }
 0x952   : > { %v2540_v35 = vrot.slane %v2539_v52, 4 }
 0x954   : > { %v2541_v53 = vadd.f32 %v2540_v35, %v2539_v52 }
 0x956   : > { %v2542_v27 = vrot.slane %v2541_v53, 2 }
 0x958   : > { %v2543_v40 = vadd.f32 %v2542_v27, %v2541_v53  ;;  %v3309_v53 = vld [vmem:[%s5193_s10 + $0x38] sm:$0xff]  ;;  %v3308_v27 = vld [vmem:[%s5193_s10 + $0x30] sm:$0xff] }
 0x95a   : > { %v2544_v63 = vrot.slane %v2543_v40, 1 }
 0x95c   : > { %v2545_v12 = vadd.f32 %v2544_v63, %v2543_v40 }
 0x95e   : > { %v2548_v34 = vadd.f32 %v3301_v45, %v2545_v12 }
 0x960   : > { %v2549_v55 = vmax.f32 %v2548_v34, 0.0 }
 0x962   : > { %v2558_v59 = vrot.slane %v2549_v55, %v3682_v7 }
 0x964   : > { %v2560_v20 = vmul.f32 %v3303_v29, %v2558_v59  ;;  %v2559_v15 = vmul.f32 %v3302_v4, %v2558_v59  ;;  %v2562_v42 = vmul.f32 %v3305_v13, %v2558_v59  ;;  %v2561_v9 = vmul.f32 %v3304_v19, %v2558_v59 }
 0x966   : > { %v2566_v46 = vsel %vm1731_vm15, %v2560_v20, 0.0  ;;  %v2563_v18 = vsel %vm1731_vm15, %v2559_v15, 0.0  ;;  %v2572_v7 = vsel %vm1731_vm15, %v2562_v42, 0.0  ;;  %v2569_v6 = vsel %vm1731_vm15, %v2561_v9, 0.0 }
 0x967   : > { %2567 = vadd.xlane.f32.xlu1 %v2566_v46  ;;  %2564 = vadd.xlane.f32.xlu0 %v2563_v18  ;;  %vm5216_vm15 = vcmp.ne.s16.totalorder %v3733_v28, 0 }
 0x968   : > { %vm5218_vm7 = vmmov %vm5216_vm15 }
 0x96b   : > { %2573 = vadd.xlane.f32.xlu1 %v2572_v7  ;;  %2570 = vadd.xlane.f32.xlu0 %v2569_v6 }
 0x9f4   : > { %v2568_v43 = vpop.xlane.xlu1 %2567  ;;  %v2565_v25 = vpop.xlane.xlu0 %2564 }
 0x9f5   : > { %v2581_v52 = vadd.f32 %v3307_v17, %v2568_v43  ;;  %v2580_v35 = vadd.f32 %v3306_v2, %v2565_v25 }
 0x9f7   : > { %v3311_v40 = vmul.f32 -1.442695, %v2581_v52  ;;  %v3310_v63 = vmul.f32 -1.442695, %v2580_v35 }
 0x9f8   : > { %v2574_v45 = vpop.xlane.xlu1 %2573  ;;  %v2571_v12 = vpop.xlane.xlu0 %2570 }
 0x9f9   : > { %3568 = vpow2.f32 %v3311_v40  ;;  %v2583_v34 = vadd.f32 %v3309_v53, %v2574_v45  ;;  %v2582_v55 = vadd.f32 %v3308_v27, %v2571_v12 }
 0x9fa   : > { %3570 = vpow2.f32 %v3310_v63 }
 0x9fb   : > { %v3313_v29 = vmul.f32 -1.442695, %v2583_v34  ;;  %v3312_v4 = vmul.f32 -1.442695, %v2582_v55 }
 0x9fd   : > { %3572 = vpow2.f32 %v3313_v29 }
 0x9fe   : > { %3574 = vpow2.f32 %v3312_v4 }
 0xa03   : > { %v3569_v59 = vpop.eup %3568 }
 0xa04   : > { %v3571_v13 = vpop.eup %3570  ;;  %v2597_v19 = vadd.f32 1.0, %v3569_v59 }
 0xa05   : > { %v2596_v20 = vadd.f32 1.0, %v3571_v13 }
 0xa06   : > { %3576 = vrcp.f32 %v2597_v19 }
 0xa07   : > { %v3573_v15 = vpop.eup %3572  ;;  %3578 = vrcp.f32 %v2596_v20 }
 0xa08   : > { %v3575_v46 = vpop.eup %3574  ;;  %v2599_v18 = vadd.f32 1.0, %v3573_v15 }
 0xa09   : > { %v2598_v42 = vadd.f32 1.0, %v3575_v46 }
 0xa0a   : > { %3580 = vrcp.f32 %v2599_v18 }
 0xa0b   : > { %3582 = vrcp.f32 %v2598_v42 }
 0xa10   : > { %v3577_v9 = vpop.eup %3576 }
 0xa11   : > { %v3579_v7 = vpop.eup %3578  ;;  %2615 = vperm.xlu1 %3398, %v3577_v9  }
 0xa12   : > { %2610 = vperm.xlu0 %3397, %v3579_v7  }
 0xa14   : > { %v3581_v6 = vpop.eup %3580 }
 0xa15   : > { %v3583_v17 = vpop.eup %3582 }
 0xa16   : > { %2625 = vperm.xlu0 %3397, %v3581_v6   ;;  %2620 = vperm.xlu1 %3398, %v3583_v17  }
 0xa1a   : > { %3490 = vrot.lane.b32.xlu1 %v3592_v1, %s3598_s19  ;;  %3495 = vrot.lane.b32.xlu0 %v3592_v1, %s3597_s18 }
 0xa1e   : > { %3500 = vrot.lane.b32.xlu1 %v3592_v1, %s3597_s18  ;;  %3505 = vrot.lane.b32.xlu0 %v3592_v1, %s3598_s19 }
 0xa22   : > { %3515 = vrot.lane.b32.xlu0 %v3592_v1, %s3594_s28  ;;  %3510 = vrot.lane.b32.xlu1 %v3592_v1, %s3598_s19 }
 0xa26   : > { %3520 = vrot.lane.b32.xlu1 %v3592_v1, %s3595_s16 }
 0xa2a   : > { %3525 = vrot.lane.b32.xlu1 %v3592_v1, %s3593_s27 }
 0xa90   : > { %v2616_v2 = vpop.permute.xlu1 %2615 }
 0xa91   : > { %v2631_v43 = vmul.f32 %v2616_v2, %v2503_v51  ;;  %v2611_v25 = vpop.permute.xlu0 %2610  ;;  %v2630_v12 = vmul.f32 %v2616_v2, %v2502_v14 }
 0xa92   : > { %v2629_v52 = vmul.f32 %v2611_v25, %v2501_v39  ;;  %v2628_v60 = vmul.f32 %v2611_v25, %v2500_v32 }
 0xa93   : > { %v2639_v35 = vadd.f32 %v2631_v43, %v4411_v41  ;;  %v2638_v10 = vadd.f32 %v2630_v12, %v4407_v33 }
 0xa94   : > { %v2637_v53 = vadd.f32 %v2629_v52, %v4419_v47  ;;  %v2636_v14 = vadd.f32 %v2628_v60, %v4415_v11 }
 0xa95   : > { %v2621_v27 = vpop.permute.xlu1 %2620  ;;  %v2626_v40 = vpop.permute.xlu0 %2625 }
 0xa96   : > { %v4865_v63 = vpack.c.bf16 %v2639_v35, %v2637_v53  ;;  %v2633_v45 = vmul.f32 %v2621_v27, %v2505_v5  ;;  %v2635_v54 = vmul.f32 %v2626_v40, %v2507_v62  ;;  %v2632_v5 = vmul.f32 %v2621_v27, %v2504_v16 }
 0xa97   : > { %v2634_v33 = vmul.f32 %v2626_v40, %v2506_v57 }
 0xa98   : > { %v2641_v41 = vadd.f32 %v2633_v45, %v4447_v3  ;;  %2680 = vrot.lane.b32.xlu0 %v4865_v63, %s3597_s18  ;;  %v2643_v47 = vadd.f32 %v2635_v54, %v4455_v0  ;;  %v2644_v0 = vpack.c.bf16 %v2638_v10, %v2636_v14  ;;  %v2640_v61 = vadd.f32 %v2632_v5, %v4443_v8 }
 0xa99   : > { %v4879_v39 = vpop.permute.xlu1 %3490  ;;  %v4881_v51 = vpop.permute.xlu0 %3495  ;;  %v2642_v62 = vadd.f32 %v2634_v33, %v4451_v26  ;;  %v2728_v16 = vsel %vm5216_vm15, %v4865_v63, 0  ;;  %vm5220_vm15 = vcmp.ne.s16.totalorder %v3793_v50, 0  ;;  %v2984_v28 = vsel %vm834_vm13, %v4865_v63, 0 }
 0xa9a   : > { %v4885_v38 = vpack.c.bf16 %v2643_v47, %v2641_v41  ;;  %v3498_v32 = vunpack.i.h.bf16 %v4881_v51  ;;  %v2665_v8 = vsel %vm537_vm8, %v2644_v0, 0  ;;  %v2983_v26 = vsel %vm833_vm14, %v2644_v0, 0 }
 0xa9b   : > { %v2646_v21 = vpack.c.bf16 %v2642_v62, %v2640_v61  ;;  %v2727_v57 = vsel %vm588_vm12, %v2644_v0, 0  ;;  %v2716_v4 = vsel %vm5220_vm15, %v2644_v0, 0  ;;  %v2978_v19 = vsel %vm823_vm5, %v4865_v63, 0 }
 0xa9c   : > { %2686 = vrot.lane.b32.xlu0 %v4885_v38, %s3597_s18  ;;  %v2669_v34 = vsel %vm5217_vm11, %v4885_v38, 0  ;;  %v2731_v55 = vsel %vm5218_vm7, %v4885_v38, 0  ;;  %v2987_v29 = vsel %vm834_vm13, %v4885_v38, 0  ;;  %v2720_v59 = vsel %vm577_vm1, %v4885_v38, 0  ;;  %vm5223_vm13 = vmmov %vm5220_vm15 }
 0xa9d   : > { %v4890_v3 = vpop.permute.xlu1 %3500  ;;  %v2730_v37 = vsel %vm588_vm12, %v2646_v21, 0  ;;  %vm5219_vm12 = vmmov %vm5217_vm11  ;;  %v2668_v23 = vsel %vm537_vm8, %v2646_v21, 0  ;;  %vm5221_vm11 = vcmp.ne.s16.totalorder %v3760_v36, 0  ;;  %v2986_v31 = vsel %vm833_vm14, %v2646_v21, 0  ;;  %v4996_v18 = vpop.permute.xlu0 %3505 }
 0xa9e   : > { %v3503_v44 = vunpack.i.h.bf16 %v4890_v3  ;;  %v2666_v22 = vsel %vm5219_vm12, %v4865_v63, 0  ;;  %v2660_v13 = vsel %vm5221_vm11, %v4865_v63, 0  ;;  %v2717_v24 = vsel %vm577_vm1, %v4865_v63, 0  ;;  %vm5224_vm14 = vmmov %vm5221_vm11 }
 0xa9f   : > { %vm5222_vm8 = vcmp.ne.s16.totalorder %v3787_v48, 0  ;;  %v2719_v30 = vsel %vm5223_vm13, %v2646_v21, 0  ;;  %v2663_v15 = vsel %vm5224_vm14, %v4885_v38, 0  ;;  %v2659_v49 = vsel %vm511_vm3, %v2644_v0, 0 }
 0xaa0   : > { %v3529_v11 = vpack.i.bf16 %v3503_v44, %v3498_v32  ;;  %2995 = vrot.lane.b32.xlu0 %v2644_v0, %s3597_s18  ;;  %v2977_v20 = vsel %vm5222_vm8, %v2644_v0, 0  ;;  %vm5225_vm1 = vmmov %vm5222_vm8  ;;  %v2662_v50 = vsel %vm511_vm3, %v2646_v21, 0  ;;  %v2981_v36 = vsel %vm823_vm5, %v4885_v38, 0 }
 0xaa1   : > { %v2980_v46 = vsel %vm5225_vm1, %v2646_v21, 0  ;;  %v4998_v42 = vpop.permute.xlu1 %3510  ;;  %v5000_v9 = vpop.permute.xlu0 %3515  ;;  %v3497_v47 = vunpack.i.l.bf16 %v4881_v51  ;;  %v3492_v51 = vunpack.i.l.bf16 %v4879_v39 }
 0xaa2   : > { %3530 = vrot.lane.b32.xlu1 %v3529_v11, %s3593_s27 }
 0xaa4   : > { %3003 = vrot.lane.b32.xlu0 %v4885_v38, %s3597_s18 }
 0xaa5   : > { %v5002_v48 = vpop.permute.xlu1 %3520 }
 0xaa6   : > { %2678 = vrot.lane.b32.xlu1 %v2644_v0, %s3597_s18 }
 0xaa8   : > { %2741 = vrot.lane.b32.xlu0 %v2728_v16, %s3598_s19 }
 0xaa9   : > { %v5005_v58 = vpop.permute.xlu1 %3525 }
 0xaaa   : > { %2684 = vrot.lane.b32.xlu1 %v2646_v21, %s3597_s18 }
 0xaac   : > { %2745 = vrot.lane.b32.xlu0 %v2730_v37, %s3598_s19 }
 0xaae   : > { %2997 = vrot.lane.b32.xlu1 %v4865_v63, %s3597_s18 }
 0xab0   : > { %2700 = vrot.lane.b32.xlu0 %v2665_v8, %s3598_s19 }
 0xab2   : > { %3001 = vrot.lane.b32.xlu1 %v2646_v21, %s3597_s18 }
 0xab4   : > { %3017 = vrot.lane.b32.xlu0 %v2983_v26, %s3598_s19 }
 0xab6   : > { %2739 = vrot.lane.b32.xlu1 %v2727_v57, %s3598_s19 }
 0xab8   : > { %2708 = vrot.lane.b32.xlu0 %v2669_v34, %s3598_s19  ;;  %v3527_v34 = vunpack.i.l.bf16 %v5005_v58 }
 0xaba   : > { %2747 = vrot.lane.b32.xlu1 %v2731_v55, %s3598_s19  ;;  %v3493_v55 = vunpack.i.h.bf16 %v4879_v39 }
 0xabc   : > { %3025 = vrot.lane.b32.xlu0 %v2987_v29, %s3598_s19 }
 0xabe   : > { %2702 = vrot.lane.b32.xlu1 %v2666_v22, %s3598_s19  ;;  %v3517_v22 = vunpack.i.l.bf16 %v5000_v9 }
 0xac0   : > { %2765 = vrot.lane.b32.xlu0 %v2716_v4, %s3594_s28 }
 0xac2   : > { %3019 = vrot.lane.b32.xlu1 %v2984_v28, %s3598_s19 }
 0xac4   : > { %2773 = vrot.lane.b32.xlu0 %v2720_v59, %s3594_s28 }
 0xac6   : > { %2706 = vrot.lane.b32.xlu1 %v2668_v23, %s3598_s19 }
 0xac8   : > { %2877 = vrot.lane.b32.xlu0 %v2660_v13, %s3595_s16 }
 0xaca   : > { %3023 = vrot.lane.b32.xlu1 %v2986_v31, %s3598_s19  ;;  %v3518_v31 = vunpack.i.h.bf16 %v5000_v9 }
 0xacc   : > { %3043 = vrot.lane.b32.xlu0 %v2978_v19, %s3593_s27 }
 0xace   : > { %2767 = vrot.lane.b32.xlu1 %v2717_v24, %s3594_s28 }
 0xad0   : > { %3041 = vrot.lane.b32.xlu0 %v2977_v20, %s3593_s27 }
 0xad2   : > { %2771 = vrot.lane.b32.xlu1 %v2719_v30, %s3594_s28 }
 0xad4   : > { %2883 = vrot.lane.b32.xlu0 %v2663_v15, %s3595_s16 }
 0xad6   : > { %2875 = vrot.lane.b32.xlu1 %v2659_v49, %s3595_s16  ;;  %v3522_v49 = vunpack.i.l.bf16 %v5002_v48 }
 0xad8   : > { %3047 = vrot.lane.b32.xlu0 %v2980_v46, %s3593_s27 }
 0xada   : > { %2881 = vrot.lane.b32.xlu1 %v2662_v50, %s3595_s16 }
 0xade   : > { %3049 = vrot.lane.b32.xlu1 %v2981_v36, %s3593_s27 }
 0xb0a   : > { %v2681_v7 = vpop.permute.xlu0 %2680 }
 0xb0b   : > { %2779 = vrot.lane.b32.xlu0 %v2681_v7, %s3594_s28 }
 0xb0e   : > { %v2687_v6 = vpop.permute.xlu0 %2686 }
 0xb12   : > { %v2996_v17 = vpop.permute.xlu0 %2995 }
 0xb14   : > { %v5007_v2 = vpop.permute.xlu1 %3530 }
 0xb16   : > { %v5009_v56 = vpop.permute.xlu0 %3003 }
 0xb17   : > { %v3010_v4 = vsel %vm551_vm0, %v5009_v56, %v3503_v44 }
 0xb18   : > { %v2679_v43 = vpop.permute.xlu1 %2678 }
 0xb19   : > { %2775 = vrot.lane.b32.xlu1 %v2679_v43, %s3594_s28  ;;  %v2689_v27 = vsel %vm551_vm0, %v2679_v43, %v2681_v7  ;;  %v2688_v0 = vsel %vm551_vm0, %v3497_v47, %v2679_v43  ;;  %v3147_v47 = vld [vmem:[%s5195_s12] sm:$0xff] }
 0xb1a   : > { %v2742_v25 = vpop.permute.xlu0 %2741 }
 0xb1b   : > { %v2752_v62 = vsel %vm563_vm4, %v2742_v25, %v3492_v51 }
 0xb1c   : > { %v2685_v52 = vpop.permute.xlu1 %2684 }
 0xb1d   : > { %2785 = vrot.lane.b32.xlu1 %v2687_v6, %s3594_s28  ;;  %2781 = vrot.lane.b32.xlu0 %v2685_v52, %s3594_s28  ;;  %v2691_v60 = vsel %vm551_vm0, %v2685_v52, %v2687_v6 }
 0xb1e   : > { %v2746_v35 = vpop.permute.xlu0 %2745 }
 0xb20   : > { %v2998_v53 = vpop.permute.xlu1 %2997 }
 0xb21   : > { %2777 = vrot.lane.b32.xlu1 %v2689_v27, %s3594_s28  ;;  %2889 = vrot.lane.b32.xlu0 %v2681_v7, %s3595_s16  ;;  %v3008_v14 = vsel %vm551_vm0, %v2998_v53, %v3498_v32  ;;  %v3007_v33 = vsel %vm551_vm0, %v2996_v17, %v2998_v53  ;;  %v3502_v32 = vunpack.i.l.bf16 %v4890_v3  ;;  %v3508_v3 = vunpack.i.h.bf16 %v4996_v18 }
 0xb22   : > { %v5017_v40 = vpop.permute.xlu0 %2700  ;;  %v3507_v7 = vunpack.i.l.bf16 %v4996_v18  ;;  %v3523_v17 = vunpack.i.h.bf16 %v5002_v48  ;;  %v3528_v18 = vunpack.i.h.bf16 %v5005_v58 }
 0xb23   : > { %v2690_v16 = vsel %vm551_vm0, %v3502_v32, %v2685_v52 }
 0xb24   : > { %v3002_v63 = vpop.permute.xlu1 %3001 }
 0xb25   : > { %2895 = vrot.lane.b32.xlu0 %v2687_v6, %s3595_s16  ;;  %v3009_v20 = vsel %vm551_vm0, %v3002_v63, %v5009_v56  ;;  %v2710_v56 = vsel %vm563_vm4, %v3507_v7, %v5017_v40 }
 0xb26   : > { %v5020_v45 = vpop.permute.xlu0 %3017 }
 0xb28   : > { %v2740_v12 = vpop.permute.xlu1 %2739 }
 0xb29   : > { %2783 = vrot.lane.b32.xlu0 %v2691_v60, %s3594_s28  ;;  %2787 = vrot.lane.b32.xlu1 %v2740_v12, %s3594_s28  ;;  %v2751_v8 = vsel %vm563_vm4, %v2740_v12, %v2742_v25  ;;  %v3512_v12 = vunpack.i.l.bf16 %v4998_v42 }
 0xb2a   : > { %v5025_v54 = vpop.permute.xlu0 %2708 }
 0xb2c   : > { %v2748_v41 = vpop.permute.xlu1 %2747 }
 0xb2d   : > { %2793 = vrot.lane.b32.xlu0 %v2746_v35, %s3594_s28  ;;  %2887 = vrot.lane.b32.xlu1 %v2689_v27, %s3595_s16  ;;  %v2753_v26 = vsel %vm563_vm4, %v2746_v35, %v2748_v41  ;;  %v2754_v23 = vsel %vm563_vm4, %v2748_v41, %v3493_v55 }
 0xb2e   : > { %v5030_v10 = vpop.permute.xlu0 %3025 }
 0xb30   : > { %v2703_v38 = vpop.permute.xlu1 %2702 }
 0xb31   : > { %3055 = vrot.lane.b32.xlu0 %v3008_v14, %s3593_s27  ;;  %2885 = vrot.lane.b32.xlu1 %v2688_v0, %s3595_s16  ;;  %v2711_v46 = vsel %vm563_vm4, %v5017_v40, %v2703_v38 }
 0xb32   : > { %v2766_v5 = vpop.permute.xlu0 %2765 }
 0xb33   : > { %v2799_v39 = vsel %vm586_vm9, %v3517_v22, %v2766_v5 }
 0xb34   : > { %v5039_v11 = vpop.permute.xlu1 %3019 }
 0xb35   : > { %3053 = vrot.lane.b32.xlu0 %v3007_v33, %s3593_s27  ;;  %2893 = vrot.lane.b32.xlu1 %v2691_v60, %s3595_s16  ;;  %v3030_v27 = vsel %vm563_vm4, %v5039_v11, %v3508_v3  ;;  %v3029_v60 = vsel %vm563_vm4, %v5020_v45, %v5039_v11 }
 0xb36   : > { %v2774_v61 = vpop.permute.xlu0 %2773 }
 0xb38   : > { %v5046_v21 = vpop.permute.xlu1 %2706 }
 0xb39   : > { %2791 = vrot.lane.b32.xlu0 %v2752_v62, %s3594_s28  ;;  %2891 = vrot.lane.b32.xlu1 %v2690_v16, %s3595_s16  ;;  %v2713_v48 = vsel %vm563_vm4, %v5046_v21, %v5025_v54  ;;  %v2712_v58 = vsel %vm563_vm4, %v3512_v12, %v5046_v21 }
 0xb3a   : > { %v2878_v37 = vpop.permute.xlu0 %2877 }
 0xb3c   : > { %v5053_v57 = vpop.permute.xlu1 %3023 }
 0xb3d   : > { %2795 = vrot.lane.b32.xlu0 %v2753_v26, %s3594_s28  ;;  %2789 = vrot.lane.b32.xlu1 %v2751_v8, %s3594_s28  ;;  %v3031_v45 = vsel %vm563_vm4, %v5053_v57, %v5030_v10  ;;  %v3532_v8 = vunpack.i.l.bf16 %v5007_v2 }
 0xb3e   : > { %v3044_v29 = vpop.permute.xlu0 %3043 }
 0xb3f   : > { %v3078_v28 = vsel %vm534_vm6, %v3044_v29, %v3527_v34 }
 0xb40   : > { %v2768_v59 = vpop.permute.xlu1 %2767  ;;  %3104 = vmatprep.subr.bf16.mxu0 %v3078_v28 }
 0xb41   : > { %3061 = vrot.lane.b32.xlu0 %v3010_v4, %s3593_s27  ;;  %v2800_v13 = vsel %vm586_vm9, %v2766_v5, %v2768_v59  ;;  %2797 = vrot.lane.b32.xlu1 %v2754_v23, %s3594_s28 }
 0xb42   : > { %2826 = vmatprep.subr.bf16.mxu1 %v2800_v13  ;;  %v3042_v44 = vpop.permute.xlu0 %3041 }
 0xb43   : > { %2827 = vmatpush1.bf16.msra.mxu1 %v2799_v39  ;;  %v3077_v19 = vsel %vm534_vm6, %v3042_v44, %v3044_v29 }
 0xb44   : > { %v2772_v24 = vpop.permute.xlu1 %2771  ;;  %3105 = vmatpush1.bf16.msra.mxu0 %v3077_v19 }
 0xb45   : > { %v2801_v30 = vsel %vm586_vm9, %v3518_v31, %v2772_v24  ;;  %3069 = vrot.lane.b32.xlu0 %v3508_v3, %s3593_s27  ;;  %v2802_v15 = vsel %vm586_vm9, %v2772_v24, %v2774_v61  ;;  %3059 = vrot.lane.b32.xlu1 %v3009_v20, %s3593_s27  ;;  %v3533_v3 = vunpack.i.h.bf16 %v5007_v2 }
 0xb46   : > { %2828 = vmatprep.subr.bf16.mxu1 %v2802_v15  ;;  %v2884_v6 = vpop.permute.xlu0 %2883  ;;  %v3314_v15 = vld [vmem:[%s5194_s11 + $0x4] sm:$0xf] }
 0xb47   : > { %2829 = vmatpush1.bf16.msra.mxu1 %v2801_v30 }
 0xb48   : > { %v2876_v50 = vpop.permute.xlu1 %2875 }
 0xb49   : > { %v5083_v36 = vsel %vm744_vm10, %v3522_v49, %v2876_v50  ;;  %2899 = vrot.lane.b32.xlu0 %v2711_v46, %s3595_s16  ;;  %v5087_v9 = vsel %vm744_vm10, %v2876_v50, %v2878_v37  ;;  %2901 = vrot.lane.b32.xlu1 %v2703_v38, %s3595_s16 }
 0xb4a   : > { %v3048_v35 = vpop.permute.xlu0 %3047 }
 0xb4c   : > { %v2882_v43 = vpop.permute.xlu1 %2881 }
 0xb4d   : > { %v5095_v25 = vsel %vm744_vm10, %v3523_v17, %v2882_v43  ;;  %2897 = vrot.lane.b32.xlu0 %v2710_v56, %s3595_s16  ;;  %v5099_v52 = vsel %vm744_vm10, %v2882_v43, %v2884_v6  ;;  %2907 = vrot.lane.b32.xlu1 %v5025_v54, %s3595_s16  ;;  %v3513_v54 = vunpack.i.h.bf16 %v4998_v42 }
 0xb4f   : > { %v3032_v41 = vsel %vm563_vm4, %v5030_v10, %v3513_v54 }
 0xb50   : > { %v3050_v53 = vpop.permute.xlu1 %3049 }
 0xb51   : > { %v3079_v40 = vsel %vm534_vm6, %v3048_v35, %v3050_v53  ;;  %2905 = vrot.lane.b32.xlu0 %v2713_v48, %s3595_s16  ;;  %v3080_v63 = vsel %vm534_vm6, %v3050_v53, %v3528_v18  ;;  %3067 = vrot.lane.b32.xlu1 %v3030_v27, %s3593_s27 }
 0xb52   : > { %3106 = vmatprep.subr.bf16.mxu0 %v3080_v63 }
 0xb53   : > { %3107 = vmatpush1.bf16.msra.mxu0 %v3079_v40 }
 0xb55   : > { %2903 = vrot.lane.b32.xlu0 %v2712_v58, %s3595_s16  ;;  %3065 = vrot.lane.b32.xlu1 %v3029_v60, %s3593_s27  ;;  %v2714_v60 = vld [vmem:[%s5194_s11] sm:$0xf] }
 0xb59   : > { %3075 = vrot.lane.b32.xlu0 %v3513_v54, %s3593_s27  ;;  %3073 = vrot.lane.b32.xlu1 %v3032_v41, %s3593_s27 }
 0xb5d   : > { %3150 = vperm.xlu0 %3397, %v3147_v47   ;;  %3071 = vrot.lane.b32.xlu1 %v3031_v45, %s3593_s27  ;;  %v3317_v47 = vld [vmem:[%s5194_s11 + $0x8] sm:$0xf] }
 0xb7d   : > { %v2780_v14 = vpop.permute.xlu0 %2779 }
 0xb8b   : > { %v2776_v42 = vpop.permute.xlu1 %2775 }
 0xb8f   : > { %v2782_v38 = vpop.permute.xlu0 %2781  ;;  %v2786_v0 = vpop.permute.xlu1 %2785 }
 0xb93   : > { %v2890_v5 = vpop.permute.xlu0 %2889  ;;  %v2778_v33 = vpop.permute.xlu1 %2777 }
 0xb94   : > { %v2803_v11 = vsel %vm586_vm9, %v2776_v42, %v2778_v33  ;;  %v2804_v51 = vsel %vm586_vm9, %v2778_v33, %v2780_v14 }
 0xb95   : > { %2830 = vmatprep.subr.bf16.mxu1 %v2804_v51 }
 0xb96   : > { %2831 = vmatpush1.bf16.msra.mxu1 %v2803_v11 }
 0xb97   : > { %v2896_v32 = vpop.permute.xlu0 %2895 }
 0xb9b   : > { %v2784_v61 = vpop.permute.xlu0 %2783  ;;  %v2788_v62 = vpop.permute.xlu1 %2787 }
 0xb9c   : > { %v2805_v10 = vsel %vm586_vm9, %v2782_v38, %v2784_v61  ;;  %v2806_v21 = vsel %vm586_vm9, %v2784_v61, %v2786_v0 }
 0xb9d   : > { %2832 = vmatprep.subr.bf16.mxu1 %v2806_v21 }
 0xb9e   : > { %2833 = vmatpush1.bf16.msra.mxu1 %v2805_v10 }
 0xb9f   : > { %v2794_v16 = vpop.permute.xlu0 %2793  ;;  %v2888_v37 = vpop.permute.xlu1 %2887 }
 0xba0   : > { %v2914_v6 = vsel %vm744_vm10, %v2888_v37, %v2890_v5 }
 0xba3   : > { %v3056_v26 = vpop.permute.xlu0 %3055  ;;  %v2886_v57 = vpop.permute.xlu1 %2885 }
 0xba4   : > { %v3082_v34 = vsel %vm534_vm6, %v3056_v26, %v3532_v8  ;;  %v2913_v17 = vsel %vm744_vm10, %v2886_v57, %v2888_v37 }
 0xba5   : > { %3108 = vmatprep.subr.bf16.mxu0 %v3082_v34 }
 0xba7   : > { %v3054_v55 = vpop.permute.xlu0 %3053  ;;  %v2894_v29 = vpop.permute.xlu1 %2893 }
 0xba8   : > { %v3081_v22 = vsel %vm534_vm6, %v3054_v55, %v3056_v26  ;;  %v2916_v43 = vsel %vm744_vm10, %v2894_v29, %v2896_v32 }
 0xba9   : > { %3109 = vmatpush1.bf16.msra.mxu0 %v3081_v22 }
 0xbab   : > { %v2792_v4 = vpop.permute.xlu0 %2791  ;;  %v2892_v28 = vpop.permute.xlu1 %2891 }
 0xbaf   : > { %v2796_v59 = vpop.permute.xlu0 %2795  ;;  %v2790_v23 = vpop.permute.xlu1 %2789 }
 0xbb0   : > { %v2807_v13 = vsel %vm586_vm9, %v2788_v62, %v2790_v23  ;;  %v2808_v39 = vsel %vm586_vm9, %v2790_v23, %v2792_v4  ;;  %v2809_v20 = vsel %vm586_vm9, %v2794_v16, %v2796_v59 }
 0xbb1   : > { %2834 = vmatprep.subr.bf16.mxu1 %v2808_v39 }
 0xbb2   : > { %2835 = vmatpush1.bf16.msra.mxu1 %v2807_v13 }
 0xbb3   : > { %v3062_v31 = vpop.permute.xlu0 %3061  ;;  %v2798_v44 = vpop.permute.xlu1 %2797 }
 0xbb4   : > { %v3084_v19 = vsel %vm534_vm6, %v3062_v31, %v3533_v3  ;;  %v2810_v24 = vsel %vm586_vm9, %v2796_v59, %v2798_v44 }
 0xbb5   : > { %3110 = vmatprep.subr.bf16.mxu0 %v3084_v19  ;;  %2836 = vmatprep.subr.bf16.mxu1 %v2810_v24 }
 0xbb6   : > { %2837 = vmatpush1.bf16.msra.mxu1 %v2809_v20 }
 0xbb7   : > { %v3070_v30 = vpop.permute.xlu0 %3069  ;;  %2936 = vmatprep.subr.bf16.mxu1 %v5087_v9  ;;  %v3060_v2 = vpop.permute.xlu1 %3059 }
 0xbb8   : > { %v3083_v49 = vsel %vm534_vm6, %v3060_v2, %v3062_v31 }
 0xbb9   : > { %3315 = vmatmul.mubr.msk.bf16.vlgmr.msra.gmra.mrb[16].mxu1 %vm1236_vm2, %v3314_v15  ;;  %3111 = vmatpush1.bf16.msra.mxu0 %v3083_v49 }
 0xbba   : > { %2937 = vmatpush1.bf16.msra.mxu1 %v5083_v36  ;;  %2968 = vmatprep.mubr.bf16.mxu1 %v3592_v1 }
 0xbbb   : > { %v2900_v46 = vpop.permute.xlu0 %2899  ;;  %2938 = vmatprep.subr.bf16.mxu1 %v5099_v52  ;;  %v2902_v50 = vpop.permute.xlu1 %2901  ;;  %v2915_v52 = vsel %vm744_vm10, %v2892_v28, %v2894_v29 }
 0xbbc   : > { %v2918_v18 = vsel %vm744_vm10, %v2900_v46, %v2902_v50 }
 0xbbe   : > { %2939 = vmatpush1.bf16.msra.mxu1 %v5095_v25 }
 0xbbf   : > { %v2898_v7 = vpop.permute.xlu0 %2897  ;;  %2940 = vmatprep.subr.bf16.mxu1 %v2914_v6  ;;  %v2908_v9 = vpop.permute.xlu1 %2907 }
 0xbc0   : > { %v2917_v53 = vsel %vm744_vm10, %v2898_v7, %v2900_v46 }
 0xbc2   : > { %2941 = vmatpush1.bf16.msra.mxu1 %v2913_v17 }
 0xbc3   : > { %v2906_v56 = vpop.permute.xlu0 %2905  ;;  %2942 = vmatprep.subr.bf16.mxu1 %v2916_v43  ;;  %v3068_v36 = vpop.permute.xlu1 %3067 }
 0xbc4   : > { %v3086_v1 = vsel %vm534_vm6, %v3068_v36, %v3070_v30  ;;  %v2920_v40 = vsel %vm744_vm10, %v2906_v56, %v2908_v9 }
 0xbc5   : > { %3112 = vmatprep.subr.bf16.mxu0 %v3086_v1 }
 0xbc6   : > { %2943 = vmatpush1.bf16.msra.mxu1 %v2915_v52 }
 0xbc7   : > { %v2904_v25 = vpop.permute.xlu0 %2903  ;;  %2944 = vmatprep.subr.bf16.mxu1 %v2918_v18  ;;  %v3066_v48 = vpop.permute.xlu1 %3065 }
 0xbc8   : > { %v3085_v35 = vsel %vm534_vm6, %v3066_v48, %v3068_v36  ;;  %v2919_v58 = vsel %vm744_vm10, %v2904_v25, %v2906_v56 }
 0xbc9   : > { %3113 = vmatpush1.bf16.msra.mxu0 %v3085_v35 }
 0xbca   : > { %2945 = vmatpush1.bf16.msra.mxu1 %v2917_v53 }
 0xbcb   : > { %v3076_v27 = vpop.permute.xlu0 %3075  ;;  %2946 = vmatprep.subr.bf16.mxu1 %v2920_v40  ;;  %v3074_v63 = vpop.permute.xlu1 %3073 }
 0xbcc   : > { %v3088_v12 = vsel %vm534_vm6, %v3074_v63, %v3076_v27 }
 0xbcd   : > { %3114 = vmatprep.subr.bf16.mxu0 %v3088_v12 }
 0xbce   : > { %2947 = vmatpush1.bf16.msra.mxu1 %v2919_v58 }
 0xbcf   : > { %v3072_v54 = vpop.permute.xlu1 %3071 }
 0xbd0   : > { %v3087_v41 = vsel %vm534_vm6, %v3072_v54, %v3074_v63 }
 0xbd1   : > { %3316 = vmatmul.mubr.msk.bf16.vlgmr.msra.gmra.mrb[20].mxu1 %vm1236_vm2, %v2714_v60  ;;  %3115 = vmatpush1.bf16.msra.mxu0 %v3087_v41 }
 0xbd4   : > { %3318 = vmatmul.mubr.msk.bf16.vlgmr.msra.gmra.mrb[16].mxu0 %vm1236_vm2, %v3317_v47 }
 0xbdc   : > { %v3151_v21 = vpop.permute.xlu0 %3150 }
 0xc8c   : > { %v2860_v45 = vpop.f32.mrb[16].mxu1 }
 0xc8d   : > { %v2862_v14 = vpop.f32.mrb[17].mxu1 }
 0xc8e   : > { %v2864_v42 = vpop.f32.mrb[18].mxu1 }
 0xc8f   : > { %v2865_v38 = vpop.f32.mrb[19].mxu1 }
 0xca4   : > { %v2970_v0 = vpop.f32.mrb[20].mxu1 }
 0xca5   : > { %v2971_v5 = vadd.f32 %v2970_v0, %v2860_v45  ;;  %v2972_v33 = vpop.f32.mrb[21].mxu1 }
 0xca6   : > { %v2973_v11 = vadd.f32 %v2972_v33, %v2862_v14  ;;  %v2974_v51 = vpop.f32.mrb[22].mxu1 }
 0xca7   : > { %v2975_v32 = vpop.f32.mrb[23].mxu1  ;;  %v3138_v61 = vpop.f32.mrb[16].mxu0 }
 0xca8   : > { %v3145_v62 = vadd.f32 %v3138_v61, %v2971_v5  ;;  %v3140_v10 = vpop.f32.mrb[17].mxu0 }
 0xca9   : > { %v3146_v16 = vadd.f32 %v3140_v10, %v2973_v11  ;;  %v3142_v37 = vpop.f32.mrb[18].mxu0 }
 0xcaa   : > { %v3153_v8 = vadd.f32 %v3151_v21, %v3145_v62  ;;  %v3143_v26 = vpop.f32.mrb[19].mxu0 }
 0xcab   : > { %v3154_v57 = vadd.f32 %v3151_v21, %v3146_v16 }
 0xcac   : > { %3155 = vst [vmem:[%s440_s23] sm:$0xff] %v3153_v8 }
 0xcad   : > { %3156 = vst [vmem:[%s440_s23 + $0x8] sm:$0xff] %v3154_v57 }
 0xcae PF: > { %s23_s25 = sadd.s32 1, %s3590_s25  }
 0xcaf   : > { %p20_p4 = scmp.ge.s32.totalorder %s23_s25, 4  }
 0xcb1   :  { %22 = sbr.rel (!%p20_p4) target bundleno = 1 (0x1), region = 117 }

</bundles_post_ra>
